<compile_context>
chip_gen: v7x
topology: tpu7x:2x2x1
jax: 0.10.0
libtpu: 0.0.40
codegen_flags: <defaults>
</compile_context>

<pallas_src>
import jax
import jax.numpy as jnp
from jax.experimental import pallas as pl
from jax.experimental.pallas import tpu as pltpu

HIDDEN = 32      # hidden_size
EMBED = 16       # embed_model.embedding_dim
VOCAB = 50
POS_SIZE = 4     # span_size for PositionalEncoding (>= number of spans)


# ---------------------------------------------------------------------------
# Pallas kernels
# ---------------------------------------------------------------------------

def _gru_dir_kernel(gi_ref, m_ref, h0_ref, whh_ref, bhn_ref, out_ref, hT_ref):
    """One GRU direction over the whole sequence (grid axis = direction only).

      gi_ref  : (1, 3T, B, H)  precomputed input projection per gate,
                               row (3t+g) = gate g at time t; b_hr/b_hz folded in
      m_ref   : (1, T, B, 1)   validity mask (1.0 while t < length)
      h0_ref  : (1, B, H)      initial hidden
      whh_ref : (1, 3, H, H)   recurrent weights per gate [r, z, n]
      bhn_ref : (1, 1, H)      b_hn (cannot be folded: multiplied by r)
      out_ref : (1, T, B, H)   hidden at each step (zero past each row's length)
      hT_ref  : (1, B, H)      final hidden (frozen at each row's length)
    """
    T = out_ref.shape[1]

    # Hoist recurrent weights out of the time loop (loaded once as values).
    w_r = whh_ref[0, 0]
    w_z = whh_ref[0, 1]
    w_n = whh_ref[0, 2]
    b_n = bhn_ref[0]                     # (1, H)

    h = h0_ref[0]                        # (B, H)

    # T is small and static -> fully unrolled, all ref indices are static.
    for t in range(T):
        m = m_ref[0, t]                  # (B, 1)
        g_r = gi_ref[0, 3 * t + 0]       # (B, H)
        g_z = gi_ref[0, 3 * t + 1]
        g_n = gi_ref[0, 3 * t + 2]

        r = jax.nn.sigmoid(g_r + jnp.dot(h, w_r, preferred_element_type=jnp.float32))
        z = jax.nn.sigmoid(g_z + jnp.dot(h, w_z, preferred_element_type=jnp.float32))
        n = jnp.tanh(g_n + r * (jnp.dot(h, w_n, preferred_element_type=jnp.float32) + b_n))
        h_new = (1.0 - z) * n + z * h

        h = m * h_new + (1.0 - m) * h    # freeze state past each row's length
        out_ref[0, t] = m * h_new        # zero-pad like pad_packed_sequence

    hT_ref[0] = h                        # written once, after the loop


def _span_attn_kernel(x_ref, pe_ref, mk_ref, mq_ref, w_ref, b_ref, o_ref):
    """Fused span path:  out = tanh(Linear([softmax(q q^T, masked) q ; q]))
       with q = x + positional_encoding, and padded-span rows zeroed.

      x_ref  : (B, S, H)   span inputs (padded along S)
      pe_ref : (S, H)      positional encoding rows (zero-padded)
      mk_ref : (B, 1, S)   1.0 at padded key/context positions
      mq_ref : (B, S, 1)   1.0 at padded query positions
      w_ref  : (2H, H)     rows [0:H] multiply mix, rows [H:2H] multiply q
      b_ref  : (1, H)
    """
    x = x_ref[...].astype(jnp.float32)
    q = x + pe_ref[...][None, :, :]                      # PositionalEncoding folded in
    mk = mk_ref[...]
    mq = mq_ref[...]
    B, S, H = x.shape

    scores = jnp.einsum('bqd,bkd->bqk', q, q, preferred_element_type=jnp.float32)
    scores = jnp.where(mk != 0.0, -1e30, scores)         # mask BEFORE the max
    scores = scores - jnp.max(scores, axis=-1, keepdims=True)
    e = jnp.exp(scores)
    attn = e / jnp.sum(e, axis=-1, keepdims=True)

    mix = jnp.einsum('bqk,bkd->bqd', attn, q, preferred_element_type=jnp.float32)

    out2 = jnp.tanh(
        jnp.dot(mix.reshape(B * S, H), w_ref[0:H, :], preferred_element_type=jnp.float32)
        + jnp.dot(q.reshape(B * S, H), w_ref[H:2 * H, :], preferred_element_type=jnp.float32)
        + b_ref[...])
    # span_output * (span_mask == 0) folded in:
    o_ref[...] = out2.reshape(B, S, H) * (1.0 - mq)


# ---------------------------------------------------------------------------
# Pallas wrappers
# ---------------------------------------------------------------------------

def run_bigru_layer(x, h0f, h0b, lengths, params_f, params_b):
    """One bidirectional GRU layer.

    x: (B, T, I) -> (out_f (B,T,H), out_b (B,T,H), hT_f (B,H), hT_b (B,H)),
    outputs zero-padded past each row's length.
    """
    B, T, I = x.shape
    H = h0f.shape[-1]
    x32 = x.astype(jnp.float32)
    xt = jnp.transpose(x32, (1, 0, 2)).reshape(T * B, I)          # (T*B, I)

    def make_gi(wih, bih, bhh):
        # Hoisted input projection: one big matmul for the whole sequence.
        gi = jnp.dot(xt, wih) + bih                               # (T*B, 3H)
        gi_r = (gi[:, 0 * H:1 * H] + bhh[0 * H:1 * H]).reshape(T, B, H)   # fold b_hr
        gi_z = (gi[:, 1 * H:2 * H] + bhh[1 * H:2 * H]).reshape(T, B, H)   # fold b_hz
        gi_n = gi[:, 2 * H:3 * H].reshape(T, B, H)                        # b_hn stays
        return jnp.stack([gi_r, gi_z, gi_n], axis=1).reshape(3 * T, B, H)

    def split_whh(whh):
        return jnp.stack([whh[:, 0 * H:1 * H], whh[:, 1 * H:2 * H],
                          whh[:, 2 * H:3 * H]], axis=0)           # (3, H, H)

    wih_f, whh_f, bih_f, bhh_f = params_f
    wih_b, whh_b, bih_b, bhh_b = params_b

    gif = make_gi(wih_f, bih_f, bhh_f)                            # (3T, B, H)
    gib = make_gi(wih_b, bih_b, bhh_b)
    mask = (jnp.arange(T)[:, None] < lengths[None, :]).astype(jnp.float32)[:, :, None]

    def flip_gates(gi):   # reverse time but keep gate order within each step
        return jnp.flip(gi.reshape(T, 3, B, H), axis=0).reshape(3 * T, B, H)

    # Stack fwd/bwd on a leading "parallel" grid axis. Backward gets fully
    # time-flipped inputs + flipped mask (the mask provides the per-row
    # "not started yet" gating); its output is flipped back below.
    gi_all = jnp.stack([gif, flip_gates(gib)], axis=0)            # (2, 3T, B, H)
    m_all = jnp.stack([mask, jnp.flip(mask, axis=0)], axis=0)     # (2, T, B, 1)
    h0_all = jnp.stack([h0f, h0b], axis=0).astype(jnp.float32)    # (2, B, H)
    whh_all = jnp.stack([split_whh(whh_f), split_whh(whh_b)], axis=0)  # (2,3,H,H)
    bhn_all = jnp.stack([bhh_f[2 * H:3 * H].reshape(1, H),
                         bhh_b[2 * H:3 * H].reshape(1, H)], axis=0)    # (2, 1, H)

    out_all, hT_all = pl.pallas_call(
        _gru_dir_kernel,
        grid=(2,),
        in_specs=[
            pl.BlockSpec((1, 3 * T, B, H), lambda d: (d, 0, 0, 0)),
            pl.BlockSpec((1, T, B, 1), lambda d: (d, 0, 0, 0)),
            pl.BlockSpec((1, B, H), lambda d: (d, 0, 0)),
            pl.BlockSpec((1, 3, H, H), lambda d: (d, 0, 0, 0)),
            pl.BlockSpec((1, 1, H), lambda d: (d, 0, 0)),
        ],
        out_specs=[
            pl.BlockSpec((1, T, B, H), lambda d: (d, 0, 0, 0)),
            pl.BlockSpec((1, B, H), lambda d: (d, 0, 0)),
        ],
        out_shape=[
            jax.ShapeDtypeStruct((2, T, B, H), jnp.float32),
            jax.ShapeDtypeStruct((2, B, H), jnp.float32),
        ],
        compiler_params=pltpu.CompilerParams(dimension_semantics=("parallel",)),
    )(gi_all, m_all, h0_all, whh_all, bhn_all)

    out_f = jnp.transpose(out_all[0], (1, 0, 2))                  # (B, T, H)
    out_b = jnp.transpose(jnp.flip(out_all[1], axis=0), (1, 0, 2))
    return out_f, out_b, hT_all[0], hT_all[1]


def span_self_attention(span_input, pe, span_mask, W, b):
    """span_input: (B,S,H), pe: (POS,H), span_mask: (B,S) with 1 at padded spans."""
    B, S, H = span_input.shape
    S_pad = max(8, ((S + 7) // 8) * 8)
    x_p = jnp.pad(span_input.astype(jnp.float32), ((0, 0), (0, S_pad - S), (0, 0)))
    pe_p = jnp.pad(pe[:S].astype(jnp.float32), ((0, S_pad - S), (0, 0)))
    m_p = jnp.pad(span_mask.astype(jnp.float32), ((0, 0), (0, S_pad - S)),
                  constant_values=1.0)
    out = pl.pallas_call(
        _span_attn_kernel,
        out_shape=jax.ShapeDtypeStruct((B, S_pad, H), jnp.float32),
    )(x_p, pe_p, m_p[:, None, :], m_p[:, :, None], W, b.reshape(1, -1))
    return out[:, :S]


# ---------------------------------------------------------------------------
# Plain-JAX pieces (glue + below-break-even ops)
# ---------------------------------------------------------------------------

def attention_jax(q, c, W, b):
    """Same Luong attention math as the Pallas span kernel (no mask); used for
    the per-node to_parent calls — far below kernel break-even (perf review #9b)."""
    H = q.shape[-1]
    scores = jnp.einsum('bqd,bkd->bqk', q, c)
    attn = jax.nn.softmax(scores, axis=-1)
    mix = jnp.einsum('bqk,bkd->bqd', attn, c)
    return jnp.tanh(jnp.einsum('bqd,dh->bqh', mix, W[:H])
                    + jnp.einsum('bqd,dh->bqh', q, W[H:]) + b)


def bi_gru_2layer(x, h0, lengths, gru_params):
    """2-layer bidirectional GRU. h0: (4, B, H) = [l0_fwd, l0_bwd, l1_fwd, l1_bwd]."""
    inp = x
    finals = []
    for layer in range(2):
        pf = gru_params[layer]['fwd']
        pb = gru_params[layer]['bwd']
        out_f, out_b, h_f, h_b = run_bigru_layer(
            inp, h0[2 * layer], h0[2 * layer + 1], lengths, pf, pb)
        inp = jnp.concatenate([out_f, out_b], axis=-1)            # (B, T, 2H)
        finals.extend([h_f, h_b])
    return inp, jnp.stack(finals, axis=0)                         # (B,T,2H), (4,B,H)


def dependency_encode(params, word_output, tree):
    """word_output: (1, T, H); tree = (word, rel, left_children, right_children)."""
    word, _rel, left, right = tree
    children = left + right
    word_vector = word_output[:, word]                            # (1, H)
    if len(children) == 0:
        return word_vector
    child_vecs = [dependency_encode(params, word_output, ch)[:, None, :]
                  for ch in children]
    children_vector = jnp.concatenate(child_vecs, axis=1)         # (1, Nc, H)
    query = word_vector[:, None, :]                               # (1, 1, H)
    out = attention_jax(query, children_vector,
                        params['to_parent_W'], params['to_parent_b'])
    return out[:, 0, :]


def encoder_forward(params, input_vars, input_lengths, span_length, trees):
    H = HIDDEN
    B = input_vars[0].shape[0]
    bi_word_hidden = jnp.zeros((4, B, H), jnp.float32)            # carried across spans
    pad_hidden = jnp.zeros((1, H), jnp.float32)
    word_outputs = []
    span_inputs = []
    for si, input_var in enumerate(input_vars):
        lengths = input_lengths[si]
        embedded = params['embedding'][input_var]                 # (B, T, E)
        # TODO(synk): dropout layers treated as eval-mode identity (no RNG-matched train dropout).
        pad_len = jnp.maximum(lengths, 1)                         # pad_input_length[==0] = 1
        word_out, bi_word_hidden = bi_gru_2layer(embedded, bi_word_hidden, pad_len,
                                                 params['gru'])
        # bi_combine on outputs (fwd + bwd); combined hidden is unused downstream
        word_output = word_out[..., :H] + word_out[..., H:]
        # Kept at static length T (zero past each row's length) instead of slicing
        # to the data-dependent max length -> no device->host sync, jittable.
        span_span_input = []
        for bi_idx in range(B):
            tree = trees[si][bi_idx]
            if tree is not None:
                vec = dependency_encode(params, word_output[bi_idx:bi_idx + 1], tree)
            else:
                vec = pad_hidden
            span_span_input.append(vec)
        span_inputs.append(jnp.concatenate(span_span_input, axis=0)[:, None, :])
        word_outputs.append(word_output)
    span_input = jnp.concatenate(span_inputs, axis=1)             # (B, S, H)
    S = span_input.shape[1]
    # get_mask(span_length, S): 1 at padded span positions
    span_mask = (jnp.arange(S)[None, :] >= span_length[:, None]).astype(jnp.float32)
    # PositionalEncoding + span_attn + linear_out/tanh + padded-span zeroing (fused kernel)
    span_output = span_self_attention(span_input, params['pe'], span_mask,
                                      params['span_attn_W'], params['span_attn_b'])
    span_hidden = span_output[jnp.arange(B), span_length - 1][None]   # (1, B, H)
    return (span_output, word_outputs), span_hidden


# ---------------------------------------------------------------------------
# Deterministic parameter init
# ---------------------------------------------------------------------------

def init_params(key):
    keys = jax.random.split(key, 12)
    p = {}
    p['embedding'] = jax.random.normal(keys[0], (VOCAB, EMBED), jnp.float32) * 0.1
    gru = []
    ki = 1
    for layer in range(2):
        I = EMBED if layer == 0 else 2 * HIDDEN
        layer_p = {}
        for name in ('fwd', 'bwd'):
            kk = jax.random.split(keys[ki], 4)
            ki += 1
            layer_p[name] = (
                jax.random.uniform(kk[0], (I, 3 * HIDDEN), jnp.float32, -0.1, 0.1),
                jax.random.uniform(kk[1], (HIDDEN, 3 * HIDDEN), jnp.float32, -0.1, 0.1),
                jax.random.uniform(kk[2], (3 * HIDDEN,), jnp.float32, -0.1, 0.1),
                jax.random.uniform(kk[3], (3 * HIDDEN,), jnp.float32, -0.1, 0.1),
            )
        gru.append(layer_p)
    p['gru'] = gru
    p['pe'] = jax.random.uniform(keys[ki], (POS_SIZE, HIDDEN), jnp.float32) * 2.0 - 1.0
    ki += 1
    p['span_attn_W'] = jax.random.uniform(keys[ki], (2 * HIDDEN, HIDDEN),
                                          jnp.float32, -0.1, 0.1)
    ki += 1
    p['span_attn_b'] = jnp.zeros((HIDDEN,), jnp.float32)
    p['to_parent_W'] = jax.random.uniform(keys[ki], (2 * HIDDEN, HIDDEN),
                                          jnp.float32, -0.1, 0.1)
    p['to_parent_b'] = jnp.zeros((HIDDEN,), jnp.float32)
    return p


# ---------------------------------------------------------------------------

if __name__ == "__main__":
    key = jax.random.PRNGKey(0)
    params = init_params(key)

    B, T = 2, 6
    kx = jax.random.split(jax.random.PRNGKey(0), 3)
    input_vars = [
        jax.random.randint(kx[1], (B, T), 0, VOCAB),              # span 0 word ids
        jax.random.randint(kx[2], (B, T), 0, VOCAB),              # span 1 word ids
    ]
    input_lengths = [
        jnp.array([5, 3], jnp.int32),
        jnp.array([2, 0], jnp.int32),
    ]
    span_length = jnp.array([2, 1], jnp.int32)

    # tree = (word_index, relation, left_children, right_children)
    leaf = lambda w: (w, 'dep', [], [])
    trees = [
        [  # span 0
            (2, 'root', [leaf(0)], [(3, 'dep', [], [leaf(4)])]),   # batch 0
            (1, 'root', [leaf(0)], []),                            # batch 1
        ],
        [  # span 1
            leaf(0),                                                # batch 0
            None,                                                   # batch 1 (padded span)
        ],
    ]

    # Whole forward is now jittable (no host sync); trees drive Python-level
    # structure only, so they are closed over statically.
    fwd = jax.jit(lambda p, iv, il, sl: encoder_forward(p, iv, il, sl, trees))

    (span_output, word_outputs), span_hidden = fwd(
        params, input_vars, input_lengths, span_length)

    jax.block_until_ready(span_output)
    jax.block_until_ready(span_hidden)
    for w in word_outputs:
        jax.block_until_ready(w)

    assert span_output.shape == (B, 2, HIDDEN)
    assert span_hidden.shape == (1, B, HIDDEN)
    print("KERNEL_OK")
</pallas_src>

<mosaic_0001>
module attributes {stable_mosaic.version = 11 : i64} {
  func.func @_gru_dir_kernel(%arg0: i32, %arg1: memref<1x18x2x32xf32, #tpu.memory_space<vmem>>, %arg2: memref<1x6x2x1xf32, #tpu.memory_space<vmem>>, %arg3: memref<1x2x32xf32, #tpu.memory_space<vmem>>, %arg4: memref<1x3x32x32xf32, #tpu.memory_space<vmem>>, %arg5: memref<1x1x32xf32, #tpu.memory_space<vmem>>, %arg6: memref<1x6x2x32xf32, #tpu.memory_space<vmem>>, %arg7: memref<1x2x32xf32, #tpu.memory_space<vmem>>) attributes {dimension_semantics = [#tpu.dimension_semantics<parallel>], iteration_bounds = array<i64: 2>, scalar_prefetch = 0 : i64, scratch_operands = 0 : i64, tpu.core_type = #tpu.core_type<tc>, window_params = [{transform_indices = @transform_0, window_bounds = array<i64: 1, 18, 2, 32>}, {transform_indices = @transform_1, window_bounds = array<i64: 1, 6, 2, 1>}, {transform_indices = @transform_2, window_bounds = array<i64: 1, 2, 32>}, {transform_indices = @transform_3, window_bounds = array<i64: 1, 3, 32, 32>}, {transform_indices = @transform_4, window_bounds = array<i64: 1, 1, 32>}, {transform_indices = @transform_5, window_bounds = array<i64: 1, 6, 2, 32>}, {transform_indices = @transform_6, window_bounds = array<i64: 1, 2, 32>}]} {
    %c0 = arith.constant 0 : index
    %c0_0 = arith.constant 0 : index
    %c0_1 = arith.constant 0 : index
    %c0_2 = arith.constant 0 : index
    %0 = vector.load %arg4[%c0, %c0_0, %c0_1, %c0_2] : memref<1x3x32x32xf32, #tpu.memory_space<vmem>>, vector<1x1x32x32xf32>
    %1 = vector.shape_cast %0 : vector<1x1x32x32xf32> to vector<32x32xf32>
    %c0_3 = arith.constant 0 : index
    %c1 = arith.constant 1 : index
    %c0_4 = arith.constant 0 : index
    %c0_5 = arith.constant 0 : index
    %2 = vector.load %arg4[%c0_3, %c1, %c0_4, %c0_5] : memref<1x3x32x32xf32, #tpu.memory_space<vmem>>, vector<1x1x32x32xf32>
    %3 = vector.shape_cast %2 : vector<1x1x32x32xf32> to vector<32x32xf32>
    %c0_6 = arith.constant 0 : index
    %c2 = arith.constant 2 : index
    %c0_7 = arith.constant 0 : index
    %c0_8 = arith.constant 0 : index
    %4 = vector.load %arg4[%c0_6, %c2, %c0_7, %c0_8] : memref<1x3x32x32xf32, #tpu.memory_space<vmem>>, vector<1x1x32x32xf32>
    %5 = vector.shape_cast %4 : vector<1x1x32x32xf32> to vector<32x32xf32>
    %c0_9 = arith.constant 0 : index
    %c0_10 = arith.constant 0 : index
    %c0_11 = arith.constant 0 : index
    %6 = vector.load %arg5[%c0_9, %c0_10, %c0_11] : memref<1x1x32xf32, #tpu.memory_space<vmem>>, vector<1x1x32xf32>
    %7 = vector.shape_cast %6 : vector<1x1x32xf32> to vector<1x32xf32>
    %c0_12 = arith.constant 0 : index
    %c0_13 = arith.constant 0 : index
    %c0_14 = arith.constant 0 : index
    %8 = vector.load %arg3[%c0_12, %c0_13, %c0_14] : memref<1x2x32xf32, #tpu.memory_space<vmem>>, vector<1x2x32xf32>
    %9 = vector.shape_cast %8 : vector<1x2x32xf32> to vector<2x32xf32>
    %c0_15 = arith.constant 0 : index
    %c0_16 = arith.constant 0 : index
    %c0_17 = arith.constant 0 : index
    %c0_18 = arith.constant 0 : index
    %10 = vector.load %arg2[%c0_15, %c0_16, %c0_17, %c0_18] : memref<1x6x2x1xf32, #tpu.memory_space<vmem>>, vector<1x1x2x1xf32>
    %11 = vector.shape_cast %10 : vector<1x1x2x1xf32> to vector<2x1xf32>
    %c0_19 = arith.constant 0 : index
    %c0_20 = arith.constant 0 : index
    %c0_21 = arith.constant 0 : index
    %c0_22 = arith.constant 0 : index
    %12 = vector.load %arg1[%c0_19, %c0_20, %c0_21, %c0_22] : memref<1x18x2x32xf32, #tpu.memory_space<vmem>>, vector<1x1x2x32xf32>
    %13 = vector.shape_cast %12 : vector<1x1x2x32xf32> to vector<2x32xf32>
    %c0_23 = arith.constant 0 : index
    %c1_24 = arith.constant 1 : index
    %c0_25 = arith.constant 0 : index
    %c0_26 = arith.constant 0 : index
    %14 = vector.load %arg1[%c0_23, %c1_24, %c0_25, %c0_26] : memref<1x18x2x32xf32, #tpu.memory_space<vmem>>, vector<1x1x2x32xf32>
    %15 = vector.shape_cast %14 : vector<1x1x2x32xf32> to vector<2x32xf32>
    %c0_27 = arith.constant 0 : index
    %c2_28 = arith.constant 2 : index
    %c0_29 = arith.constant 0 : index
    %c0_30 = arith.constant 0 : index
    %16 = vector.load %arg1[%c0_27, %c2_28, %c0_29, %c0_30] : memref<1x18x2x32xf32, #tpu.memory_space<vmem>>, vector<1x1x2x32xf32>
    %17 = vector.shape_cast %16 : vector<1x1x2x32xf32> to vector<2x32xf32>
    %cst = arith.constant dense<0.000000e+00> : vector<2x32xf32>
    %18 = tpu.matmul %9, %1, %cst {dimension_numbers = #tpu.dot_dimension_numbers<[1], [0], [0], [1], [0, 0, 1, 1], [], []>} : vector<2x32xf32>, vector<32x32xf32>, vector<2x32xf32> -> vector<2x32xf32>
    %19 = arith.addf %13, %18 : vector<2x32xf32>
    %20 = arith.negf %19 : vector<2x32xf32>
    %21 = math.exp %20 : vector<2x32xf32>
    %cst_31 = arith.constant 1.000000e+00 : f32
    %22 = vector.broadcast %cst_31 : f32 to vector<2x32xf32>
    %23 = arith.addf %22, %21 : vector<2x32xf32>
    %24 = arith.divf %22, %23 : vector<2x32xf32>
    %cst_32 = arith.constant dense<0.000000e+00> : vector<2x32xf32>
    %25 = tpu.matmul %9, %3, %cst_32 {dimension_numbers = #tpu.dot_dimension_numbers<[1], [0], [0], [1], [0, 0, 1, 1], [], []>} : vector<2x32xf32>, vector<32x32xf32>, vector<2x32xf32> -> vector<2x32xf32>
    %26 = arith.addf %15, %25 : vector<2x32xf32>
    %27 = arith.negf %26 : vector<2x32xf32>
    %28 = math.exp %27 : vector<2x32xf32>
    %cst_33 = arith.constant 1.000000e+00 : f32
    %29 = vector.broadcast %cst_33 : f32 to vector<2x32xf32>
    %30 = arith.addf %29, %28 : vector<2x32xf32>
    %31 = arith.divf %29, %30 : vector<2x32xf32>
    %cst_34 = arith.constant dense<0.000000e+00> : vector<2x32xf32>
    %32 = tpu.matmul %9, %5, %cst_34 {dimension_numbers = #tpu.dot_dimension_numbers<[1], [0], [0], [1], [0, 0, 1, 1], [], []>} : vector<2x32xf32>, vector<32x32xf32>, vector<2x32xf32> -> vector<2x32xf32>
    %33 = vector.broadcast %7 : vector<1x32xf32> to vector<2x32xf32>
    %34 = arith.addf %32, %33 : vector<2x32xf32>
    %35 = arith.mulf %24, %34 : vector<2x32xf32>
    %36 = arith.addf %17, %35 : vector<2x32xf32>
    %37 = math.tanh %36 : vector<2x32xf32>
    %cst_35 = arith.constant 1.000000e+00 : f32
    %38 = vector.broadcast %cst_35 : f32 to vector<2x32xf32>
    %39 = arith.subf %38, %31 : vector<2x32xf32>
    %40 = arith.mulf %39, %37 : vector<2x32xf32>
    %41 = arith.mulf %31, %9 : vector<2x32xf32>
    %42 = arith.addf %40, %41 : vector<2x32xf32>
    %43 = vector.broadcast %11 : vector<2x1xf32> to vector<2x32xf32>
    %44 = arith.mulf %43, %42 : vector<2x32xf32>
    %cst_36 = arith.constant 1.000000e+00 : f32
    %45 = vector.broadcast %cst_36 : f32 to vector<2x1xf32>
    %46 = arith.subf %45, %11 : vector<2x1xf32>
    %47 = vector.broadcast %46 : vector<2x1xf32> to vector<2x32xf32>
    %48 = arith.mulf %47, %9 : vector<2x32xf32>
    %49 = arith.addf %44, %48 : vector<2x32xf32>
    %50 = vector.broadcast %11 : vector<2x1xf32> to vector<2x32xf32>
    %51 = arith.mulf %50, %42 : vector<2x32xf32>
    %c0_37 = arith.constant 0 : index
    %c0_38 = arith.constant 0 : index
    %c0_39 = arith.constant 0 : index
    %c0_40 = arith.constant 0 : index
    %52 = vector.load %arg6[%c0_37, %c0_38, %c0_39, %c0_40] : memref<1x6x2x32xf32, #tpu.memory_space<vmem>>, vector<1x1x2x32xf32>
    %53 = vector.shape_cast %52 : vector<1x1x2x32xf32> to vector<2x32xf32>
    %54 = vector.shape_cast %51 : vector<2x32xf32> to vector<1x1x2x32xf32>
    tpu.vector_store %arg6[%c0_37, %c0_38, %c0_39, %c0_40], %54 {strides = array<i32>} : memref<1x6x2x32xf32, #tpu.memory_space<vmem>>, vector<1x1x2x32xf32>,
    %c0_41 = arith.constant 0 : index
    %c1_42 = arith.constant 1 : index
    %c0_43 = arith.constant 0 : index
    %c0_44 = arith.constant 0 : index
    %55 = vector.load %arg2[%c0_41, %c1_42, %c0_43, %c0_44] : memref<1x6x2x1xf32, #tpu.memory_space<vmem>>, vector<1x1x2x1xf32>
    %56 = vector.shape_cast %55 : vector<1x1x2x1xf32> to vector<2x1xf32>
    %c0_45 = arith.constant 0 : index
    %c3 = arith.constant 3 : index
    %c0_46 = arith.constant 0 : index
    %c0_47 = arith.constant 0 : index
    %57 = vector.load %arg1[%c0_45, %c3, %c0_46, %c0_47] : memref<1x18x2x32xf32, #tpu.memory_space<vmem>>, vector<1x1x2x32xf32>
    %58 = vector.shape_cast %57 : vector<1x1x2x32xf32> to vector<2x32xf32>
    %c0_48 = arith.constant 0 : index
    %c4 = arith.constant 4 : index
    %c0_49 = arith.constant 0 : index
    %c0_50 = arith.constant 0 : index
    %59 = vector.load %arg1[%c0_48, %c4, %c0_49, %c0_50] : memref<1x18x2x32xf32, #tpu.memory_space<vmem>>, vector<1x1x2x32xf32>
    %60 = vector.shape_cast %59 : vector<1x1x2x32xf32> to vector<2x32xf32>
    %c0_51 = arith.constant 0 : index
    %c5 = arith.constant 5 : index
    %c0_52 = arith.constant 0 : index
    %c0_53 = arith.constant 0 : index
    %61 = vector.load %arg1[%c0_51, %c5, %c0_52, %c0_53] : memref<1x18x2x32xf32, #tpu.memory_space<vmem>>, vector<1x1x2x32xf32>
    %62 = vector.shape_cast %61 : vector<1x1x2x32xf32> to vector<2x32xf32>
    %cst_54 = arith.constant dense<0.000000e+00> : vector<2x32xf32>
    %63 = tpu.matmul %49, %1, %cst_54 {dimension_numbers = #tpu.dot_dimension_numbers<[1], [0], [0], [1], [0, 0, 1, 1], [], []>} : vector<2x32xf32>, vector<32x32xf32>, vector<2x32xf32> -> vector<2x32xf32>
    %64 = arith.addf %58, %63 : vector<2x32xf32>
    %65 = arith.negf %64 : vector<2x32xf32>
    %66 = math.exp %65 : vector<2x32xf32>
    %cst_55 = arith.constant 1.000000e+00 : f32
    %67 = vector.broadcast %cst_55 : f32 to vector<2x32xf32>
    %68 = arith.addf %67, %66 : vector<2x32xf32>
    %69 = arith.divf %67, %68 : vector<2x32xf32>
    %cst_56 = arith.constant dense<0.000000e+00> : vector<2x32xf32>
    %70 = tpu.matmul %49, %3, %cst_56 {dimension_numbers = #tpu.dot_dimension_numbers<[1], [0], [0], [1], [0, 0, 1, 1], [], []>} : vector<2x32xf32>, vector<32x32xf32>, vector<2x32xf32> -> vector<2x32xf32>
    %71 = arith.addf %60, %70 : vector<2x32xf32>
    %72 = arith.negf %71 : vector<2x32xf32>
    %73 = math.exp %72 : vector<2x32xf32>
    %cst_57 = arith.constant 1.000000e+00 : f32
    %74 = vector.broadcast %cst_57 : f32 to vector<2x32xf32>
    %75 = arith.addf %74, %73 : vector<2x32xf32>
    %76 = arith.divf %74, %75 : vector<2x32xf32>
    %cst_58 = arith.constant dense<0.000000e+00> : vector<2x32xf32>
    %77 = tpu.matmul %49, %5, %cst_58 {dimension_numbers = #tpu.dot_dimension_numbers<[1], [0], [0], [1], [0, 0, 1, 1], [], []>} : vector<2x32xf32>, vector<32x32xf32>, vector<2x32xf32> -> vector<2x32xf32>
    %78 = vector.broadcast %7 : vector<1x32xf32> to vector<2x32xf32>
    %79 = arith.addf %77, %78 : vector<2x32xf32>
    %80 = arith.mulf %69, %79 : vector<2x32xf32>
    %81 = arith.addf %62, %80 : vector<2x32xf32>
    %82 = math.tanh %81 : vector<2x32xf32>
    %cst_59 = arith.constant 1.000000e+00 : f32
    %83 = vector.broadcast %cst_59 : f32 to vector<2x32xf32>
    %84 = arith.subf %83, %76 : vector<2x32xf32>
    %85 = arith.mulf %84, %82 : vector<2x32xf32>
    %86 = arith.mulf %76, %49 : vector<2x32xf32>
    %87 = arith.addf %85, %86 : vector<2x32xf32>
    %88 = vector.broadcast %56 : vector<2x1xf32> to vector<2x32xf32>
    %89 = arith.mulf %88, %87 : vector<2x32xf32>
    %cst_60 = arith.constant 1.000000e+00 : f32
    %90 = vector.broadcast %cst_60 : f32 to vector<2x1xf32>
    %91 = arith.subf %90, %56 : vector<2x1xf32>
    %92 = vector.broadcast %91 : vector<2x1xf32> to vector<2x32xf32>
    %93 = arith.mulf %92, %49 : vector<2x32xf32>
    %94 = arith.addf %89, %93 : vector<2x32xf32>
    %95 = vector.broadcast %56 : vector<2x1xf32> to vector<2x32xf32>
    %96 = arith.mulf %95, %87 : vector<2x32xf32>
    %c0_61 = arith.constant 0 : index
    %c1_62 = arith.constant 1 : index
    %c0_63 = arith.constant 0 : index
    %c0_64 = arith.constant 0 : index
    %97 = vector.load %arg6[%c0_61, %c1_62, %c0_63, %c0_64] : memref<1x6x2x32xf32, #tpu.memory_space<vmem>>, vector<1x1x2x32xf32>
    %98 = vector.shape_cast %97 : vector<1x1x2x32xf32> to vector<2x32xf32>
    %99 = vector.shape_cast %96 : vector<2x32xf32> to vector<1x1x2x32xf32>
    tpu.vector_store %arg6[%c0_61, %c1_62, %c0_63, %c0_64], %99 {strides = array<i32>} : memref<1x6x2x32xf32, #tpu.memory_space<vmem>>, vector<1x1x2x32xf32>,
    %c0_65 = arith.constant 0 : index
    %c2_66 = arith.constant 2 : index
    %c0_67 = arith.constant 0 : index
    %c0_68 = arith.constant 0 : index
    %100 = vector.load %arg2[%c0_65, %c2_66, %c0_67, %c0_68] : memref<1x6x2x1xf32, #tpu.memory_space<vmem>>, vector<1x1x2x1xf32>
    %101 = vector.shape_cast %100 : vector<1x1x2x1xf32> to vector<2x1xf32>
    %c0_69 = arith.constant 0 : index
    %c6 = arith.constant 6 : index
    %c0_70 = arith.constant 0 : index
    %c0_71 = arith.constant 0 : index
    %102 = vector.load %arg1[%c0_69, %c6, %c0_70, %c0_71] : memref<1x18x2x32xf32, #tpu.memory_space<vmem>>, vector<1x1x2x32xf32>
    %103 = vector.shape_cast %102 : vector<1x1x2x32xf32> to vector<2x32xf32>
    %c0_72 = arith.constant 0 : index
    %c7 = arith.constant 7 : index
    %c0_73 = arith.constant 0 : index
    %c0_74 = arith.constant 0 : index
    %104 = vector.load %arg1[%c0_72, %c7, %c0_73, %c0_74] : memref<1x18x2x32xf32, #tpu.memory_space<vmem>>, vector<1x1x2x32xf32>
    %105 = vector.shape_cast %104 : vector<1x1x2x32xf32> to vector<2x32xf32>
    %c0_75 = arith.constant 0 : index
    %c8 = arith.constant 8 : index
    %c0_76 = arith.constant 0 : index
    %c0_77 = arith.constant 0 : index
    %106 = vector.load %arg1[%c0_75, %c8, %c0_76, %c0_77] : memref<1x18x2x32xf32, #tpu.memory_space<vmem>>, vector<1x1x2x32xf32>
    %107 = vector.shape_cast %106 : vector<1x1x2x32xf32> to vector<2x32xf32>
    %cst_78 = arith.constant dense<0.000000e+00> : vector<2x32xf32>
    %108 = tpu.matmul %94, %1, %cst_78 {dimension_numbers = #tpu.dot_dimension_numbers<[1], [0], [0], [1], [0, 0, 1, 1], [], []>} : vector<2x32xf32>, vector<32x32xf32>, vector<2x32xf32> -> vector<2x32xf32>
    %109 = arith.addf %103, %108 : vector<2x32xf32>
    %110 = arith.negf %109 : vector<2x32xf32>
    %111 = math.exp %110 : vector<2x32xf32>
    %cst_79 = arith.constant 1.000000e+00 : f32
    %112 = vector.broadcast %cst_79 : f32 to vector<2x32xf32>
    %113 = arith.addf %112, %111 : vector<2x32xf32>
    %114 = arith.divf %112, %113 : vector<2x32xf32>
    %cst_80 = arith.constant dense<0.000000e+00> : vector<2x32xf32>
    %115 = tpu.matmul %94, %3, %cst_80 {dimension_numbers = #tpu.dot_dimension_numbers<[1], [0], [0], [1], [0, 0, 1, 1], [], []>} : vector<2x32xf32>, vector<32x32xf32>, vector<2x32xf32> -> vector<2x32xf32>
    %116 = arith.addf %105, %115 : vector<2x32xf32>
    %117 = arith.negf %116 : vector<2x32xf32>
    %118 = math.exp %117 : vector<2x32xf32>
    %cst_81 = arith.constant 1.000000e+00 : f32
    %119 = vector.broadcast %cst_81 : f32 to vector<2x32xf32>
    %120 = arith.addf %119, %118 : vector<2x32xf32>
    %121 = arith.divf %119, %120 : vector<2x32xf32>
    %cst_82 = arith.constant dense<0.000000e+00> : vector<2x32xf32>
    %122 = tpu.matmul %94, %5, %cst_82 {dimension_numbers = #tpu.dot_dimension_numbers<[1], [0], [0], [1], [0, 0, 1, 1], [], []>} : vector<2x32xf32>, vector<32x32xf32>, vector<2x32xf32> -> vector<2x32xf32>
    %123 = vector.broadcast %7 : vector<1x32xf32> to vector<2x32xf32>
    %124 = arith.addf %122, %123 : vector<2x32xf32>
    %125 = arith.mulf %114, %124 : vector<2x32xf32>
    %126 = arith.addf %107, %125 : vector<2x32xf32>
    %127 = math.tanh %126 : vector<2x32xf32>
    %cst_83 = arith.constant 1.000000e+00 : f32
    %128 = vector.broadcast %cst_83 : f32 to vector<2x32xf32>
    %129 = arith.subf %128, %121 : vector<2x32xf32>
    %130 = arith.mulf %129, %127 : vector<2x32xf32>
    %131 = arith.mulf %121, %94 : vector<2x32xf32>
    %132 = arith.addf %130, %131 : vector<2x32xf32>
    %133 = vector.broadcast %101 : vector<2x1xf32> to vector<2x32xf32>
    %134 = arith.mulf %133, %132 : vector<2x32xf32>
    %cst_84 = arith.constant 1.000000e+00 : f32
    %135 = vector.broadcast %cst_84 : f32 to vector<2x1xf32>
    %136 = arith.subf %135, %101 : vector<2x1xf32>
    %137 = vector.broadcast %136 : vector<2x1xf32> to vector<2x32xf32>
    %138 = arith.mulf %137, %94 : vector<2x32xf32>
    %139 = arith.addf %134, %138 : vector<2x32xf32>
    %140 = vector.broadcast %101 : vector<2x1xf32> to vector<2x32xf32>
    %141 = arith.mulf %140, %132 : vector<2x32xf32>
    %c0_85 = arith.constant 0 : index
    %c2_86 = arith.constant 2 : index
    %c0_87 = arith.constant 0 : index
    %c0_88 = arith.constant 0 : index
    %142 = vector.load %arg6[%c0_85, %c2_86, %c0_87, %c0_88] : memref<1x6x2x32xf32, #tpu.memory_space<vmem>>, vector<1x1x2x32xf32>
    %143 = vector.shape_cast %142 : vector<1x1x2x32xf32> to vector<2x32xf32>
    %144 = vector.shape_cast %141 : vector<2x32xf32> to vector<1x1x2x32xf32>
    tpu.vector_store %arg6[%c0_85, %c2_86, %c0_87, %c0_88], %144 {strides = array<i32>} : memref<1x6x2x32xf32, #tpu.memory_space<vmem>>, vector<1x1x2x32xf32>,
    %c0_89 = arith.constant 0 : index
    %c3_90 = arith.constant 3 : index
    %c0_91 = arith.constant 0 : index
    %c0_92 = arith.constant 0 : index
    %145 = vector.load %arg2[%c0_89, %c3_90, %c0_91, %c0_92] : memref<1x6x2x1xf32, #tpu.memory_space<vmem>>, vector<1x1x2x1xf32>
    %146 = vector.shape_cast %145 : vector<1x1x2x1xf32> to vector<2x1xf32>
    %c0_93 = arith.constant 0 : index
    %c9 = arith.constant 9 : index
    %c0_94 = arith.constant 0 : index
    %c0_95 = arith.constant 0 : index
    %147 = vector.load %arg1[%c0_93, %c9, %c0_94, %c0_95] : memref<1x18x2x32xf32, #tpu.memory_space<vmem>>, vector<1x1x2x32xf32>
    %148 = vector.shape_cast %147 : vector<1x1x2x32xf32> to vector<2x32xf32>
    %c0_96 = arith.constant 0 : index
    %c10 = arith.constant 10 : index
    %c0_97 = arith.constant 0 : index
    %c0_98 = arith.constant 0 : index
    %149 = vector.load %arg1[%c0_96, %c10, %c0_97, %c0_98] : memref<1x18x2x32xf32, #tpu.memory_space<vmem>>, vector<1x1x2x32xf32>
    %150 = vector.shape_cast %149 : vector<1x1x2x32xf32> to vector<2x32xf32>
    %c0_99 = arith.constant 0 : index
    %c11 = arith.constant 11 : index
    %c0_100 = arith.constant 0 : index
    %c0_101 = arith.constant 0 : index
    %151 = vector.load %arg1[%c0_99, %c11, %c0_100, %c0_101] : memref<1x18x2x32xf32, #tpu.memory_space<vmem>>, vector<1x1x2x32xf32>
    %152 = vector.shape_cast %151 : vector<1x1x2x32xf32> to vector<2x32xf32>
    %cst_102 = arith.constant dense<0.000000e+00> : vector<2x32xf32>
    %153 = tpu.matmul %139, %1, %cst_102 {dimension_numbers = #tpu.dot_dimension_numbers<[1], [0], [0], [1], [0, 0, 1, 1], [], []>} : vector<2x32xf32>, vector<32x32xf32>, vector<2x32xf32> -> vector<2x32xf32>
    %154 = arith.addf %148, %153 : vector<2x32xf32>
    %155 = arith.negf %154 : vector<2x32xf32>
    %156 = math.exp %155 : vector<2x32xf32>
    %cst_103 = arith.constant 1.000000e+00 : f32
    %157 = vector.broadcast %cst_103 : f32 to vector<2x32xf32>
    %158 = arith.addf %157, %156 : vector<2x32xf32>
    %159 = arith.divf %157, %158 : vector<2x32xf32>
    %cst_104 = arith.constant dense<0.000000e+00> : vector<2x32xf32>
    %160 = tpu.matmul %139, %3, %cst_104 {dimension_numbers = #tpu.dot_dimension_numbers<[1], [0], [0], [1], [0, 0, 1, 1], [], []>} : vector<2x32xf32>, vector<32x32xf32>, vector<2x32xf32> -> vector<2x32xf32>
    %161 = arith.addf %150, %160 : vector<2x32xf32>
    %162 = arith.negf %161 : vector<2x32xf32>
    %163 = math.exp %162 : vector<2x32xf32>
    %cst_105 = arith.constant 1.000000e+00 : f32
    %164 = vector.broadcast %cst_105 : f32 to vector<2x32xf32>
    %165 = arith.addf %164, %163 : vector<2x32xf32>
    %166 = arith.divf %164, %165 : vector<2x32xf32>
    %cst_106 = arith.constant dense<0.000000e+00> : vector<2x32xf32>
    %167 = tpu.matmul %139, %5, %cst_106 {dimension_numbers = #tpu.dot_dimension_numbers<[1], [0], [0], [1], [0, 0, 1, 1], [], []>} : vector<2x32xf32>, vector<32x32xf32>, vector<2x32xf32> -> vector<2x32xf32>
    %168 = vector.broadcast %7 : vector<1x32xf32> to vector<2x32xf32>
    %169 = arith.addf %167, %168 : vector<2x32xf32>
    %170 = arith.mulf %159, %169 : vector<2x32xf32>
    %171 = arith.addf %152, %170 : vector<2x32xf32>
    %172 = math.tanh %171 : vector<2x32xf32>
    %cst_107 = arith.constant 1.000000e+00 : f32
    %173 = vector.broadcast %cst_107 : f32 to vector<2x32xf32>
    %174 = arith.subf %173, %166 : vector<2x32xf32>
    %175 = arith.mulf %174, %172 : vector<2x32xf32>
    %176 = arith.mulf %166, %139 : vector<2x32xf32>
    %177 = arith.addf %175, %176 : vector<2x32xf32>
    %178 = vector.broadcast %146 : vector<2x1xf32> to vector<2x32xf32>
    %179 = arith.mulf %178, %177 : vector<2x32xf32>
    %cst_108 = arith.constant 1.000000e+00 : f32
    %180 = vector.broadcast %cst_108 : f32 to vector<2x1xf32>
    %181 = arith.subf %180, %146 : vector<2x1xf32>
    %182 = vector.broadcast %181 : vector<2x1xf32> to vector<2x32xf32>
    %183 = arith.mulf %182, %139 : vector<2x32xf32>
    %184 = arith.addf %179, %183 : vector<2x32xf32>
    %185 = vector.broadcast %146 : vector<2x1xf32> to vector<2x32xf32>
    %186 = arith.mulf %185, %177 : vector<2x32xf32>
    %c0_109 = arith.constant 0 : index
    %c3_110 = arith.constant 3 : index
    %c0_111 = arith.constant 0 : index
    %c0_112 = arith.constant 0 : index
    %187 = vector.load %arg6[%c0_109, %c3_110, %c0_111, %c0_112] : memref<1x6x2x32xf32, #tpu.memory_space<vmem>>, vector<1x1x2x32xf32>
    %188 = vector.shape_cast %187 : vector<1x1x2x32xf32> to vector<2x32xf32>
    %189 = vector.shape_cast %186 : vector<2x32xf32> to vector<1x1x2x32xf32>
    tpu.vector_store %arg6[%c0_109, %c3_110, %c0_111, %c0_112], %189 {strides = array<i32>} : memref<1x6x2x32xf32, #tpu.memory_space<vmem>>, vector<1x1x2x32xf32>,
    %c0_113 = arith.constant 0 : index
    %c4_114 = arith.constant 4 : index
    %c0_115 = arith.constant 0 : index
    %c0_116 = arith.constant 0 : index
    %190 = vector.load %arg2[%c0_113, %c4_114, %c0_115, %c0_116] : memref<1x6x2x1xf32, #tpu.memory_space<vmem>>, vector<1x1x2x1xf32>
    %191 = vector.shape_cast %190 : vector<1x1x2x1xf32> to vector<2x1xf32>
    %c0_117 = arith.constant 0 : index
    %c12 = arith.constant 12 : index
    %c0_118 = arith.constant 0 : index
    %c0_119 = arith.constant 0 : index
    %192 = vector.load %arg1[%c0_117, %c12, %c0_118, %c0_119] : memref<1x18x2x32xf32, #tpu.memory_space<vmem>>, vector<1x1x2x32xf32>
    %193 = vector.shape_cast %192 : vector<1x1x2x32xf32> to vector<2x32xf32>
    %c0_120 = arith.constant 0 : index
    %c13 = arith.constant 13 : index
    %c0_121 = arith.constant 0 : index
    %c0_122 = arith.constant 0 : index
    %194 = vector.load %arg1[%c0_120, %c13, %c0_121, %c0_122] : memref<1x18x2x32xf32, #tpu.memory_space<vmem>>, vector<1x1x2x32xf32>
    %195 = vector.shape_cast %194 : vector<1x1x2x32xf32> to vector<2x32xf32>
    %c0_123 = arith.constant 0 : index
    %c14 = arith.constant 14 : index
    %c0_124 = arith.constant 0 : index
    %c0_125 = arith.constant 0 : index
    %196 = vector.load %arg1[%c0_123, %c14, %c0_124, %c0_125] : memref<1x18x2x32xf32, #tpu.memory_space<vmem>>, vector<1x1x2x32xf32>
    %197 = vector.shape_cast %196 : vector<1x1x2x32xf32> to vector<2x32xf32>
    %cst_126 = arith.constant dense<0.000000e+00> : vector<2x32xf32>
    %198 = tpu.matmul %184, %1, %cst_126 {dimension_numbers = #tpu.dot_dimension_numbers<[1], [0], [0], [1], [0, 0, 1, 1], [], []>} : vector<2x32xf32>, vector<32x32xf32>, vector<2x32xf32> -> vector<2x32xf32>
    %199 = arith.addf %193, %198 : vector<2x32xf32>
    %200 = arith.negf %199 : vector<2x32xf32>
    %201 = math.exp %200 : vector<2x32xf32>
    %cst_127 = arith.constant 1.000000e+00 : f32
    %202 = vector.broadcast %cst_127 : f32 to vector<2x32xf32>
    %203 = arith.addf %202, %201 : vector<2x32xf32>
    %204 = arith.divf %202, %203 : vector<2x32xf32>
    %cst_128 = arith.constant dense<0.000000e+00> : vector<2x32xf32>
    %205 = tpu.matmul %184, %3, %cst_128 {dimension_numbers = #tpu.dot_dimension_numbers<[1], [0], [0], [1], [0, 0, 1, 1], [], []>} : vector<2x32xf32>, vector<32x32xf32>, vector<2x32xf32> -> vector<2x32xf32>
    %206 = arith.addf %195, %205 : vector<2x32xf32>
    %207 = arith.negf %206 : vector<2x32xf32>
    %208 = math.exp %207 : vector<2x32xf32>
    %cst_129 = arith.constant 1.000000e+00 : f32
    %209 = vector.broadcast %cst_129 : f32 to vector<2x32xf32>
    %210 = arith.addf %209, %208 : vector<2x32xf32>
    %211 = arith.divf %209, %210 : vector<2x32xf32>
    %cst_130 = arith.constant dense<0.000000e+00> : vector<2x32xf32>
    %212 = tpu.matmul %184, %5, %cst_130 {dimension_numbers = #tpu.dot_dimension_numbers<[1], [0], [0], [1], [0, 0, 1, 1], [], []>} : vector<2x32xf32>, vector<32x32xf32>, vector<2x32xf32> -> vector<2x32xf32>
    %213 = vector.broadcast %7 : vector<1x32xf32> to vector<2x32xf32>
    %214 = arith.addf %212, %213 : vector<2x32xf32>
    %215 = arith.mulf %204, %214 : vector<2x32xf32>
    %216 = arith.addf %197, %215 : vector<2x32xf32>
    %217 = math.tanh %216 : vector<2x32xf32>
    %cst_131 = arith.constant 1.000000e+00 : f32
    %218 = vector.broadcast %cst_131 : f32 to vector<2x32xf32>
    %219 = arith.subf %218, %211 : vector<2x32xf32>
    %220 = arith.mulf %219, %217 : vector<2x32xf32>
    %221 = arith.mulf %211, %184 : vector<2x32xf32>
    %222 = arith.addf %220, %221 : vector<2x32xf32>
    %223 = vector.broadcast %191 : vector<2x1xf32> to vector<2x32xf32>
    %224 = arith.mulf %223, %222 : vector<2x32xf32>
    %cst_132 = arith.constant 1.000000e+00 : f32
    %225 = vector.broadcast %cst_132 : f32 to vector<2x1xf32>
    %226 = arith.subf %225, %191 : vector<2x1xf32>
    %227 = vector.broadcast %226 : vector<2x1xf32> to vector<2x32xf32>
    %228 = arith.mulf %227, %184 : vector<2x32xf32>
    %229 = arith.addf %224, %228 : vector<2x32xf32>
    %230 = vector.broadcast %191 : vector<2x1xf32> to vector<2x32xf32>
    %231 = arith.mulf %230, %222 : vector<2x32xf32>
    %c0_133 = arith.constant 0 : index
    %c4_134 = arith.constant 4 : index
    %c0_135 = arith.constant 0 : index
    %c0_136 = arith.constant 0 : index
    %232 = vector.load %arg6[%c0_133, %c4_134, %c0_135, %c0_136] : memref<1x6x2x32xf32, #tpu.memory_space<vmem>>, vector<1x1x2x32xf32>
    %233 = vector.shape_cast %232 : vector<1x1x2x32xf32> to vector<2x32xf32>
    %234 = vector.shape_cast %231 : vector<2x32xf32> to vector<1x1x2x32xf32>
    tpu.vector_store %arg6[%c0_133, %c4_134, %c0_135, %c0_136], %234 {strides = array<i32>} : memref<1x6x2x32xf32, #tpu.memory_space<vmem>>, vector<1x1x2x32xf32>,
    %c0_137 = arith.constant 0 : index
    %c5_138 = arith.constant 5 : index
    %c0_139 = arith.constant 0 : index
    %c0_140 = arith.constant 0 : index
    %235 = vector.load %arg2[%c0_137, %c5_138, %c0_139, %c0_140] : memref<1x6x2x1xf32, #tpu.memory_space<vmem>>, vector<1x1x2x1xf32>
    %236 = vector.shape_cast %235 : vector<1x1x2x1xf32> to vector<2x1xf32>
    %c0_141 = arith.constant 0 : index
    %c15 = arith.constant 15 : index
    %c0_142 = arith.constant 0 : index
    %c0_143 = arith.constant 0 : index
    %237 = vector.load %arg1[%c0_141, %c15, %c0_142, %c0_143] : memref<1x18x2x32xf32, #tpu.memory_space<vmem>>, vector<1x1x2x32xf32>
    %238 = vector.shape_cast %237 : vector<1x1x2x32xf32> to vector<2x32xf32>
    %c0_144 = arith.constant 0 : index
    %c16 = arith.constant 16 : index
    %c0_145 = arith.constant 0 : index
    %c0_146 = arith.constant 0 : index
    %239 = vector.load %arg1[%c0_144, %c16, %c0_145, %c0_146] : memref<1x18x2x32xf32, #tpu.memory_space<vmem>>, vector<1x1x2x32xf32>
    %240 = vector.shape_cast %239 : vector<1x1x2x32xf32> to vector<2x32xf32>
    %c0_147 = arith.constant 0 : index
    %c17 = arith.constant 17 : index
    %c0_148 = arith.constant 0 : index
    %c0_149 = arith.constant 0 : index
    %241 = vector.load %arg1[%c0_147, %c17, %c0_148, %c0_149] : memref<1x18x2x32xf32, #tpu.memory_space<vmem>>, vector<1x1x2x32xf32>
    %242 = vector.shape_cast %241 : vector<1x1x2x32xf32> to vector<2x32xf32>
    %cst_150 = arith.constant dense<0.000000e+00> : vector<2x32xf32>
    %243 = tpu.matmul %229, %1, %cst_150 {dimension_numbers = #tpu.dot_dimension_numbers<[1], [0], [0], [1], [0, 0, 1, 1], [], []>} : vector<2x32xf32>, vector<32x32xf32>, vector<2x32xf32> -> vector<2x32xf32>
    %244 = arith.addf %238, %243 : vector<2x32xf32>
    %245 = arith.negf %244 : vector<2x32xf32>
    %246 = math.exp %245 : vector<2x32xf32>
    %cst_151 = arith.constant 1.000000e+00 : f32
    %247 = vector.broadcast %cst_151 : f32 to vector<2x32xf32>
    %248 = arith.addf %247, %246 : vector<2x32xf32>
    %249 = arith.divf %247, %248 : vector<2x32xf32>
    %cst_152 = arith.constant dense<0.000000e+00> : vector<2x32xf32>
    %250 = tpu.matmul %229, %3, %cst_152 {dimension_numbers = #tpu.dot_dimension_numbers<[1], [0], [0], [1], [0, 0, 1, 1], [], []>} : vector<2x32xf32>, vector<32x32xf32>, vector<2x32xf32> -> vector<2x32xf32>
    %251 = arith.addf %240, %250 : vector<2x32xf32>
    %252 = arith.negf %251 : vector<2x32xf32>
    %253 = math.exp %252 : vector<2x32xf32>
    %cst_153 = arith.constant 1.000000e+00 : f32
    %254 = vector.broadcast %cst_153 : f32 to vector<2x32xf32>
    %255 = arith.addf %254, %253 : vector<2x32xf32>
    %256 = arith.divf %254, %255 : vector<2x32xf32>
    %cst_154 = arith.constant dense<0.000000e+00> : vector<2x32xf32>
    %257 = tpu.matmul %229, %5, %cst_154 {dimension_numbers = #tpu.dot_dimension_numbers<[1], [0], [0], [1], [0, 0, 1, 1], [], []>} : vector<2x32xf32>, vector<32x32xf32>, vector<2x32xf32> -> vector<2x32xf32>
    %258 = vector.broadcast %7 : vector<1x32xf32> to vector<2x32xf32>
    %259 = arith.addf %257, %258 : vector<2x32xf32>
    %260 = arith.mulf %249, %259 : vector<2x32xf32>
    %261 = arith.addf %242, %260 : vector<2x32xf32>
    %262 = math.tanh %261 : vector<2x32xf32>
    %cst_155 = arith.constant 1.000000e+00 : f32
    %263 = vector.broadcast %cst_155 : f32 to vector<2x32xf32>
    %264 = arith.subf %263, %256 : vector<2x32xf32>
    %265 = arith.mulf %264, %262 : vector<2x32xf32>
    %266 = arith.mulf %256, %229 : vector<2x32xf32>
    %267 = arith.addf %265, %266 : vector<2x32xf32>
    %268 = vector.broadcast %236 : vector<2x1xf32> to vector<2x32xf32>
    %269 = arith.mulf %268, %267 : vector<2x32xf32>
    %cst_156 = arith.constant 1.000000e+00 : f32
    %270 = vector.broadcast %cst_156 : f32 to vector<2x1xf32>
    %271 = arith.subf %270, %236 : vector<2x1xf32>
    %272 = vector.broadcast %271 : vector<2x1xf32> to vector<2x32xf32>
    %273 = arith.mulf %272, %229 : vector<2x32xf32>
    %274 = arith.addf %269, %273 : vector<2x32xf32>
    %275 = vector.broadcast %236 : vector<2x1xf32> to vector<2x32xf32>
    %276 = arith.mulf %275, %267 : vector<2x32xf32>
    %c0_157 = arith.constant 0 : index
    %c5_158 = arith.constant 5 : index
    %c0_159 = arith.constant 0 : index
    %c0_160 = arith.constant 0 : index
    %277 = vector.load %arg6[%c0_157, %c5_158, %c0_159, %c0_160] : memref<1x6x2x32xf32, #tpu.memory_space<vmem>>, vector<1x1x2x32xf32>
    %278 = vector.shape_cast %277 : vector<1x1x2x32xf32> to vector<2x32xf32>
    %279 = vector.shape_cast %276 : vector<2x32xf32> to vector<1x1x2x32xf32>
    tpu.vector_store %arg6[%c0_157, %c5_158, %c0_159, %c0_160], %279 {strides = array<i32>} : memref<1x6x2x32xf32, #tpu.memory_space<vmem>>, vector<1x1x2x32xf32>,
    %c0_161 = arith.constant 0 : index
    %c0_162 = arith.constant 0 : index
    %c0_163 = arith.constant 0 : index
    %280 = vector.load %arg7[%c0_161, %c0_162, %c0_163] : memref<1x2x32xf32, #tpu.memory_space<vmem>>, vector<1x2x32xf32>
    %281 = vector.shape_cast %280 : vector<1x2x32xf32> to vector<2x32xf32>
    %282 = vector.shape_cast %274 : vector<2x32xf32> to vector<1x2x32xf32>
    tpu.vector_store %arg7[%c0_161, %c0_162, %c0_163], %282 {strides = array<i32>} : memref<1x2x32xf32, #tpu.memory_space<vmem>>, vector<1x2x32xf32>,
    return
  }
  func.func @transform_0(%arg0: i32) -> (i32, i32, i32, i32) {
    %c0_i32 = arith.constant 0 : i32
    %c0_i32_0 = arith.constant 0 : i32
    %c0_i32_1 = arith.constant 0 : i32
    %c0_i32_2 = arith.constant 0 : i32
    return %arg0, %c0_i32, %c0_i32_0, %c0_i32_1 : i32, i32, i32, i32
  }
  func.func @transform_1(%arg0: i32) -> (i32, i32, i32, i32) {
    %c0_i32 = arith.constant 0 : i32
    %c0_i32_0 = arith.constant 0 : i32
    %c0_i32_1 = arith.constant 0 : i32
    %c0_i32_2 = arith.constant 0 : i32
    return %arg0, %c0_i32, %c0_i32_0, %c0_i32_1 : i32, i32, i32, i32
  }
  func.func @transform_2(%arg0: i32) -> (i32, i32, i32) {
    %c0_i32 = arith.constant 0 : i32
    %c0_i32_0 = arith.constant 0 : i32
    %c0_i32_1 = arith.constant 0 : i32
    return %arg0, %c0_i32, %c0_i32_0 : i32, i32, i32
  }
  func.func @transform_3(%arg0: i32) -> (i32, i32, i32, i32) {
    %c0_i32 = arith.constant 0 : i32
    %c0_i32_0 = arith.constant 0 : i32
    %c0_i32_1 = arith.constant 0 : i32
    %c0_i32_2 = arith.constant 0 : i32
    return %arg0, %c0_i32, %c0_i32_0, %c0_i32_1 : i32, i32, i32, i32
  }
  func.func @transform_4(%arg0: i32) -> (i32, i32, i32) {
    %c0_i32 = arith.constant 0 : i32
    %c0_i32_0 = arith.constant 0 : i32
    %c0_i32_1 = arith.constant 0 : i32
    return %arg0, %c0_i32, %c0_i32_0 : i32, i32, i32
  }
  func.func @transform_5(%arg0: i32) -> (i32, i32, i32, i32) {
    %c0_i32 = arith.constant 0 : i32
    %c0_i32_0 = arith.constant 0 : i32
    %c0_i32_1 = arith.constant 0 : i32
    %c0_i32_2 = arith.constant 0 : i32
    return %arg0, %c0_i32, %c0_i32_0, %c0_i32_1 : i32, i32, i32, i32
  }
  func.func @transform_6(%arg0: i32) -> (i32, i32, i32) {
    %c0_i32 = arith.constant 0 : i32
    %c0_i32_0 = arith.constant 0 : i32
    %c0_i32_1 = arith.constant 0 : i32
    return %arg0, %c0_i32, %c0_i32_0 : i32, i32, i32
  }
}

module attributes {stable_mosaic.version = 11 : i64} {
  func.func @_gru_dir_kernel(%arg0: i32, %arg1: memref<1x18x2x32xf32, #tpu.memory_space<vmem>>, %arg2: memref<1x6x2x1xf32, #tpu.memory_space<vmem>>, %arg3: memref<1x2x32xf32, #tpu.memory_space<vmem>>, %arg4: memref<1x3x32x32xf32, #tpu.memory_space<vmem>>, %arg5: memref<1x1x32xf32, #tpu.memory_space<vmem>>, %arg6: memref<1x6x2x32xf32, #tpu.memory_space<vmem>>, %arg7: memref<1x2x32xf32, #tpu.memory_space<vmem>>) attributes {dimension_semantics = [#tpu.dimension_semantics<parallel>], iteration_bounds = array<i64: 2>, scalar_prefetch = 0 : i64, scratch_operands = 0 : i64, tpu.core_type = #tpu.core_type<tc>, window_params = [{transform_indices = @transform_0, window_bounds = array<i64: 1, 18, 2, 32>}, {transform_indices = @transform_1, window_bounds = array<i64: 1, 6, 2, 1>}, {transform_indices = @transform_2, window_bounds = array<i64: 1, 2, 32>}, {transform_indices = @transform_3, window_bounds = array<i64: 1, 3, 32, 32>}, {transform_indices = @transform_4, window_bounds = array<i64: 1, 1, 32>}, {transform_indices = @transform_5, window_bounds = array<i64: 1, 6, 2, 32>}, {transform_indices = @transform_6, window_bounds = array<i64: 1, 2, 32>}]} {
    %c0 = arith.constant 0 : index
    %c0_0 = arith.constant 0 : index
    %c0_1 = arith.constant 0 : index
    %c0_2 = arith.constant 0 : index
    %0 = vector.load %arg4[%c0, %c0_0, %c0_1, %c0_2] : memref<1x3x32x32xf32, #tpu.memory_space<vmem>>, vector<1x1x32x32xf32>
    %1 = vector.shape_cast %0 : vector<1x1x32x32xf32> to vector<32x32xf32>
    %c0_3 = arith.constant 0 : index
    %c1 = arith.constant 1 : index
    %c0_4 = arith.constant 0 : index
    %c0_5 = arith.constant 0 : index
    %2 = vector.load %arg4[%c0_3, %c1, %c0_4, %c0_5] : memref<1x3x32x32xf32, #tpu.memory_space<vmem>>, vector<1x1x32x32xf32>
    %3 = vector.shape_cast %2 : vector<1x1x32x32xf32> to vector<32x32xf32>
    %c0_6 = arith.constant 0 : index
    %c2 = arith.constant 2 : index
    %c0_7 = arith.constant 0 : index
    %c0_8 = arith.constant 0 : index
    %4 = vector.load %arg4[%c0_6, %c2, %c0_7, %c0_8] : memref<1x3x32x32xf32, #tpu.memory_space<vmem>>, vector<1x1x32x32xf32>
    %5 = vector.shape_cast %4 : vector<1x1x32x32xf32> to vector<32x32xf32>
    %c0_9 = arith.constant 0 : index
    %c0_10 = arith.constant 0 : index
    %c0_11 = arith.constant 0 : index
    %6 = vector.load %arg5[%c0_9, %c0_10, %c0_11] : memref<1x1x32xf32, #tpu.memory_space<vmem>>, vector<1x1x32xf32>
    %7 = vector.shape_cast %6 : vector<1x1x32xf32> to vector<1x32xf32>
    %c0_12 = arith.constant 0 : index
    %c0_13 = arith.constant 0 : index
    %c0_14 = arith.constant 0 : index
    %8 = vector.load %arg3[%c0_12, %c0_13, %c0_14] : memref<1x2x32xf32, #tpu.memory_space<vmem>>, vector<1x2x32xf32>
    %9 = vector.shape_cast %8 : vector<1x2x32xf32> to vector<2x32xf32>
    %c0_15 = arith.constant 0 : index
    %c0_16 = arith.constant 0 : index
    %c0_17 = arith.constant 0 : index
    %c0_18 = arith.constant 0 : index
    %10 = vector.load %arg2[%c0_15, %c0_16, %c0_17, %c0_18] : memref<1x6x2x1xf32, #tpu.memory_space<vmem>>, vector<1x1x2x1xf32>
    %11 = vector.shape_cast %10 : vector<1x1x2x1xf32> to vector<2x1xf32>
    %c0_19 = arith.constant 0 : index
    %c0_20 = arith.constant 0 : index
    %c0_21 = arith.constant 0 : index
    %c0_22 = arith.constant 0 : index
    %12 = vector.load %arg1[%c0_19, %c0_20, %c0_21, %c0_22] : memref<1x18x2x32xf32, #tpu.memory_space<vmem>>, vector<1x1x2x32xf32>
    %13 = vector.shape_cast %12 : vector<1x1x2x32xf32> to vector<2x32xf32>
    %c0_23 = arith.constant 0 : index
    %c1_24 = arith.constant 1 : index
    %c0_25 = arith.constant 0 : index
    %c0_26 = arith.constant 0 : index
    %14 = vector.load %arg1[%c0_23, %c1_24, %c0_25, %c0_26] : memref<1x18x2x32xf32, #tpu.memory_space<vmem>>, vector<1x1x2x32xf32>
    %15 = vector.shape_cast %14 : vector<1x1x2x32xf32> to vector<2x32xf32>
    %c0_27 = arith.constant 0 : index
    %c2_28 = arith.constant 2 : index
    %c0_29 = arith.constant 0 : index
    %c0_30 = arith.constant 0 : index
    %16 = vector.load %arg1[%c0_27, %c2_28, %c0_29, %c0_30] : memref<1x18x2x32xf32, #tpu.memory_space<vmem>>, vector<1x1x2x32xf32>
    %17 = vector.shape_cast %16 : vector<1x1x2x32xf32> to vector<2x32xf32>
    %cst = arith.constant dense<0.000000e+00> : vector<2x32xf32>
    %18 = tpu.matmul %9, %1, %cst {dimension_numbers = #tpu.dot_dimension_numbers<[1], [0], [0], [1], [0, 0, 1, 1], [], []>} : vector<2x32xf32>, vector<32x32xf32>, vector<2x32xf32> -> vector<2x32xf32>
    %19 = arith.addf %13, %18 : vector<2x32xf32>
    %20 = arith.negf %19 : vector<2x32xf32>
    %21 = math.exp %20 : vector<2x32xf32>
    %cst_31 = arith.constant 1.000000e+00 : f32
    %22 = vector.broadcast %cst_31 : f32 to vector<2x32xf32>
    %23 = arith.addf %22, %21 : vector<2x32xf32>
    %24 = arith.divf %22, %23 : vector<2x32xf32>
    %cst_32 = arith.constant dense<0.000000e+00> : vector<2x32xf32>
    %25 = tpu.matmul %9, %3, %cst_32 {dimension_numbers = #tpu.dot_dimension_numbers<[1], [0], [0], [1], [0, 0, 1, 1], [], []>} : vector<2x32xf32>, vector<32x32xf32>, vector<2x32xf32> -> vector<2x32xf32>
    %26 = arith.addf %15, %25 : vector<2x32xf32>
    %27 = arith.negf %26 : vector<2x32xf32>
    %28 = math.exp %27 : vector<2x32xf32>
    %cst_33 = arith.constant 1.000000e+00 : f32
    %29 = vector.broadcast %cst_33 : f32 to vector<2x32xf32>
    %30 = arith.addf %29, %28 : vector<2x32xf32>
    %31 = arith.divf %29, %30 : vector<2x32xf32>
    %cst_34 = arith.constant dense<0.000000e+00> : vector<2x32xf32>
    %32 = tpu.matmul %9, %5, %cst_34 {dimension_numbers = #tpu.dot_dimension_numbers<[1], [0], [0], [1], [0, 0, 1, 1], [], []>} : vector<2x32xf32>, vector<32x32xf32>, vector<2x32xf32> -> vector<2x32xf32>
    %33 = vector.broadcast %7 : vector<1x32xf32> to vector<2x32xf32>
    %34 = arith.addf %32, %33 : vector<2x32xf32>
    %35 = arith.mulf %24, %34 : vector<2x32xf32>
    %36 = arith.addf %17, %35 : vector<2x32xf32>
    %37 = math.tanh %36 : vector<2x32xf32>
    %cst_35 = arith.constant 1.000000e+00 : f32
    %38 = vector.broadcast %cst_35 : f32 to vector<2x32xf32>
    %39 = arith.subf %38, %31 : vector<2x32xf32>
    %40 = arith.mulf %39, %37 : vector<2x32xf32>
    %41 = arith.mulf %31, %9 : vector<2x32xf32>
    %42 = arith.addf %40, %41 : vector<2x32xf32>
    %43 = vector.broadcast %11 : vector<2x1xf32> to vector<2x32xf32>
    %44 = arith.mulf %43, %42 : vector<2x32xf32>
    %cst_36 = arith.constant 1.000000e+00 : f32
    %45 = vector.broadcast %cst_36 : f32 to vector<2x1xf32>
    %46 = arith.subf %45, %11 : vector<2x1xf32>
    %47 = vector.broadcast %46 : vector<2x1xf32> to vector<2x32xf32>
    %48 = arith.mulf %47, %9 : vector<2x32xf32>
    %49 = arith.addf %44, %48 : vector<2x32xf32>
    %50 = vector.broadcast %11 : vector<2x1xf32> to vector<2x32xf32>
    %51 = arith.mulf %50, %42 : vector<2x32xf32>
    %c0_37 = arith.constant 0 : index
    %c0_38 = arith.constant 0 : index
    %c0_39 = arith.constant 0 : index
    %c0_40 = arith.constant 0 : index
    %52 = vector.load %arg6[%c0_37, %c0_38, %c0_39, %c0_40] : memref<1x6x2x32xf32, #tpu.memory_space<vmem>>, vector<1x1x2x32xf32>
    %53 = vector.shape_cast %52 : vector<1x1x2x32xf32> to vector<2x32xf32>
    %54 = vector.shape_cast %51 : vector<2x32xf32> to vector<1x1x2x32xf32>
    tpu.vector_store %arg6[%c0_37, %c0_38, %c0_39, %c0_40], %54 {strides = array<i32>} : memref<1x6x2x32xf32, #tpu.memory_space<vmem>>, vector<1x1x2x32xf32>,
    %c0_41 = arith.constant 0 : index
    %c1_42 = arith.constant 1 : index
    %c0_43 = arith.constant 0 : index
    %c0_44 = arith.constant 0 : index
    %55 = vector.load %arg2[%c0_41, %c1_42, %c0_43, %c0_44] : memref<1x6x2x1xf32, #tpu.memory_space<vmem>>, vector<1x1x2x1xf32>
    %56 = vector.shape_cast %55 : vector<1x1x2x1xf32> to vector<2x1xf32>
    %c0_45 = arith.constant 0 : index
    %c3 = arith.constant 3 : index
    %c0_46 = arith.constant 0 : index
    %c0_47 = arith.constant 0 : index
    %57 = vector.load %arg1[%c0_45, %c3, %c0_46, %c0_47] : memref<1x18x2x32xf32, #tpu.memory_space<vmem>>, vector<1x1x2x32xf32>
    %58 = vector.shape_cast %57 : vector<1x1x2x32xf32> to vector<2x32xf32>
    %c0_48 = arith.constant 0 : index
    %c4 = arith.constant 4 : index
    %c0_49 = arith.constant 0 : index
    %c0_50 = arith.constant 0 : index
    %59 = vector.load %arg1[%c0_48, %c4, %c0_49, %c0_50] : memref<1x18x2x32xf32, #tpu.memory_space<vmem>>, vector<1x1x2x32xf32>
    %60 = vector.shape_cast %59 : vector<1x1x2x32xf32> to vector<2x32xf32>
    %c0_51 = arith.constant 0 : index
    %c5 = arith.constant 5 : index
    %c0_52 = arith.constant 0 : index
    %c0_53 = arith.constant 0 : index
    %61 = vector.load %arg1[%c0_51, %c5, %c0_52, %c0_53] : memref<1x18x2x32xf32, #tpu.memory_space<vmem>>, vector<1x1x2x32xf32>
    %62 = vector.shape_cast %61 : vector<1x1x2x32xf32> to vector<2x32xf32>
    %cst_54 = arith.constant dense<0.000000e+00> : vector<2x32xf32>
    %63 = tpu.matmul %49, %1, %cst_54 {dimension_numbers = #tpu.dot_dimension_numbers<[1], [0], [0], [1], [0, 0, 1, 1], [], []>} : vector<2x32xf32>, vector<32x32xf32>, vector<2x32xf32> -> vector<2x32xf32>
    %64 = arith.addf %58, %63 : vector<2x32xf32>
    %65 = arith.negf %64 : vector<2x32xf32>
    %66 = math.exp %65 : vector<2x32xf32>
    %cst_55 = arith.constant 1.000000e+00 : f32
    %67 = vector.broadcast %cst_55 : f32 to vector<2x32xf32>
    %68 = arith.addf %67, %66 : vector<2x32xf32>
    %69 = arith.divf %67, %68 : vector<2x32xf32>
    %cst_56 = arith.constant dense<0.000000e+00> : vector<2x32xf32>
    %70 = tpu.matmul %49, %3, %cst_56 {dimension_numbers = #tpu.dot_dimension_numbers<[1], [0], [0], [1], [0, 0, 1, 1], [], []>} : vector<2x32xf32>, vector<32x32xf32>, vector<2x32xf32> -> vector<2x32xf32>
    %71 = arith.addf %60, %70 : vector<2x32xf32>
    %72 = arith.negf %71 : vector<2x32xf32>
    %73 = math.exp %72 : vector<2x32xf32>
    %cst_57 = arith.constant 1.000000e+00 : f32
    %74 = vector.broadcast %cst_57 : f32 to vector<2x32xf32>
    %75 = arith.addf %74, %73 : vector<2x32xf32>
    %76 = arith.divf %74, %75 : vector<2x32xf32>
    %cst_58 = arith.constant dense<0.000000e+00> : vector<2x32xf32>
    %77 = tpu.matmul %49, %5, %cst_58 {dimension_numbers = #tpu.dot_dimension_numbers<[1], [0], [0], [1], [0, 0, 1, 1], [], []>} : vector<2x32xf32>, vector<32x32xf32>, vector<2x32xf32> -> vector<2x32xf32>
    %78 = vector.broadcast %7 : vector<1x32xf32> to vector<2x32xf32>
    %79 = arith.addf %77, %78 : vector<2x32xf32>
    %80 = arith.mulf %69, %79 : vector<2x32xf32>
    %81 = arith.addf %62, %80 : vector<2x32xf32>
    %82 = math.tanh %81 : vector<2x32xf32>
    %cst_59 = arith.constant 1.000000e+00 : f32
    %83 = vector.broadcast %cst_59 : f32 to vector<2x32xf32>
    %84 = arith.subf %83, %76 : vector<2x32xf32>
    %85 = arith.mulf %84, %82 : vector<2x32xf32>
    %86 = arith.mulf %76, %49 : vector<2x32xf32>
    %87 = arith.addf %85, %86 : vector<2x32xf32>
    %88 = vector.broadcast %56 : vector<2x1xf32> to vector<2x32xf32>
    %89 = arith.mulf %88, %87 : vector<2x32xf32>
    %cst_60 = arith.constant 1.000000e+00 : f32
    %90 = vector.broadcast %cst_60 : f32 to vector<2x1xf32>
    %91 = arith.subf %90, %56 : vector<2x1xf32>
    %92 = vector.broadcast %91 : vector<2x1xf32> to vector<2x32xf32>
    %93 = arith.mulf %92, %49 : vector<2x32xf32>
    %94 = arith.addf %89, %93 : vector<2x32xf32>
    %95 = vector.broadcast %56 : vector<2x1xf32> to vector<2x32xf32>
    %96 = arith.mulf %95, %87 : vector<2x32xf32>
    %c0_61 = arith.constant 0 : index
    %c1_62 = arith.constant 1 : index
    %c0_63 = arith.constant 0 : index
    %c0_64 = arith.constant 0 : index
    %97 = vector.load %arg6[%c0_61, %c1_62, %c0_63, %c0_64] : memref<1x6x2x32xf32, #tpu.memory_space<vmem>>, vector<1x1x2x32xf32>
    %98 = vector.shape_cast %97 : vector<1x1x2x32xf32> to vector<2x32xf32>
    %99 = vector.shape_cast %96 : vector<2x32xf32> to vector<1x1x2x32xf32>
    tpu.vector_store %arg6[%c0_61, %c1_62, %c0_63, %c0_64], %99 {strides = array<i32>} : memref<1x6x2x32xf32, #tpu.memory_space<vmem>>, vector<1x1x2x32xf32>,
    %c0_65 = arith.constant 0 : index
    %c2_66 = arith.constant 2 : index
    %c0_67 = arith.constant 0 : index
    %c0_68 = arith.constant 0 : index
    %100 = vector.load %arg2[%c0_65, %c2_66, %c0_67, %c0_68] : memref<1x6x2x1xf32, #tpu.memory_space<vmem>>, vector<1x1x2x1xf32>
    %101 = vector.shape_cast %100 : vector<1x1x2x1xf32> to vector<2x1xf32>
    %c0_69 = arith.constant 0 : index
    %c6 = arith.constant 6 : index
    %c0_70 = arith.constant 0 : index
    %c0_71 = arith.constant 0 : index
    %102 = vector.load %arg1[%c0_69, %c6, %c0_70, %c0_71] : memref<1x18x2x32xf32, #tpu.memory_space<vmem>>, vector<1x1x2x32xf32>
    %103 = vector.shape_cast %102 : vector<1x1x2x32xf32> to vector<2x32xf32>
    %c0_72 = arith.constant 0 : index
    %c7 = arith.constant 7 : index
    %c0_73 = arith.constant 0 : index
    %c0_74 = arith.constant 0 : index
    %104 = vector.load %arg1[%c0_72, %c7, %c0_73, %c0_74] : memref<1x18x2x32xf32, #tpu.memory_space<vmem>>, vector<1x1x2x32xf32>
    %105 = vector.shape_cast %104 : vector<1x1x2x32xf32> to vector<2x32xf32>
    %c0_75 = arith.constant 0 : index
    %c8 = arith.constant 8 : index
    %c0_76 = arith.constant 0 : index
    %c0_77 = arith.constant 0 : index
    %106 = vector.load %arg1[%c0_75, %c8, %c0_76, %c0_77] : memref<1x18x2x32xf32, #tpu.memory_space<vmem>>, vector<1x1x2x32xf32>
    %107 = vector.shape_cast %106 : vector<1x1x2x32xf32> to vector<2x32xf32>
    %cst_78 = arith.constant dense<0.000000e+00> : vector<2x32xf32>
    %108 = tpu.matmul %94, %1, %cst_78 {dimension_numbers = #tpu.dot_dimension_numbers<[1], [0], [0], [1], [0, 0, 1, 1], [], []>} : vector<2x32xf32>, vector<32x32xf32>, vector<2x32xf32> -> vector<2x32xf32>
    %109 = arith.addf %103, %108 : vector<2x32xf32>
    %110 = arith.negf %109 : vector<2x32xf32>
    %111 = math.exp %110 : vector<2x32xf32>
    %cst_79 = arith.constant 1.000000e+00 : f32
    %112 = vector.broadcast %cst_79 : f32 to vector<2x32xf32>
    %113 = arith.addf %112, %111 : vector<2x32xf32>
    %114 = arith.divf %112, %113 : vector<2x32xf32>
    %cst_80 = arith.constant dense<0.000000e+00> : vector<2x32xf32>
    %115 = tpu.matmul %94, %3, %cst_80 {dimension_numbers = #tpu.dot_dimension_numbers<[1], [0], [0], [1], [0, 0, 1, 1], [], []>} : vector<2x32xf32>, vector<32x32xf32>, vector<2x32xf32> -> vector<2x32xf32>
    %116 = arith.addf %105, %115 : vector<2x32xf32>
    %117 = arith.negf %116 : vector<2x32xf32>
    %118 = math.exp %117 : vector<2x32xf32>
    %cst_81 = arith.constant 1.000000e+00 : f32
    %119 = vector.broadcast %cst_81 : f32 to vector<2x32xf32>
    %120 = arith.addf %119, %118 : vector<2x32xf32>
    %121 = arith.divf %119, %120 : vector<2x32xf32>
    %cst_82 = arith.constant dense<0.000000e+00> : vector<2x32xf32>
    %122 = tpu.matmul %94, %5, %cst_82 {dimension_numbers = #tpu.dot_dimension_numbers<[1], [0], [0], [1], [0, 0, 1, 1], [], []>} : vector<2x32xf32>, vector<32x32xf32>, vector<2x32xf32> -> vector<2x32xf32>
    %123 = vector.broadcast %7 : vector<1x32xf32> to vector<2x32xf32>
    %124 = arith.addf %122, %123 : vector<2x32xf32>
    %125 = arith.mulf %114, %124 : vector<2x32xf32>
    %126 = arith.addf %107, %125 : vector<2x32xf32>
    %127 = math.tanh %126 : vector<2x32xf32>
    %cst_83 = arith.constant 1.000000e+00 : f32
    %128 = vector.broadcast %cst_83 : f32 to vector<2x32xf32>
    %129 = arith.subf %128, %121 : vector<2x32xf32>
    %130 = arith.mulf %129, %127 : vector<2x32xf32>
    %131 = arith.mulf %121, %94 : vector<2x32xf32>
    %132 = arith.addf %130, %131 : vector<2x32xf32>
    %133 = vector.broadcast %101 : vector<2x1xf32> to vector<2x32xf32>
    %134 = arith.mulf %133, %132 : vector<2x32xf32>
    %cst_84 = arith.constant 1.000000e+00 : f32
    %135 = vector.broadcast %cst_84 : f32 to vector<2x1xf32>
    %136 = arith.subf %135, %101 : vector<2x1xf32>
    %137 = vector.broadcast %136 : vector<2x1xf32> to vector<2x32xf32>
    %138 = arith.mulf %137, %94 : vector<2x32xf32>
    %139 = arith.addf %134, %138 : vector<2x32xf32>
    %140 = vector.broadcast %101 : vector<2x1xf32> to vector<2x32xf32>
    %141 = arith.mulf %140, %132 : vector<2x32xf32>
    %c0_85 = arith.constant 0 : index
    %c2_86 = arith.constant 2 : index
    %c0_87 = arith.constant 0 : index
    %c0_88 = arith.constant 0 : index
    %142 = vector.load %arg6[%c0_85, %c2_86, %c0_87, %c0_88] : memref<1x6x2x32xf32, #tpu.memory_space<vmem>>, vector<1x1x2x32xf32>
    %143 = vector.shape_cast %142 : vector<1x1x2x32xf32> to vector<2x32xf32>
    %144 = vector.shape_cast %141 : vector<2x32xf32> to vector<1x1x2x32xf32>
    tpu.vector_store %arg6[%c0_85, %c2_86, %c0_87, %c0_88], %144 {strides = array<i32>} : memref<1x6x2x32xf32, #tpu.memory_space<vmem>>, vector<1x1x2x32xf32>,
    %c0_89 = arith.constant 0 : index
    %c3_90 = arith.constant 3 : index
    %c0_91 = arith.constant 0 : index
    %c0_92 = arith.constant 0 : index
    %145 = vector.load %arg2[%c0_89, %c3_90, %c0_91, %c0_92] : memref<1x6x2x1xf32, #tpu.memory_space<vmem>>, vector<1x1x2x1xf32>
    %146 = vector.shape_cast %145 : vector<1x1x2x1xf32> to vector<2x1xf32>
    %c0_93 = arith.constant 0 : index
    %c9 = arith.constant 9 : index
    %c0_94 = arith.constant 0 : index
    %c0_95 = arith.constant 0 : index
    %147 = vector.load %arg1[%c0_93, %c9, %c0_94, %c0_95] : memref<1x18x2x32xf32, #tpu.memory_space<vmem>>, vector<1x1x2x32xf32>
    %148 = vector.shape_cast %147 : vector<1x1x2x32xf32> to vector<2x32xf32>
    %c0_96 = arith.constant 0 : index
    %c10 = arith.constant 10 : index
    %c0_97 = arith.constant 0 : index
    %c0_98 = arith.constant 0 : index
    %149 = vector.load %arg1[%c0_96, %c10, %c0_97, %c0_98] : memref<1x18x2x32xf32, #tpu.memory_space<vmem>>, vector<1x1x2x32xf32>
    %150 = vector.shape_cast %149 : vector<1x1x2x32xf32> to vector<2x32xf32>
    %c0_99 = arith.constant 0 : index
    %c11 = arith.constant 11 : index
    %c0_100 = arith.constant 0 : index
    %c0_101 = arith.constant 0 : index
    %151 = vector.load %arg1[%c0_99, %c11, %c0_100, %c0_101] : memref<1x18x2x32xf32, #tpu.memory_space<vmem>>, vector<1x1x2x32xf32>
    %152 = vector.shape_cast %151 : vector<1x1x2x32xf32> to vector<2x32xf32>
    %cst_102 = arith.constant dense<0.000000e+00> : vector<2x32xf32>
    %153 = tpu.matmul %139, %1, %cst_102 {dimension_numbers = #tpu.dot_dimension_numbers<[1], [0], [0], [1], [0, 0, 1, 1], [], []>} : vector<2x32xf32>, vector<32x32xf32>, vector<2x32xf32> -> vector<2x32xf32>
    %154 = arith.addf %148, %153 : vector<2x32xf32>
    %155 = arith.negf %154 : vector<2x32xf32>
    %156 = math.exp %155 : vector<2x32xf32>
    %cst_103 = arith.constant 1.000000e+00 : f32
    %157 = vector.broadcast %cst_103 : f32 to vector<2x32xf32>
    %158 = arith.addf %157, %156 : vector<2x32xf32>
    %159 = arith.divf %157, %158 : vector<2x32xf32>
    %cst_104 = arith.constant dense<0.000000e+00> : vector<2x32xf32>
    %160 = tpu.matmul %139, %3, %cst_104 {dimension_numbers = #tpu.dot_dimension_numbers<[1], [0], [0], [1], [0, 0, 1, 1], [], []>} : vector<2x32xf32>, vector<32x32xf32>, vector<2x32xf32> -> vector<2x32xf32>
    %161 = arith.addf %150, %160 : vector<2x32xf32>
    %162 = arith.negf %161 : vector<2x32xf32>
    %163 = math.exp %162 : vector<2x32xf32>
    %cst_105 = arith.constant 1.000000e+00 : f32
    %164 = vector.broadcast %cst_105 : f32 to vector<2x32xf32>
    %165 = arith.addf %164, %163 : vector<2x32xf32>
    %166 = arith.divf %164, %165 : vector<2x32xf32>
    %cst_106 = arith.constant dense<0.000000e+00> : vector<2x32xf32>
    %167 = tpu.matmul %139, %5, %cst_106 {dimension_numbers = #tpu.dot_dimension_numbers<[1], [0], [0], [1], [0, 0, 1, 1], [], []>} : vector<2x32xf32>, vector<32x32xf32>, vector<2x32xf32> -> vector<2x32xf32>
    %168 = vector.broadcast %7 : vector<1x32xf32> to vector<2x32xf32>
    %169 = arith.addf %167, %168 : vector<2x32xf32>
    %170 = arith.mulf %159, %169 : vector<2x32xf32>
    %171 = arith.addf %152, %170 : vector<2x32xf32>
    %172 = math.tanh %171 : vector<2x32xf32>
    %cst_107 = arith.constant 1.000000e+00 : f32
    %173 = vector.broadcast %cst_107 : f32 to vector<2x32xf32>
    %174 = arith.subf %173, %166 : vector<2x32xf32>
    %175 = arith.mulf %174, %172 : vector<2x32xf32>
    %176 = arith.mulf %166, %139 : vector<2x32xf32>
    %177 = arith.addf %175, %176 : vector<2x32xf32>
    %178 = vector.broadcast %146 : vector<2x1xf32> to vector<2x32xf32>
    %179 = arith.mulf %178, %177 : vector<2x32xf32>
    %cst_108 = arith.constant 1.000000e+00 : f32
    %180 = vector.broadcast %cst_108 : f32 to vector<2x1xf32>
    %181 = arith.subf %180, %146 : vector<2x1xf32>
    %182 = vector.broadcast %181 : vector<2x1xf32> to vector<2x32xf32>
    %183 = arith.mulf %182, %139 : vector<2x32xf32>
    %184 = arith.addf %179, %183 : vector<2x32xf32>
    %185 = vector.broadcast %146 : vector<2x1xf32> to vector<2x32xf32>
    %186 = arith.mulf %185, %177 : vector<2x32xf32>
    %c0_109 = arith.constant 0 : index
    %c3_110 = arith.constant 3 : index
    %c0_111 = arith.constant 0 : index
    %c0_112 = arith.constant 0 : index
    %187 = vector.load %arg6[%c0_109, %c3_110, %c0_111, %c0_112] : memref<1x6x2x32xf32, #tpu.memory_space<vmem>>, vector<1x1x2x32xf32>
    %188 = vector.shape_cast %187 : vector<1x1x2x32xf32> to vector<2x32xf32>
    %189 = vector.shape_cast %186 : vector<2x32xf32> to vector<1x1x2x32xf32>
    tpu.vector_store %arg6[%c0_109, %c3_110, %c0_111, %c0_112], %189 {strides = array<i32>} : memref<1x6x2x32xf32, #tpu.memory_space<vmem>>, vector<1x1x2x32xf32>,
    %c0_113 = arith.constant 0 : index
    %c4_114 = arith.constant 4 : index
    %c0_115 = arith.constant 0 : index
    %c0_116 = arith.constant 0 : index
    %190 = vector.load %arg2[%c0_113, %c4_114, %c0_115, %c0_116] : memref<1x6x2x1xf32, #tpu.memory_space<vmem>>, vector<1x1x2x1xf32>
    %191 = vector.shape_cast %190 : vector<1x1x2x1xf32> to vector<2x1xf32>
    %c0_117 = arith.constant 0 : index
    %c12 = arith.constant 12 : index
    %c0_118 = arith.constant 0 : index
    %c0_119 = arith.constant 0 : index
    %192 = vector.load %arg1[%c0_117, %c12, %c0_118, %c0_119] : memref<1x18x2x32xf32, #tpu.memory_space<vmem>>, vector<1x1x2x32xf32>
    %193 = vector.shape_cast %192 : vector<1x1x2x32xf32> to vector<2x32xf32>
    %c0_120 = arith.constant 0 : index
    %c13 = arith.constant 13 : index
    %c0_121 = arith.constant 0 : index
    %c0_122 = arith.constant 0 : index
    %194 = vector.load %arg1[%c0_120, %c13, %c0_121, %c0_122] : memref<1x18x2x32xf32, #tpu.memory_space<vmem>>, vector<1x1x2x32xf32>
    %195 = vector.shape_cast %194 : vector<1x1x2x32xf32> to vector<2x32xf32>
    %c0_123 = arith.constant 0 : index
    %c14 = arith.constant 14 : index
    %c0_124 = arith.constant 0 : index
    %c0_125 = arith.constant 0 : index
    %196 = vector.load %arg1[%c0_123, %c14, %c0_124, %c0_125] : memref<1x18x2x32xf32, #tpu.memory_space<vmem>>, vector<1x1x2x32xf32>
    %197 = vector.shape_cast %196 : vector<1x1x2x32xf32> to vector<2x32xf32>
    %cst_126 = arith.constant dense<0.000000e+00> : vector<2x32xf32>
    %198 = tpu.matmul %184, %1, %cst_126 {dimension_numbers = #tpu.dot_dimension_numbers<[1], [0], [0], [1], [0, 0, 1, 1], [], []>} : vector<2x32xf32>, vector<32x32xf32>, vector<2x32xf32> -> vector<2x32xf32>
    %199 = arith.addf %193, %198 : vector<2x32xf32>
    %200 = arith.negf %199 : vector<2x32xf32>
    %201 = math.exp %200 : vector<2x32xf32>
    %cst_127 = arith.constant 1.000000e+00 : f32
    %202 = vector.broadcast %cst_127 : f32 to vector<2x32xf32>
    %203 = arith.addf %202, %201 : vector<2x32xf32>
    %204 = arith.divf %202, %203 : vector<2x32xf32>
    %cst_128 = arith.constant dense<0.000000e+00> : vector<2x32xf32>
    %205 = tpu.matmul %184, %3, %cst_128 {dimension_numbers = #tpu.dot_dimension_numbers<[1], [0], [0], [1], [0, 0, 1, 1], [], []>} : vector<2x32xf32>, vector<32x32xf32>, vector<2x32xf32> -> vector<2x32xf32>
    %206 = arith.addf %195, %205 : vector<2x32xf32>
    %207 = arith.negf %206 : vector<2x32xf32>
    %208 = math.exp %207 : vector<2x32xf32>
    %cst_129 = arith.constant 1.000000e+00 : f32
    %209 = vector.broadcast %cst_129 : f32 to vector<2x32xf32>
    %210 = arith.addf %209, %208 : vector<2x32xf32>
    %211 = arith.divf %209, %210 : vector<2x32xf32>
    %cst_130 = arith.constant dense<0.000000e+00> : vector<2x32xf32>
    %212 = tpu.matmul %184, %5, %cst_130 {dimension_numbers = #tpu.dot_dimension_numbers<[1], [0], [0], [1], [0, 0, 1, 1], [], []>} : vector<2x32xf32>, vector<32x32xf32>, vector<2x32xf32> -> vector<2x32xf32>
    %213 = vector.broadcast %7 : vector<1x32xf32> to vector<2x32xf32>
    %214 = arith.addf %212, %213 : vector<2x32xf32>
    %215 = arith.mulf %204, %214 : vector<2x32xf32>
    %216 = arith.addf %197, %215 : vector<2x32xf32>
    %217 = math.tanh %216 : vector<2x32xf32>
    %cst_131 = arith.constant 1.000000e+00 : f32
    %218 = vector.broadcast %cst_131 : f32 to vector<2x32xf32>
    %219 = arith.subf %218, %211 : vector<2x32xf32>
    %220 = arith.mulf %219, %217 : vector<2x32xf32>
    %221 = arith.mulf %211, %184 : vector<2x32xf32>
    %222 = arith.addf %220, %221 : vector<2x32xf32>
    %223 = vector.broadcast %191 : vector<2x1xf32> to vector<2x32xf32>
    %224 = arith.mulf %223, %222 : vector<2x32xf32>
    %cst_132 = arith.constant 1.000000e+00 : f32
    %225 = vector.broadcast %cst_132 : f32 to vector<2x1xf32>
    %226 = arith.subf %225, %191 : vector<2x1xf32>
    %227 = vector.broadcast %226 : vector<2x1xf32> to vector<2x32xf32>
    %228 = arith.mulf %227, %184 : vector<2x32xf32>
    %229 = arith.addf %224, %228 : vector<2x32xf32>
    %230 = vector.broadcast %191 : vector<2x1xf32> to vector<2x32xf32>
    %231 = arith.mulf %230, %222 : vector<2x32xf32>
    %c0_133 = arith.constant 0 : index
    %c4_134 = arith.constant 4 : index
    %c0_135 = arith.constant 0 : index
    %c0_136 = arith.constant 0 : index
    %232 = vector.load %arg6[%c0_133, %c4_134, %c0_135, %c0_136] : memref<1x6x2x32xf32, #tpu.memory_space<vmem>>, vector<1x1x2x32xf32>
    %233 = vector.shape_cast %232 : vector<1x1x2x32xf32> to vector<2x32xf32>
    %234 = vector.shape_cast %231 : vector<2x32xf32> to vector<1x1x2x32xf32>
    tpu.vector_store %arg6[%c0_133, %c4_134, %c0_135, %c0_136], %234 {strides = array<i32>} : memref<1x6x2x32xf32, #tpu.memory_space<vmem>>, vector<1x1x2x32xf32>,
    %c0_137 = arith.constant 0 : index
    %c5_138 = arith.constant 5 : index
    %c0_139 = arith.constant 0 : index
    %c0_140 = arith.constant 0 : index
    %235 = vector.load %arg2[%c0_137, %c5_138, %c0_139, %c0_140] : memref<1x6x2x1xf32, #tpu.memory_space<vmem>>, vector<1x1x2x1xf32>
    %236 = vector.shape_cast %235 : vector<1x1x2x1xf32> to vector<2x1xf32>
    %c0_141 = arith.constant 0 : index
    %c15 = arith.constant 15 : index
    %c0_142 = arith.constant 0 : index
    %c0_143 = arith.constant 0 : index
    %237 = vector.load %arg1[%c0_141, %c15, %c0_142, %c0_143] : memref<1x18x2x32xf32, #tpu.memory_space<vmem>>, vector<1x1x2x32xf32>
    %238 = vector.shape_cast %237 : vector<1x1x2x32xf32> to vector<2x32xf32>
    %c0_144 = arith.constant 0 : index
    %c16 = arith.constant 16 : index
    %c0_145 = arith.constant 0 : index
    %c0_146 = arith.constant 0 : index
    %239 = vector.load %arg1[%c0_144, %c16, %c0_145, %c0_146] : memref<1x18x2x32xf32, #tpu.memory_space<vmem>>, vector<1x1x2x32xf32>
    %240 = vector.shape_cast %239 : vector<1x1x2x32xf32> to vector<2x32xf32>
    %c0_147 = arith.constant 0 : index
    %c17 = arith.constant 17 : index
    %c0_148 = arith.constant 0 : index
    %c0_149 = arith.constant 0 : index
    %241 = vector.load %arg1[%c0_147, %c17, %c0_148, %c0_149] : memref<1x18x2x32xf32, #tpu.memory_space<vmem>>, vector<1x1x2x32xf32>
    %242 = vector.shape_cast %241 : vector<1x1x2x32xf32> to vector<2x32xf32>
    %cst_150 = arith.constant dense<0.000000e+00> : vector<2x32xf32>
    %243 = tpu.matmul %229, %1, %cst_150 {dimension_numbers = #tpu.dot_dimension_numbers<[1], [0], [0], [1], [0, 0, 1, 1], [], []>} : vector<2x32xf32>, vector<32x32xf32>, vector<2x32xf32> -> vector<2x32xf32>
    %244 = arith.addf %238, %243 : vector<2x32xf32>
    %245 = arith.negf %244 : vector<2x32xf32>
    %246 = math.exp %245 : vector<2x32xf32>
    %cst_151 = arith.constant 1.000000e+00 : f32
    %247 = vector.broadcast %cst_151 : f32 to vector<2x32xf32>
    %248 = arith.addf %247, %246 : vector<2x32xf32>
    %249 = arith.divf %247, %248 : vector<2x32xf32>
    %cst_152 = arith.constant dense<0.000000e+00> : vector<2x32xf32>
    %250 = tpu.matmul %229, %3, %cst_152 {dimension_numbers = #tpu.dot_dimension_numbers<[1], [0], [0], [1], [0, 0, 1, 1], [], []>} : vector<2x32xf32>, vector<32x32xf32>, vector<2x32xf32> -> vector<2x32xf32>
    %251 = arith.addf %240, %250 : vector<2x32xf32>
    %252 = arith.negf %251 : vector<2x32xf32>
    %253 = math.exp %252 : vector<2x32xf32>
    %cst_153 = arith.constant 1.000000e+00 : f32
    %254 = vector.broadcast %cst_153 : f32 to vector<2x32xf32>
    %255 = arith.addf %254, %253 : vector<2x32xf32>
    %256 = arith.divf %254, %255 : vector<2x32xf32>
    %cst_154 = arith.constant dense<0.000000e+00> : vector<2x32xf32>
    %257 = tpu.matmul %229, %5, %cst_154 {dimension_numbers = #tpu.dot_dimension_numbers<[1], [0], [0], [1], [0, 0, 1, 1], [], []>} : vector<2x32xf32>, vector<32x32xf32>, vector<2x32xf32> -> vector<2x32xf32>
    %258 = vector.broadcast %7 : vector<1x32xf32> to vector<2x32xf32>
    %259 = arith.addf %257, %258 : vector<2x32xf32>
    %260 = arith.mulf %249, %259 : vector<2x32xf32>
    %261 = arith.addf %242, %260 : vector<2x32xf32>
    %262 = math.tanh %261 : vector<2x32xf32>
    %cst_155 = arith.constant 1.000000e+00 : f32
    %263 = vector.broadcast %cst_155 : f32 to vector<2x32xf32>
    %264 = arith.subf %263, %256 : vector<2x32xf32>
    %265 = arith.mulf %264, %262 : vector<2x32xf32>
    %266 = arith.mulf %256, %229 : vector<2x32xf32>
    %267 = arith.addf %265, %266 : vector<2x32xf32>
    %268 = vector.broadcast %236 : vector<2x1xf32> to vector<2x32xf32>
    %269 = arith.mulf %268, %267 : vector<2x32xf32>
    %cst_156 = arith.constant 1.000000e+00 : f32
    %270 = vector.broadcast %cst_156 : f32 to vector<2x1xf32>
    %271 = arith.subf %270, %236 : vector<2x1xf32>
    %272 = vector.broadcast %271 : vector<2x1xf32> to vector<2x32xf32>
    %273 = arith.mulf %272, %229 : vector<2x32xf32>
    %274 = arith.addf %269, %273 : vector<2x32xf32>
    %275 = vector.broadcast %236 : vector<2x1xf32> to vector<2x32xf32>
    %276 = arith.mulf %275, %267 : vector<2x32xf32>
    %c0_157 = arith.constant 0 : index
    %c5_158 = arith.constant 5 : index
    %c0_159 = arith.constant 0 : index
    %c0_160 = arith.constant 0 : index
    %277 = vector.load %arg6[%c0_157, %c5_158, %c0_159, %c0_160] : memref<1x6x2x32xf32, #tpu.memory_space<vmem>>, vector<1x1x2x32xf32>
    %278 = vector.shape_cast %277 : vector<1x1x2x32xf32> to vector<2x32xf32>
    %279 = vector.shape_cast %276 : vector<2x32xf32> to vector<1x1x2x32xf32>
    tpu.vector_store %arg6[%c0_157, %c5_158, %c0_159, %c0_160], %279 {strides = array<i32>} : memref<1x6x2x32xf32, #tpu.memory_space<vmem>>, vector<1x1x2x32xf32>,
    %c0_161 = arith.constant 0 : index
    %c0_162 = arith.constant 0 : index
    %c0_163 = arith.constant 0 : index
    %280 = vector.load %arg7[%c0_161, %c0_162, %c0_163] : memref<1x2x32xf32, #tpu.memory_space<vmem>>, vector<1x2x32xf32>
    %281 = vector.shape_cast %280 : vector<1x2x32xf32> to vector<2x32xf32>
    %282 = vector.shape_cast %274 : vector<2x32xf32> to vector<1x2x32xf32>
    tpu.vector_store %arg7[%c0_161, %c0_162, %c0_163], %282 {strides = array<i32>} : memref<1x2x32xf32, #tpu.memory_space<vmem>>, vector<1x2x32xf32>,
    return
  }
  func.func @transform_0(%arg0: i32) -> (i32, i32, i32, i32) {
    %c0_i32 = arith.constant 0 : i32
    %c0_i32_0 = arith.constant 0 : i32
    %c0_i32_1 = arith.constant 0 : i32
    %c0_i32_2 = arith.constant 0 : i32
    return %arg0, %c0_i32, %c0_i32_0, %c0_i32_1 : i32, i32, i32, i32
  }
  func.func @transform_1(%arg0: i32) -> (i32, i32, i32, i32) {
    %c0_i32 = arith.constant 0 : i32
    %c0_i32_0 = arith.constant 0 : i32
    %c0_i32_1 = arith.constant 0 : i32
    %c0_i32_2 = arith.constant 0 : i32
    return %arg0, %c0_i32, %c0_i32_0, %c0_i32_1 : i32, i32, i32, i32
  }
  func.func @transform_2(%arg0: i32) -> (i32, i32, i32) {
    %c0_i32 = arith.constant 0 : i32
    %c0_i32_0 = arith.constant 0 : i32
    %c0_i32_1 = arith.constant 0 : i32
    return %arg0, %c0_i32, %c0_i32_0 : i32, i32, i32
  }
  func.func @transform_3(%arg0: i32) -> (i32, i32, i32, i32) {
    %c0_i32 = arith.constant 0 : i32
    %c0_i32_0 = arith.constant 0 : i32
    %c0_i32_1 = arith.constant 0 : i32
    %c0_i32_2 = arith.constant 0 : i32
    return %arg0, %c0_i32, %c0_i32_0, %c0_i32_1 : i32, i32, i32, i32
  }
  func.func @transform_4(%arg0: i32) -> (i32, i32, i32) {
    %c0_i32 = arith.constant 0 : i32
    %c0_i32_0 = arith.constant 0 : i32
    %c0_i32_1 = arith.constant 0 : i32
    return %arg0, %c0_i32, %c0_i32_0 : i32, i32, i32
  }
  func.func @transform_5(%arg0: i32) -> (i32, i32, i32, i32) {
    %c0_i32 = arith.constant 0 : i32
    %c0_i32_0 = arith.constant 0 : i32
    %c0_i32_1 = arith.constant 0 : i32
    %c0_i32_2 = arith.constant 0 : i32
    return %arg0, %c0_i32, %c0_i32_0, %c0_i32_1 : i32, i32, i32, i32
  }
  func.func @transform_6(%arg0: i32) -> (i32, i32, i32) {
    %c0_i32 = arith.constant 0 : i32
    %c0_i32_0 = arith.constant 0 : i32
    %c0_i32_1 = arith.constant 0 : i32
    return %arg0, %c0_i32, %c0_i32_0 : i32, i32, i32
  }
}

module attributes {stable_mosaic.version = 11 : i64} {
  func.func @_span_attn_kernel(%arg0: memref<2x8x32xf32, #tpu.memory_space<vmem>>, %arg1: memref<8x32xf32, #tpu.memory_space<vmem>>, %arg2: memref<2x1x8xf32, #tpu.memory_space<vmem>>, %arg3: memref<2x8x1xf32, #tpu.memory_space<vmem>>, %arg4: memref<64x32xf32, #tpu.memory_space<vmem>>, %arg5: memref<1x32xf32, #tpu.memory_space<vmem>>, %arg6: memref<2x8x32xf32, #tpu.memory_space<vmem>>) attributes {dimension_semantics = [], scalar_prefetch = 0 : i64, scratch_operands = 0 : i64, tpu.core_type = #tpu.core_type<tc>} {
    %c0 = arith.constant 0 : index
    %c0_0 = arith.constant 0 : index
    %c0_1 = arith.constant 0 : index
    %0 = vector.load %arg0[%c0, %c0_0, %c0_1] : memref<2x8x32xf32, #tpu.memory_space<vmem>>, vector<2x8x32xf32>
    %c0_2 = arith.constant 0 : index
    %c0_3 = arith.constant 0 : index
    %1 = vector.load %arg1[%c0_2, %c0_3] : memref<8x32xf32, #tpu.memory_space<vmem>>, vector<8x32xf32>
    %2 = vector.shape_cast %1 : vector<8x32xf32> to vector<1x8x32xf32>
    %3 = vector.broadcast %2 : vector<1x8x32xf32> to vector<2x8x32xf32>
    %4 = arith.addf %0, %3 : vector<2x8x32xf32>
    %c0_4 = arith.constant 0 : index
    %c0_5 = arith.constant 0 : index
    %c0_6 = arith.constant 0 : index
    %5 = vector.load %arg2[%c0_4, %c0_5, %c0_6] : memref<2x1x8xf32, #tpu.memory_space<vmem>>, vector<2x1x8xf32>
    %c0_7 = arith.constant 0 : index
    %c0_8 = arith.constant 0 : index
    %c0_9 = arith.constant 0 : index
    %6 = vector.load %arg3[%c0_7, %c0_8, %c0_9] : memref<2x8x1xf32, #tpu.memory_space<vmem>>, vector<2x8x1xf32>
    "tpu.trace_start"() <{level = 10 : i32, message = "bqd,bkd->bqk"}> : () -> ()
    %cst = arith.constant dense<0.000000e+00> : vector<2x8x8xf32>
    %7 = tpu.matmul %4, %4, %cst {dimension_numbers = #tpu.dot_dimension_numbers<[2], [2], [1], [1], [0, 0, 0, 1, 1, 1], [0], [0]>} : vector<2x8x32xf32>, vector<2x8x32xf32>, vector<2x8x8xf32> -> vector<2x8x8xf32>
    %cst_10 = arith.constant 0.000000e+00 : f32
    "tpu.trace_stop"() : () -> ()
    %8 = vector.broadcast %cst_10 : f32 to vector<2x1x8xf32>
    %9 = arith.cmpf one, %5, %8 : vector<2x1x8xf32>
    %cst_11 = arith.constant -1.000000e+30 : f32
    %10 = vector.shape_cast %9 : vector<2x1x8xi1> to vector<2x1x8xi1>
    %11 = vector.broadcast %10 : vector<2x1x8xi1> to vector<2x8x8xi1>
    %12 = vector.broadcast %cst_11 : f32 to vector<2x8x8xf32>
    %13 = arith.select %11, %12, %7 : vector<2x8x8xi1>, vector<2x8x8xf32>
    %cst_12 = arith.constant dense<0xFF800000> : vector<2x8xf32>
    %14 = vector.multi_reduction <maximumf>, %13, %cst_12 [2] : vector<2x8x8xf32> to vector<2x8xf32>
    %15 = vector.shape_cast %14 : vector<2x8xf32> to vector<2x8x1xf32>
    %16 = vector.broadcast %15 : vector<2x8x1xf32> to vector<2x8x8xf32>
    %17 = arith.subf %13, %16 : vector<2x8x8xf32>
    %18 = math.exp %17 : vector<2x8x8xf32>
    %cst_13 = arith.constant dense<0.000000e+00> : vector<2x8xf32>
    %19 = vector.multi_reduction <add>, %18, %cst_13 [2] : vector<2x8x8xf32> to vector<2x8xf32>
    %20 = vector.shape_cast %19 : vector<2x8xf32> to vector<2x8x1xf32>
    %21 = vector.broadcast %20 : vector<2x8x1xf32> to vector<2x8x8xf32>
    %22 = arith.divf %18, %21 : vector<2x8x8xf32>
    "tpu.trace_start"() <{level = 10 : i32, message = "bqk,bkd->bqd"}> : () -> ()
    %cst_14 = arith.constant dense<0.000000e+00> : vector<2x8x32xf32>
    %23 = tpu.matmul %22, %4, %cst_14 {dimension_numbers = #tpu.dot_dimension_numbers<[2], [1], [1], [2], [0, 0, 0, 1, 1, 2], [0], [0]>} : vector<2x8x8xf32>, vector<2x8x32xf32>, vector<2x8x32xf32> -> vector<2x8x32xf32>
    "tpu.trace_stop"() : () -> ()
    %24 = vector.shape_cast %23 : vector<2x8x32xf32> to vector<16x32xf32>
    %c0_15 = arith.constant 0 : index
    %c0_16 = arith.constant 0 : index
    %25 = vector.load %arg4[%c0_15, %c0_16] : memref<64x32xf32, #tpu.memory_space<vmem>>, vector<32x32xf32>
    %cst_17 = arith.constant dense<0.000000e+00> : vector<16x32xf32>
    %26 = tpu.matmul %24, %25, %cst_17 {dimension_numbers = #tpu.dot_dimension_numbers<[1], [0], [0], [1], [0, 0, 1, 1], [], []>} : vector<16x32xf32>, vector<32x32xf32>, vector<16x32xf32> -> vector<16x32xf32>
    %27 = vector.shape_cast %4 : vector<2x8x32xf32> to vector<16x32xf32>
    %c32 = arith.constant 32 : index
    %c0_18 = arith.constant 0 : index
    %28 = vector.load %arg4[%c32, %c0_18] : memref<64x32xf32, #tpu.memory_space<vmem>>, vector<32x32xf32>
    %cst_19 = arith.constant dense<0.000000e+00> : vector<16x32xf32>
    %29 = tpu.matmul %27, %28, %cst_19 {dimension_numbers = #tpu.dot_dimension_numbers<[1], [0], [0], [1], [0, 0, 1, 1], [], []>} : vector<16x32xf32>, vector<32x32xf32>, vector<16x32xf32> -> vector<16x32xf32>
    %30 = arith.addf %26, %29 : vector<16x32xf32>
    %c0_20 = arith.constant 0 : index
    %c0_21 = arith.constant 0 : index
    %31 = vector.load %arg5[%c0_20, %c0_21] : memref<1x32xf32, #tpu.memory_space<vmem>>, vector<1x32xf32>
    %32 = vector.broadcast %31 : vector<1x32xf32> to vector<16x32xf32>
    %33 = arith.addf %30, %32 : vector<16x32xf32>
    %34 = math.tanh %33 : vector<16x32xf32>
    %35 = vector.shape_cast %34 : vector<16x32xf32> to vector<2x8x32xf32>
    %cst_22 = arith.constant 1.000000e+00 : f32
    %36 = vector.broadcast %cst_22 : f32 to vector<2x8x1xf32>
    %37 = arith.subf %36, %6 : vector<2x8x1xf32>
    %38 = vector.broadcast %37 : vector<2x8x1xf32> to vector<2x8x32xf32>
    %39 = arith.mulf %35, %38 : vector<2x8x32xf32>
    %c0_23 = arith.constant 0 : index
    %c0_24 = arith.constant 0 : index
    %c0_25 = arith.constant 0 : index
    %40 = vector.load %arg6[%c0_23, %c0_24, %c0_25] : memref<2x8x32xf32, #tpu.memory_space<vmem>>, vector<2x8x32xf32>
    tpu.vector_store %arg6[%c0_23, %c0_24, %c0_25], %39 {strides = array<i32>} : memref<2x8x32xf32, #tpu.memory_space<vmem>>, vector<2x8x32xf32>,
    return
  }
}

</mosaic_0001>

<bundles_post_ra>
// kernel: reverse.1
= control target key start
LH: loop header
LB: loop body
LE: loop exit
PB: predicated region body
PF: predicated region fallthrough
CT: control target
= control target key end

     0   :  { %v2_v0 = vlaneseq  ;;  %s105_s0 = inlined_call_operand.vmem [shape: f32[6,2], index: 0, kind: input, shape index: {}]   ;;  %s106_s1 = inlined_call_operand.vmem [shape: f32[6,2], index: 1, kind: output, shape index: {}]  }
   0x2   :  { %v3_v1 = vsub.s32 5, %v2_v0 }
   0x4   :  { %4 = vset.pattern.permute.xlu0 %v3_v1 }
   0x5   :  { %v20_v2 = vld [vmem:[%s105_s0] sm:$0x3] }
   0x6   :  { %21 = vst [vmem:[#allocation1] sm:$0x3] %v20_v2 }
   0xd   :  { %v38_v3 = vld [vmem:[#allocation1] sm:$0x3] }
   0xe   :  { %39 = vst [vmem:[#allocation0] sm:$0x3] %v38_v3 }
  0x15   :  { %v40_v4 = vld [vmem:[#allocation0] sm:$0xff] }
  0x16   :  { %41 = vperm.xlu0 %4, %v40_v4  }
  0x95   :  { %v42_v5 = vpop.permute.xlu0 %41 }
  0x96   :  { %43 = vst [vmem:[#allocation2] sm:$0xff] %v42_v5 }
  0x9d   :  { %v47_v6 = vld [vmem:[#allocation2] sm:$0x3] }
  0x9e   :  { %49 = vst [vmem:[#allocation3] sm:$0x3] %v47_v6 }
  0xa5   :  { %v65_v7 = vld [vmem:[#allocation3] sm:$0x3] }
  0xa6   :  { %66 = vst [vmem:[%s106_s1] sm:$0x3] %v65_v7 }

// kernel: _lambda_.7
= control target key start
LH: loop header
LB: loop body
LE: loop exit
PB: predicated region body
PF: predicated region fallthrough
CT: control target
= control target key end

     0   :  { %12 = vsyncpa [#allocation3], 0  ;;  %s3079_s0 = inlined_call_operand.vmem [shape: f32[2,18,2,32], index: 0, kind: input, shape index: {}]   ;;  %s3080_s1 = inlined_call_operand.vmem [shape: f32[2,6,2,1], index: 1, kind: input, shape index: {}]   ;;  %s3081_s2 = inlined_call_operand.vmem [shape: f32[2,2,32], index: 2, kind: input, shape index: {}]   ;;  %s3082_s3 = inlined_call_operand.vmem [shape: f32[2,3,32,32], index: 3, kind: input, shape index: {}]   ;;  %s3083_s4 = inlined_call_operand.vmem [shape: f32[2,1,32], index: 4, kind: input, shape index: {}]   ;;  %s3084_s5 = inlined_call_operand.vmem [shape: f32[2,6,2,32], index: 5, kind: output, shape index: {0}]   ;;  %s3085_s6 = inlined_call_operand.hbm [shape: f32[2,2,32], index: 6, kind: output, shape index: {1}]  }
   0x1   :  { %14 = vsyncpa [#allocation3 + $0x1], 0  ;;  %s2743_s21 = smov 0   ;;  %s2745_s22 = smov 0  }
   0x2   :  { %s2747_s23 = smov 0   ;;  %s2749_s24 = smov 0  }
   0x3 LB: > { %s2764_s25 = sadd.s32 4294967295, %s2701_s24   ;;  %s2055_s26 = sadd.s32 4294967294, %s2701_s24   ;;  %s2701_s24 = sphi %s2749_s24, %s3091_s24   ;;  %s2697_s23 = sphi %s2747_s23, %s3090_s23   ;;  %s2693_s22 = sphi %s2745_s22, %s3089_s22   ;;  %s2689_s21 = sphi %s2743_s21, %s3088_s21  }
   0x4   : > { %s2768_s27 = sadd.s32 1, %s2701_s24   ;;  %s183_s28 = sadd.s32 1, %s2697_s23 }
   0x5   : > { %s180_s29 = ssub.s32 %s2701_s24, %s2768_s27  ;;  %p193_p0 = scmp.ne.s32.totalorder %s2697_s23, %s2693_s22 }
   0x6   : > { %p181_p1 = scmp.eq.s32.totalorder %s180_s29, 0  ;;  %p194_p2 = scmp.eq.s32.totalorder %s2764_s25, 1 }
   0x7   : > { %p199_p3 = scmp.ne.s32.totalorder %s2693_s22, %s2689_s21  ;;  %p200_p4 = scmp.eq.s32.totalorder %s2055_s26, 1 }
   0x8   : > { %s2779_s30 = scalar_select %p181_p1, %s2697_s23, %s183_s28  }
   0x9   : > { %p2781_p5 = por %p194_p2, %p193_p0  ;;  %p2785_p6 = por %p200_p4, %p199_p3 }
   0xa   : > { %p2058_p7 = scmp.ge.s32.totalorder %s2701_s24, 1  ;;  %p255_p8 = scmp.lt.s32.totalorder %s2701_s24, 3 }
   0xc   : > { %p256_p9 = pnand %p2058_p7, %p255_p8 }
   0xd   : > { %p307_p10 = scmp.lt.s32.totalorder (!%p256_p9), %s2764_s25, 1  ;;  %v2703_v0 = vmov (!%p256_p9), 0.0|0.0   ;;  %vm2704_vm0 = vmmov (!%p256_p9), 0   ;;  %v2705_v1 = vmov (!%p256_p9), 0.0   ;;  %v2706_v2 = vmov (!%p256_p9), 0   ;;  %s2132_s19 = sshll.u32 (!%p256_p9), %s2764_s25, 5 }
   0xe   : > { %259 = sbr.rel (%p256_p9) target bundleno = 1628 (0x65c), region = 40  ;;  %2423 = vmatprep.subr.bf16.mxu0 (!%p256_p9), %v2703_v0  ;;  %2233 = vmatprep.mubr.msk.f32.mxu0 (!%p256_p9), %vm2704_vm0, %v2705_v1  ;;  %vm356_vm1 = vcmask (!%p256_p9), 261120   ;;  %vm611_vm2 = vcmask (!%p256_p9), 254976   ;;  %s2707_s13 = smov (!%p256_p9), [#allocation2]  }
   0xf   : > { %2429 = vmatprep.subr.bf16.mxu1 (!%p256_p9), %v2703_v0  ;;  %2244 = vmatprep.mubr.msk.f32.mxu1 (!%p256_p9), %vm2704_vm0, %v2705_v1 }
  0x10   : > { %2577 = vset.pattern.permute.xlu0 (!%p256_p9), %v2706_v2  ;;  %2578 = vset.pattern.permute.xlu1 (!%p256_p9), %v2706_v2 }
  0x15   : > { %s2796_s9 = scalar_select %p307_p10, %s2764_s25, 1 }
  0x17   : > { %s2533_s10 = smul.u32 96, %s2796_s9  ;;  %s2062_s15 = sshll.u32 %s2796_s9, 1 }
  0x18   : > { %s2532_s11 = smul.u32 12, %s2796_s9  ;;  %s320_s26 = scalar_lea.vmem %s3081_s2, %s2062_s15 }
  0x19   : > { %s2806_s14 = scalar_lea.vmem %s3082_s3, %s2533_s10  ;;  %v2844_v20 = vld [vmem:[%s320_s26] sm:$0x3]  ;;  %s2531_s28 = smul.u32 36, %s2796_s9 }
  0x1a   : > { %v334_v3 = vld [vmem:[%s2806_s14] sm:$0xff]  ;;  %v335_v4 = vld [vmem:[%s2806_s14 + $0x8] sm:$0xff]  ;;  %v336_v5 = vld [vmem:[%s2806_s14 + $0x10] sm:$0xff]  ;;  %s2822_s18 = scalar_lea.vmem %s3080_s1, %s2532_s11  ;;  %s328_s15 = scalar_lea.vmem %s3083_s4, %s2796_s9 }
  0x1b   : > { %v2811_v6 = vpack.c.bf16 %v335_v4, %v334_v3  ;;  %v337_v7 = vld [vmem:[%s2806_s14 + $0x18] sm:$0xff]  ;;  %v2065_v8 = vld [vmem:[%s2806_s14 + $0x20] sm:$0xff]  ;;  %v2066_v9 = vld [vmem:[%s2806_s14 + $0x28] sm:$0xff]  ;;  %s2887_s12 = scalar_lea.vmem %s3079_s0, %s2531_s28  ;;  %s304_s9 = sand.u32 1, %s2693_s22  }
  0x1c   : > { %v2824_v10 = vpack.c.bf16 %v2066_v9, %v2065_v8  ;;  %v2067_v11 = vld [vmem:[%s2806_s14 + $0x30] sm:$0xff]  ;;  %v2068_v12 = vld [vmem:[%s2806_s14 + $0x38] sm:$0xff]  ;;  %v2829_v13 = vpack.c.bf16 %v337_v7, %v336_v5  ;;  %v2069_v15 = vld [vmem:[%s2806_s14 + $0x40] sm:$0xff]  ;;  %s3036_s10 = scalar_lea.hbm %s3085_s6, %s2132_s19  ;;  %s1910_s25 = scalar_lea.sflag [#allocation3], %s304_s9 }
  0x1d   : > { %2425 = vmatpush3.bf16.msra.mxu0 %v2811_v6  ;;  %v2836_v14 = vpack.c.bf16 %v2068_v12, %v2067_v11  ;;  %v2070_v16 = vld [vmem:[%s2806_s14 + $0x48] sm:$0xff]  ;;  %v350_v17 = vld [vmem:[%s2822_s18] sm:$0x3]  ;;  %v2081_v19 = vld [vmem:[%s2822_s18 + $0x2] sm:$0x3] }
  0x1e   : > { %2426 = vmatprep.subr.bf16.mxu0 %v2703_v0  ;;  %2431 = vmatpush3.bf16.msra.mxu1 %v2824_v10  ;;  %v603_v18 = vsub.f32 1.0, %v350_v17  ;;  %v2846_v21 = vpack.c.bf16 %v2070_v16, %v2069_v15  ;;  %v2071_v22 = vld [vmem:[%s2806_s14 + $0x50] sm:$0xff]  ;;  %v2072_v23 = vld [vmem:[%s2806_s14 + $0x58] sm:$0xff]  ;;  %v861_v24 = vsub.f32 1.0, %v2081_v19  ;;  %v2091_v25 = vld [vmem:[%s2822_s18 + $0x4] sm:$0x3] }
  0x1f   : > { %2432 = vmatprep.subr.bf16.mxu1 %v2703_v0  ;;  %599 = vperm.xlu0 %2577, %v350_v17   ;;  %v2859_v26 = vpack.c.bf16 %v2072_v23, %v2071_v22  ;;  %v1119_v27 = vsub.f32 1.0, %v2091_v25  ;;  %v2101_v28 = vld [vmem:[%s2822_s18 + $0x6] sm:$0x3]  ;;  %v2111_v30 = vld [vmem:[%s2822_s18 + $0x8] sm:$0x3]  ;;  %s2643_s14 = sshll.u32 %s2707_s13, 4  ;;  %s2644_s14 = int_to_ptr.vmem [resolvable:$false] %s2643_s14 }
  0x20   : > { %857 = vperm.xlu1 %2578, %v2081_v19   ;;  %v1377_v29 = vsub.f32 1.0, %v2101_v28  ;;  %v1635_v31 = vsub.f32 1.0, %v2111_v30  ;;  %v2121_v32 = vld [vmem:[%s2822_s18 + $0xa] sm:$0x3]  ;;  %v351_v34 = vld [vmem:[%s2887_s12] sm:$0x3]  ;;  %s2905_s18 = scalar_lea.vmem %s3084_s5, %s2532_s11 }
  0x21   : > { %2428 = vmatpush3.bf16.msra.mxu0 %v2829_v13  ;;  %v1893_v33 = vsub.f32 1.0, %v2121_v32  ;;  %v2073_v35 = vld [vmem:[%s2887_s12 + $0x2] sm:$0x3]  ;;  %v2895_v49 = vld [vmem:[%s328_s15] ss:$0 sm:$0xff]  ;;  %s2059_s11 = sshll.u32 %s304_s9, 1 }
  0x22   : > { %2434 = vmatpush3.bf16.msra.mxu1 %v2836_v14  ;;  %2435 = vmatprep.subr.bf16.mxu0 %v2703_v0  ;;  %v2074_v53 = vld [vmem:[%s2887_s12 + $0x4] sm:$0x3]  ;;  %v2082_v5 = vld [vmem:[%s2887_s12 + $0x6] sm:$0x3]  ;;  %v2083_v11 = vld [vmem:[%s2887_s12 + $0x8] sm:$0x3] }
  0x23   : > { %606 = vperm.xlu0 %2577, %v603_v18   ;;  %2441 = vmatprep.subr.bf16.mxu1 %v2703_v0  ;;  %s306_s20 = scalar_lea.vmem [#allocation2], %s2059_s11  ;;  %s2645_s15 = scalar_lea.vmem %s2644_s14, 64 }
  0x24   : > { %2234 = vmatmul.mubr.msk.f32.vlgmr.msra.gmra.mrb[0].mxu0 %vm356_vm1, %v2844_v20  ;;  %864 = vperm.xlu1 %2578, %v861_v24   ;;  %s1926_s26 = sshll.u32 %s306_s20, 4  ;;  %s3038_s26 = int_to_ptr.vmem [resolvable:$true] %s1926_s26 }
  0x25   : > { %2245 = vmatmul.mubr.msk.f32.vlgmr.msra.gmra.mrb[0].mxu1 %vm356_vm1, %v2844_v20  ;;  %2437 = vmatpush3.bf16.msra.mxu0 %v2846_v21  ;;  %p2646_p0 = scmp.lt.s32.totalorder %s3038_s26, %s2644_s14 }
  0x26   : > { %2438 = vmatprep.subr.bf16.mxu0 %v2703_v0  ;;  %2255 = vmatprep.mubr.msk.f32.mxu0 %vm2704_vm0, %v2705_v1 }
  0x27   : > { %1115 = vperm.xlu0 %2577, %v2091_v25   ;;  %2443 = vmatpush3.bf16.msra.mxu1 %v2811_v6 }
  0x28   : > { %2266 = vmatprep.mubr.msk.f32.mxu1 %vm2704_vm0, %v2705_v1  ;;  %2444 = vmatprep.subr.bf16.mxu1 %v2703_v0 }
  0x29   : > { %2440 = vmatpush3.bf16.msra.mxu0 %v2859_v26  ;;  %1122 = vperm.xlu1 %2578, %v1119_v27  }
  0x2a   : > { %2447 = vmatprep.subr.bf16.mxu0 %v2703_v0 }
  0x2b   : > { %1373 = vperm.xlu0 %2577, %v2101_v28   ;;  %2446 = vmatpush3.bf16.msra.mxu1 %v2829_v13 }
  0x2c   : > { %2256 = vmatmul.mubr.msk.f32.vlgmr.msra.gmra.mrb[2].mxu0 %vm356_vm1, %v2844_v20  ;;  %2453 = vmatprep.subr.bf16.mxu1 %v2703_v0 }
  0x2d   : > { %2449 = vmatpush3.bf16.msra.mxu0 %v2824_v10  ;;  %2277 = vmatprep.mubr.msk.f32.mxu0 %vm2704_vm0, %v2705_v1 }
  0x2e   : > { %2450 = vmatprep.subr.bf16.mxu0 %v2703_v0  ;;  %1380 = vperm.xlu1 %2578, %v1377_v29   ;;  %v2084_v29 = vld [vmem:[%s2887_s12 + $0xa] sm:$0x3] }
  0x2f   : > { %1631 = vperm.xlu0 %2577, %v2111_v30  }
  0x31   : > { %2452 = vmatpush3.bf16.msra.mxu0 %v2836_v14 }
  0x32   : > { %2459 = vmatprep.subr.bf16.mxu0 %v2703_v0  ;;  %1638 = vperm.xlu1 %2578, %v1635_v31  }
  0x33   : > { %1889 = vperm.xlu0 %2577, %v2121_v32  }
  0x36   : > { %1896 = vperm.xlu1 %2578, %v1893_v33  }
  0x9e   : > { %v600_v58 = vpop.permute.xlu0 %599 }
  0x9f   : > { %v858_v33 = vpop.permute.xlu1 %857 }
  0xa2   : > { %v607_v63 = vpop.permute.xlu0 %606 }
  0xa3   : > { %v609_v3 = vmul.f32 %v607_v63, %v2844_v20 }
  0xf7   : > { %v426_v36 = vpop.f32.mrb[0].mxu0 }
  0xf8   : > { %v430_v37 = vadd.f32 %v426_v36, %v351_v34  ;;  %v2235_v38 = vpop.f32.mrb[1].mxu0  ;;  %v503_v39 = vpop.f32.mrb[0].mxu1 }
  0xf9   : > { %v507_v40 = vadd.f32 %v2073_v35, %v503_v39  ;;  %v2246_v41 = vpop.f32.mrb[1].mxu1  ;;  %v865_v38 = vpop.permute.xlu1 %864 }
  0xfa   : > { %v2076_v42 = vmul.f32 -1.442695, %v430_v37 }
  0xfb   : > { %v2078_v43 = vmul.f32 -1.442695, %v507_v40 }
  0xfc   : > { %2579 = vpow2.f32 %v2076_v42 }
  0xfd   : > { %2581 = vpow2.f32 %v2078_v43  ;;  %v2092_v43 = vld [vmem:[%s2887_s12 + $0xc] sm:$0x3] }
  0xff   : > { %v586_v44 = vpop.f32.mrb[2].mxu0 }
 0x100   : > { %v2257_v45 = vpop.f32.mrb[3].mxu0  ;;  %v587_v51 = vadd.f32 %v2895_v49, %v586_v44 }
 0x106   : > { %v2580_v46 = vpop.eup %2579 }
 0x107   : > { %v434_v47 = vadd.f32 1.0, %v2580_v46  ;;  %v2582_v48 = vpop.eup %2581 }
 0x108   : > { %v511_v50 = vadd.f32 1.0, %v2582_v48 }
 0x109   : > { %2583 = vrcp.f32 %v434_v47  ;;  %v2093_v47 = vld [vmem:[%s2887_s12 + $0xe] sm:$0x3] }
 0x10a   : > { %2585 = vrcp.f32 %v511_v50 }
 0x113   : > { %v2584_v52 = vpop.eup %2583 }
 0x114   : > { %v590_v54 = vmul.f32 %v2584_v52, %v587_v51  ;;  %v2586_v56 = vpop.eup %2585 }
 0x115   : > { %v593_v57 = vsub.f32 1.0, %v2586_v56  ;;  %v595_v61 = vmul.f32 %v2586_v56, %v2844_v20 }
 0x116   : > { %v591_v55 = vadd.f32 %v2074_v53, %v590_v54 }
 0x118   : > { %2587 = vtanh.f32 %v591_v55 }
 0x122   : > { %v2588_v59 = vpop.eup %2587 }
 0x123   : > { %v594_v60 = vmul.f32 %v2588_v59, %v593_v57 }
 0x125   : > { %v596_v62 = vadd.f32 %v595_v61, %v594_v60 }
 0x127   : > { %v602_v2 = vmul.f32 %v600_v58, %v596_v62  ;;  %v2094_v62 = vld [vmem:[%s2887_s12 + $0x10] sm:$0x3] }
 0x129   : > { %v610_v4 = vadd.f32 %v609_v3, %v602_v2  ;;  %612 = vst.msk [vmem:[%s2905_s18] sm:$0x3] %vm611_vm2, %v602_v2 }
 0x12b   : > { %2267 = vmatmul.mubr.msk.f32.vlgmr.msra.gmra.mrb[2].mxu1 %vm356_vm1, %v610_v4  ;;  %2278 = vmatmul.mubr.msk.f32.vlgmr.msra.gmra.mrb[4].mxu0 %vm356_vm1, %v610_v4  ;;  %v867_v40 = vmul.f32 %v865_v38, %v610_v4  ;;  %v2104_v38 = vld [vmem:[%s2887_s12 + $0x16] sm:$0x3] }
 0x12c   : > { %2455 = vmatpush3.bf16.msra.mxu1 %v2846_v21  ;;  %2288 = vmatprep.mubr.msk.f32.mxu1 %vm2704_vm0, %v2705_v1 }
 0x12d   : > { %2456 = vmatprep.subr.bf16.mxu1 %v2703_v0  ;;  %2461 = vmatpush3.bf16.msra.mxu0 %v2811_v6 }
 0x12e   : > { %2462 = vmatprep.subr.bf16.mxu0 %v2703_v0  ;;  %2299 = vmatprep.mubr.msk.f32.mxu0 %vm2704_vm0, %v2705_v1 }
 0x130   : > { %2458 = vmatpush3.bf16.msra.mxu1 %v2859_v26 }
 0x131   : > { %2465 = vmatprep.subr.bf16.mxu1 %v2703_v0  ;;  %2464 = vmatpush3.bf16.msra.mxu0 %v2829_v13 }
 0x132   : > { %2471 = vmatprep.subr.bf16.mxu0 %v2703_v0 }
 0x133   : > { %2289 = vmatmul.mubr.msk.f32.vlgmr.msra.gmra.mrb[4].mxu1 %vm356_vm1, %v610_v4 }
 0x134   : > { %2467 = vmatpush3.bf16.msra.mxu1 %v2824_v10  ;;  %2310 = vmatprep.mubr.msk.f32.mxu1 %vm2704_vm0, %v2705_v1 }
 0x135   : > { %2468 = vmatprep.subr.bf16.mxu1 %v2703_v0 }
 0x138   : > { %2470 = vmatpush3.bf16.msra.mxu1 %v2836_v14 }
 0x139   : > { %2477 = vmatprep.subr.bf16.mxu1 %v2703_v0 }
 0x1fe   : > { %v690_v7 = vpop.f32.mrb[2].mxu1  ;;  %v767_v8 = vpop.f32.mrb[4].mxu0 }
 0x1ff   : > { %v694_v9 = vadd.f32 %v2082_v5, %v690_v7  ;;  %v2268_v12 = vpop.f32.mrb[3].mxu1  ;;  %v2279_v15 = vpop.f32.mrb[5].mxu0  ;;  %v771_v17 = vadd.f32 %v2083_v11, %v767_v8 }
 0x200   : > { %v1116_v11 = vpop.permute.xlu0 %1115  ;;  %v1123_v12 = vpop.permute.xlu1 %1122 }
 0x201   : > { %v2086_v16 = vmul.f32 -1.442695, %v694_v9  ;;  %v2088_v18 = vmul.f32 -1.442695, %v771_v17 }
 0x203   : > { %2589 = vpow2.f32 %v2086_v16 }
 0x204   : > { %2591 = vpow2.f32 %v2088_v18  ;;  %v2102_v18 = vld [vmem:[%s2887_s12 + $0x12] sm:$0x3] }
 0x206   : > { %v844_v19 = vpop.f32.mrb[4].mxu1 }
 0x207   : > { %v2290_v20 = vpop.f32.mrb[5].mxu1  ;;  %v845_v27 = vadd.f32 %v2895_v49, %v844_v19 }
 0x20d   : > { %v2590_v22 = vpop.eup %2589 }
 0x20e   : > { %v698_v23 = vadd.f32 1.0, %v2590_v22  ;;  %v2592_v24 = vpop.eup %2591 }
 0x20f   : > { %v775_v25 = vadd.f32 1.0, %v2592_v24 }
 0x210   : > { %2593 = vrcp.f32 %v698_v23  ;;  %v2103_v23 = vld [vmem:[%s2887_s12 + $0x14] sm:$0x3] }
 0x211   : > { %2595 = vrcp.f32 %v775_v25 }
 0x21a   : > { %v2594_v28 = vpop.eup %2593 }
 0x21b   : > { %v848_v30 = vmul.f32 %v2594_v28, %v845_v27  ;;  %v2596_v32 = vpop.eup %2595 }
 0x21c   : > { %v851_v34 = vsub.f32 1.0, %v2596_v32  ;;  %v853_v36 = vmul.f32 %v2596_v32, %v610_v4 }
 0x21d   : > { %v849_v31 = vadd.f32 %v2084_v29, %v848_v30 }
 0x21f   : > { %2597 = vtanh.f32 %v849_v31 }
 0x229   : > { %v2598_v35 = vpop.eup %2597 }
 0x22a   : > { %v852_v37 = vmul.f32 %v2598_v35, %v851_v34 }
 0x22c   : > { %v854_v39 = vadd.f32 %v853_v36, %v852_v37 }
 0x22e   : > { %v860_v41 = vmul.f32 %v858_v33, %v854_v39 }
 0x230   : > { %v868_v42 = vadd.f32 %v867_v40, %v860_v41  ;;  %2090 = vst.msk [vmem:[%s2905_s18 + $0x2] sm:$0x3] %vm611_vm2, %v860_v41 }
 0x232   : > { %2300 = vmatmul.mubr.msk.f32.vlgmr.msra.gmra.mrb[6].mxu0 %vm356_vm1, %v868_v42  ;;  %2311 = vmatmul.mubr.msk.f32.vlgmr.msra.gmra.mrb[6].mxu1 %vm356_vm1, %v868_v42  ;;  %v1125_v15 = vmul.f32 %v1123_v12, %v868_v42 }
 0x233   : > { %2473 = vmatpush3.bf16.msra.mxu0 %v2846_v21  ;;  %2321 = vmatprep.mubr.msk.f32.mxu0 %vm2704_vm0, %v2705_v1 }
 0x234   : > { %2474 = vmatprep.subr.bf16.mxu0 %v2703_v0  ;;  %2479 = vmatpush3.bf16.msra.mxu1 %v2811_v6 }
 0x235   : > { %2480 = vmatprep.subr.bf16.mxu1 %v2703_v0  ;;  %2332 = vmatprep.mubr.msk.f32.mxu1 %vm2704_vm0, %v2705_v1 }
 0x237   : > { %2476 = vmatpush3.bf16.msra.mxu0 %v2859_v26 }
 0x238   : > { %2483 = vmatprep.subr.bf16.mxu0 %v2703_v0  ;;  %2482 = vmatpush3.bf16.msra.mxu1 %v2829_v13 }
 0x239   : > { %2489 = vmatprep.subr.bf16.mxu1 %v2703_v0 }
 0x23a   : > { %2322 = vmatmul.mubr.msk.f32.vlgmr.msra.gmra.mrb[8].mxu0 %vm356_vm1, %v868_v42 }
 0x23b   : > { %2485 = vmatpush3.bf16.msra.mxu0 %v2824_v10  ;;  %2343 = vmatprep.mubr.msk.f32.mxu0 %vm2704_vm0, %v2705_v1 }
 0x23c   : > { %2486 = vmatprep.subr.bf16.mxu0 %v2703_v0 }
 0x23f   : > { %2488 = vmatpush3.bf16.msra.mxu0 %v2836_v14 }
 0x240   : > { %2495 = vmatprep.subr.bf16.mxu0 %v2703_v0 }
 0x305   : > { %v948_v44 = vpop.f32.mrb[6].mxu0  ;;  %v1025_v45 = vpop.f32.mrb[6].mxu1 }
 0x306   : > { %v952_v46 = vadd.f32 %v2092_v43, %v948_v44  ;;  %v2301_v48 = vpop.f32.mrb[7].mxu0  ;;  %v2312_v50 = vpop.f32.mrb[7].mxu1  ;;  %v1029_v52 = vadd.f32 %v2093_v47, %v1025_v45 }
 0x307   : > { %v1374_v47 = vpop.permute.xlu0 %1373  ;;  %v1381_v48 = vpop.permute.xlu1 %1380 }
 0x308   : > { %v2096_v51 = vmul.f32 -1.442695, %v952_v46  ;;  %v2098_v53 = vmul.f32 -1.442695, %v1029_v52 }
 0x30a   : > { %2599 = vpow2.f32 %v2096_v51 }
 0x30b   : > { %2601 = vpow2.f32 %v2098_v53 }
 0x30d   : > { %v1102_v54 = vpop.f32.mrb[8].mxu0 }
 0x30e   : > { %v2323_v55 = vpop.f32.mrb[9].mxu0  ;;  %v1103_v60 = vadd.f32 %v2895_v49, %v1102_v54 }
 0x314   : > { %v2600_v56 = vpop.eup %2599 }
 0x315   : > { %v956_v57 = vadd.f32 1.0, %v2600_v56  ;;  %v2602_v58 = vpop.eup %2601  ;;  %v2113_v56 = vld [vmem:[%s2887_s12 + $0x1a] sm:$0x3] }
 0x316   : > { %v1033_v59 = vadd.f32 1.0, %v2602_v58 }
 0x317   : > { %2603 = vrcp.f32 %v956_v57 }
 0x318   : > { %2605 = vrcp.f32 %v1033_v59 }
 0x321   : > { %v2604_v61 = vpop.eup %2603 }
 0x322   : > { %v1106_v63 = vmul.f32 %v2604_v61, %v1103_v60  ;;  %v2606_v3 = vpop.eup %2605 }
 0x323   : > { %v1109_v4 = vsub.f32 1.0, %v2606_v3  ;;  %v1111_v7 = vmul.f32 %v2606_v3, %v868_v42 }
 0x324   : > { %v1107_v2 = vadd.f32 %v2094_v62, %v1106_v63 }
 0x326   : > { %2607 = vtanh.f32 %v1107_v2 }
 0x330   : > { %v2608_v5 = vpop.eup %2607 }
 0x331   : > { %v1110_v8 = vmul.f32 %v2608_v5, %v1109_v4  ;;  %v2114_v5 = vld [vmem:[%s2887_s12 + $0x1c] sm:$0x3] }
 0x333   : > { %v1112_v9 = vadd.f32 %v1111_v7, %v1110_v8 }
 0x335   : > { %v1118_v16 = vmul.f32 %v1116_v11, %v1112_v9 }
 0x337   : > { %v1126_v17 = vadd.f32 %v1125_v15, %v1118_v16  ;;  %2100 = vst.msk [vmem:[%s2905_s18 + $0x4] sm:$0x3] %vm611_vm2, %v1118_v16 }
 0x339   : > { %2333 = vmatmul.mubr.msk.f32.vlgmr.msra.gmra.mrb[8].mxu1 %vm356_vm1, %v1126_v17  ;;  %2344 = vmatmul.mubr.msk.f32.vlgmr.msra.gmra.mrb[10].mxu0 %vm356_vm1, %v1126_v17  ;;  %v1383_v51 = vmul.f32 %v1381_v48, %v1126_v17 }
 0x33a   : > { %2491 = vmatpush3.bf16.msra.mxu1 %v2846_v21  ;;  %2354 = vmatprep.mubr.msk.f32.mxu1 %vm2704_vm0, %v2705_v1 }
 0x33b   : > { %2492 = vmatprep.subr.bf16.mxu1 %v2703_v0  ;;  %2497 = vmatpush3.bf16.msra.mxu0 %v2811_v6 }
 0x33c   : > { %2498 = vmatprep.subr.bf16.mxu0 %v2703_v0  ;;  %2365 = vmatprep.mubr.msk.f32.mxu0 %vm2704_vm0, %v2705_v1 }
 0x33e   : > { %2494 = vmatpush3.bf16.msra.mxu1 %v2859_v26 }
 0x33f   : > { %2501 = vmatprep.subr.bf16.mxu1 %v2703_v0  ;;  %2500 = vmatpush3.bf16.msra.mxu0 %v2829_v13 }
 0x340   : > { %2507 = vmatprep.subr.bf16.mxu0 %v2703_v0 }
 0x341   : > { %2355 = vmatmul.mubr.msk.f32.vlgmr.msra.gmra.mrb[10].mxu1 %vm356_vm1, %v1126_v17 }
 0x342   : > { %2503 = vmatpush3.bf16.msra.mxu1 %v2824_v10  ;;  %2376 = vmatprep.mubr.msk.f32.mxu1 %vm2704_vm0, %v2705_v1 }
 0x343   : > { %2504 = vmatprep.subr.bf16.mxu1 %v2703_v0 }
 0x346   : > { %2506 = vmatpush3.bf16.msra.mxu1 %v2836_v14 }
 0x347   : > { %2513 = vmatprep.subr.bf16.mxu1 %v2703_v0 }
 0x40c   : > { %v1206_v19 = vpop.f32.mrb[8].mxu1  ;;  %v1283_v20 = vpop.f32.mrb[10].mxu0 }
 0x40d   : > { %v1210_v22 = vadd.f32 %v2102_v18, %v1206_v19  ;;  %v2334_v24 = vpop.f32.mrb[9].mxu1  ;;  %v2345_v25 = vpop.f32.mrb[11].mxu0  ;;  %v1287_v28 = vadd.f32 %v2103_v23, %v1283_v20 }
 0x40e   : > { %v1632_v18 = vpop.permute.xlu0 %1631  ;;  %v1639_v19 = vpop.permute.xlu1 %1638  ;;  %v2122_v24 = vld [vmem:[%s2887_s12 + $0x1e] sm:$0x3] }
 0x40f   : > { %v2106_v27 = vmul.f32 -1.442695, %v1210_v22  ;;  %v2108_v29 = vmul.f32 -1.442695, %v1287_v28 }
 0x411   : > { %2609 = vpow2.f32 %v2106_v27 }
 0x412   : > { %2611 = vpow2.f32 %v2108_v29  ;;  %v2123_v29 = vld [vmem:[%s2887_s12 + $0x20] sm:$0x3]  ;;  %v1890_v48 = vpop.permute.xlu0 %1889 }
 0x414   : > { %v1360_v30 = vpop.f32.mrb[10].mxu1 }
 0x415   : > { %v2356_v31 = vpop.f32.mrb[11].mxu1  ;;  %v1361_v36 = vadd.f32 %v2895_v49, %v1360_v30 }
 0x41b   : > { %v2610_v32 = vpop.eup %2609 }
 0x41c   : > { %v1214_v33 = vadd.f32 1.0, %v2610_v32  ;;  %v2612_v34 = vpop.eup %2611 }
 0x41d   : > { %v1291_v35 = vadd.f32 1.0, %v2612_v34 }
 0x41e   : > { %2613 = vrcp.f32 %v1214_v33 }
 0x41f   : > { %2615 = vrcp.f32 %v1291_v35 }
 0x428   : > { %v2614_v37 = vpop.eup %2613 }
 0x429   : > { %v1364_v39 = vmul.f32 %v2614_v37, %v1361_v36  ;;  %v2616_v41 = vpop.eup %2615 }
 0x42a   : > { %v1367_v42 = vsub.f32 1.0, %v2616_v41  ;;  %v1369_v44 = vmul.f32 %v2616_v41, %v1126_v17 }
 0x42b   : > { %v1365_v40 = vadd.f32 %v2104_v38, %v1364_v39  ;;  %v2124_v39 = vld [vmem:[%s2887_s12 + $0x22] sm:$0x3] }
 0x42d   : > { %2617 = vtanh.f32 %v1365_v40 }
 0x437   : > { %v2618_v43 = vpop.eup %2617 }
 0x438   : > { %v1368_v45 = vmul.f32 %v2618_v43, %v1367_v42 }
 0x43a   : > { %v1370_v46 = vadd.f32 %v1369_v44, %v1368_v45 }
 0x43c   : > { %v1376_v50 = vmul.f32 %v1374_v47, %v1370_v46 }
 0x43e   : > { %v1384_v52 = vadd.f32 %v1383_v51, %v1376_v50  ;;  %2110 = vst.msk [vmem:[%s2905_s18 + $0x6] sm:$0x3] %vm611_vm2, %v1376_v50  ;;  %v1897_v50 = vpop.permute.xlu1 %1896 }
 0x440   : > { %2366 = vmatmul.mubr.msk.f32.vlgmr.msra.gmra.mrb[12].mxu0 %vm356_vm1, %v1384_v52  ;;  %2377 = vmatmul.mubr.msk.f32.vlgmr.msra.gmra.mrb[12].mxu1 %vm356_vm1, %v1384_v52  ;;  %v1641_v22 = vmul.f32 %v1639_v19, %v1384_v52 }
 0x441   : > { %2509 = vmatpush3.bf16.msra.mxu0 %v2846_v21  ;;  %2387 = vmatprep.mubr.msk.f32.mxu0 %vm2704_vm0, %v2705_v1 }
 0x442   : > { %2510 = vmatprep.subr.bf16.mxu0 %v2703_v0  ;;  %2515 = vmatpush3.bf16.msra.mxu1 %v2811_v6  ;;  %v2112_v6 = vld [vmem:[%s2887_s12 + $0x18] sm:$0x3]  ;;  %s2639_s12 = scalar_lea.vmem %s3038_s26, 32 }
 0x443   : > { %2516 = vmatprep.subr.bf16.mxu1 %v2703_v0  ;;  %2398 = vmatprep.mubr.msk.f32.mxu1 %vm2704_vm0, %v2705_v1  ;;  %p2640_p11 = scmp.ne.s32.totalorder %s3038_s26, %s2639_s12  ;;  %p2647_p1 = scmp.lt.s32.totalorder %s2645_s15, %s2639_s12 }
 0x445   : > { %2512 = vmatpush3.bf16.msra.mxu0 %v2859_v26  ;;  %p2641_p12 = pnand %p2640_p11, %p2781_p5  ;;  %p2648_p2 = por %p2647_p1, %p2646_p0 }
 0x446   : > { %2519 = vmatprep.subr.bf16.mxu0 %v2703_v0  ;;  %2518 = vmatpush3.bf16.msra.mxu1 %v2829_v13 }
 0x447   : > { %2525 = vmatprep.subr.bf16.mxu1 %v2703_v0  ;;  %p2642_p13 = pneg %p2641_p12 }
 0x448   : > { %2388 = vmatmul.mubr.msk.f32.vlgmr.msra.gmra.mrb[14].mxu0 %vm356_vm1, %v1384_v52 }
 0x449   : > { %2521 = vmatpush3.bf16.msra.mxu0 %v2824_v10  ;;  %2409 = vmatprep.mubr.msk.f32.mxu0 %vm2704_vm0, %v2705_v1  ;;  %p2649_p3 = pnand %p2648_p2, %p2642_p13 }
 0x44a   : > { %2522 = vmatprep.subr.bf16.mxu0 %v2703_v0 }
 0x44d   : > { %2524 = vmatpush3.bf16.msra.mxu0 %v2836_v14 }
 0x513   : > { %v1464_v53 = vpop.f32.mrb[12].mxu0  ;;  %v1541_v54 = vpop.f32.mrb[12].mxu1 }
 0x514   : > { %v1468_v55 = vadd.f32 %v2112_v6, %v1464_v53  ;;  %v2367_v57 = vpop.f32.mrb[13].mxu0  ;;  %v2378_v13 = vpop.f32.mrb[13].mxu1  ;;  %v1545_v59 = vadd.f32 %v2113_v56, %v1541_v54 }
 0x516   : > { %v2116_v58 = vmul.f32 -1.442695, %v1468_v55  ;;  %v2118_v60 = vmul.f32 -1.442695, %v1545_v59 }
 0x518   : > { %2619 = vpow2.f32 %v2116_v58 }
 0x519   : > { %2621 = vpow2.f32 %v2118_v60 }
 0x51b   : > { %v1618_v10 = vpop.f32.mrb[14].mxu0 }
 0x51c   : > { %v2389_v61 = vpop.f32.mrb[15].mxu0  ;;  %v1619_v3 = vadd.f32 %v2895_v49, %v1618_v10 }
 0x522   : > { %v2620_v62 = vpop.eup %2619 }
 0x523   : > { %v1472_v63 = vadd.f32 1.0, %v2620_v62  ;;  %v2622_v2 = vpop.eup %2621 }
 0x524   : > { %v1549_v14 = vadd.f32 1.0, %v2622_v2 }
 0x525   : > { %2623 = vrcp.f32 %v1472_v63 }
 0x526   : > { %2625 = vrcp.f32 %v1549_v14 }
 0x52f   : > { %v2624_v4 = vpop.eup %2623 }
 0x530   : > { %v1622_v7 = vmul.f32 %v2624_v4, %v1619_v3  ;;  %v2626_v9 = vpop.eup %2625 }
 0x531   : > { %v1625_v11 = vsub.f32 1.0, %v2626_v9  ;;  %v1627_v15 = vmul.f32 %v2626_v9, %v1384_v52 }
 0x532   : > { %v1623_v8 = vadd.f32 %v2114_v5, %v1622_v7 }
 0x534   : > { %2627 = vtanh.f32 %v1623_v8 }
 0x53e   : > { %v2628_v12 = vpop.eup %2627 }
 0x53f   : > { %v1626_v16 = vmul.f32 %v2628_v12, %v1625_v11 }
 0x541   : > { %v1628_v17 = vadd.f32 %v1627_v15, %v1626_v16 }
 0x543   : > { %v1634_v20 = vmul.f32 %v1632_v18, %v1628_v17 }
 0x545   : > { %v1642_v23 = vadd.f32 %v1641_v22, %v1634_v20  ;;  %2120 = vst.msk [vmem:[%s2905_s18 + $0x8] sm:$0x3] %vm611_vm2, %v1634_v20 }
 0x547   : > { %2399 = vmatmul.mubr.msk.f32.vlgmr.msra.gmra.mrb[14].mxu1 %vm356_vm1, %v1642_v23  ;;  %2410 = vmatmul.mubr.msk.f32.vlgmr.msra.gmra.mrb[16].mxu0 %vm356_vm1, %v1642_v23  ;;  %v1899_v51 = vmul.f32 %v1897_v50, %v1642_v23 }
 0x548   : > { %2527 = vmatpush3.bf16.msra.mxu1 %v2846_v21  ;;  %2420 = vmatprep.mubr.msk.f32.mxu1 %vm2704_vm0, %v2705_v1 }
 0x549   : > { %2528 = vmatprep.subr.bf16.mxu1 %v2703_v0 }
 0x54c   : > { %2530 = vmatpush3.bf16.msra.mxu1 %v2859_v26 }
 0x54f   : > { %2421 = vmatmul.mubr.msk.f32.vlgmr.msra.gmra.mrb[16].mxu1 %vm356_vm1, %v1642_v23 }
 0x61a   : > { %v1722_v25 = vpop.f32.mrb[14].mxu1  ;;  %v1799_v27 = vpop.f32.mrb[16].mxu0 }
 0x61b   : > { %v1726_v28 = vadd.f32 %v2122_v24, %v1722_v25  ;;  %v2400_v30 = vpop.f32.mrb[15].mxu1  ;;  %v2411_v31 = vpop.f32.mrb[17].mxu0  ;;  %v1803_v33 = vadd.f32 %v2123_v29, %v1799_v27 }
 0x61d   : > { %v2126_v32 = vmul.f32 -1.442695, %v1726_v28  ;;  %v2128_v21 = vmul.f32 -1.442695, %v1803_v33 }
 0x61f   : > { %2629 = vpow2.f32 %v2126_v32 }
 0x620   : > { %2631 = vpow2.f32 %v2128_v21 }
 0x622   : > { %v1876_v1 = vpop.f32.mrb[16].mxu1 }
 0x623   : > { %v2422_v34 = vpop.f32.mrb[17].mxu1  ;;  %v1877_v37 = vadd.f32 %v2895_v49, %v1876_v1 }
 0x629   : > { %v2630_v0 = vpop.eup %2629 }
 0x62a   : > { %v1730_v26 = vadd.f32 1.0, %v2630_v0  ;;  %v2632_v35 = vpop.eup %2631 }
 0x62b   : > { %v1807_v36 = vadd.f32 1.0, %v2632_v35 }
 0x62c   : > { %2633 = vrcp.f32 %v1730_v26 }
 0x62d   : > { %2635 = vrcp.f32 %v1807_v36 }
 0x636   : > { %v2634_v38 = vpop.eup %2633 }
 0x637   : > { %v1880_v40 = vmul.f32 %v2634_v38, %v1877_v37  ;;  %v2636_v42 = vpop.eup %2635 }
 0x638   : > { %v1883_v43 = vsub.f32 1.0, %v2636_v42  ;;  %v1885_v46 = vmul.f32 %v2636_v42, %v1642_v23 }
 0x639   : > { %v1881_v41 = vadd.f32 %v2124_v39, %v1880_v40 }
 0x63b   : > { %2637 = vtanh.f32 %v1881_v41 }
 0x645   : > { %v2638_v44 = vpop.eup %2637 }
 0x646   : > { %v1884_v45 = vmul.f32 %v2638_v44, %v1883_v43 }
 0x648   : > { %v1886_v47 = vadd.f32 %v1885_v46, %v1884_v45 }
 0x64a   : > { %v1892_v49 = vmul.f32 %v1890_v48, %v1886_v47 }
 0x64c   : > { %v1900_v52 = vadd.f32 %v1899_v51, %v1892_v49  ;;  %2130 = vst.msk [vmem:[%s2905_s18 + $0xa] sm:$0x3] %vm611_vm2, %v1892_v49 }
 0x64e   : > { %1903 = vst.msk [vmem:[%s306_s20] sm:$0x3] %vm611_vm2, %v1900_v52 }
 0x64f   : > { %2652 = shalt.err (!%p2649_p3)
}
 0x650   : > { %s2653_s16 = scalar_lea.hbm %s3036_s10, 32  ;;  %s2657_s9 = scalar_lea.hbm %s3085_s6, 64 }
 0x651   : > { %p2654_p4 = scmp.ne.s32.totalorder %s3036_s10, %s2653_s16  ;;  %p2658_p9 = scmp.lt.u32.totalorder %s3036_s10, %s3085_s6 }
 0x652   : > { %p2659_p10 = scmp.lt.u32.totalorder %s2657_s9, %s2653_s16  ;;  %p2661_p12 = scmp.lt.u32.totalorder %s2653_s16, %s3036_s10 }
 0x653   : > { %p2655_p7 = pnand %p2654_p4, %p2781_p5 }
 0x654   : > { %p2660_p11 = por %p2659_p10, %p2658_p9 }
 0x655   : > { %p2656_p8 = pneg %p2655_p7 }
 0x656   : > { %p2662_p13 = por %p2661_p12, %p2660_p11 }
 0x658   : > { %p2663_p0 = pnand %p2662_p13, %p2656_p8 }
 0x65a   : > { %2666 = shalt.err (!%p2663_p0)
}
 0x65b   : > { %2534 = dma.vmem_to_hbm [thread:$0]  (%p2781_p5), %s3038_s26, 32, %s3036_s10, %s1910_s25  }
 0x65c PF: > { %p2540_p1 = scmp.ge.s32.totalorder %s2701_s24, 2  ;;  %s1946_s20 = sand.u32 1, %s2689_s21  }
 0x65d   : > { %s1947_s28 = scalar_lea.sflag [#allocation3], %s1946_s20 }
 0x65e   : > { %p2537_p2 = pnand %p2540_p1, %p2785_p6 }
 0x660   : > { %2684 = dma.done.wait (!%p2537_p2), %s1947_s28, 32  }
 0x661   : > { %2686 = vsyncadd (!%p2537_p2), %s1947_s28, 4294967264  ;;  %p17_p3 = scmp.ge.s32.totalorder %s2768_s27, 4   ;;  %s3088_s21 = smov %s2693_s22 }
 0x662   : > { %s3089_s22 = smov %s2697_s23  ;;  %s3090_s23 = smov %s2779_s30 }
 0x663   : > { %s3091_s24 = smov %s2768_s27  ;;  %19 = sbr.rel (!%p17_p3) target bundleno = 3 (0x3), region = 128 }
 0x66a   :  { %1952 = vsyncpa [#allocation3], 1 }
 0x66b   :  { %1954 = vsyncpa [#allocation3 + $0x1], 1 }

// kernel: _lambda_.5
= control target key start
LH: loop header
LB: loop body
LE: loop exit
PB: predicated region body
PF: predicated region fallthrough
CT: control target
= control target key end

     0   :  { %s2634_s21 = smov 0   ;;  %s2891_s0 = inlined_call_operand.vmem [shape: f32[2,18,2,32], index: 0, kind: input, shape index: {}]   ;;  %s2892_s1 = inlined_call_operand.vmem [shape: f32[2,6,2,1], index: 1, kind: input, shape index: {}]   ;;  %s2893_s2 = inlined_call_operand.vmem [shape: f32[2,2,32], index: 2, kind: input, shape index: {}]   ;;  %s2894_s3 = inlined_call_operand.vmem [shape: f32[2,3,32,32], index: 3, kind: input, shape index: {}]   ;;  %s2895_s4 = inlined_call_operand.vmem [shape: f32[2,1,32], index: 4, kind: input, shape index: {}]   ;;  %s2896_s5 = inlined_call_operand.vmem [shape: f32[2,6,2,32], index: 5, kind: output, shape index: {0}]   ;;  %s2897_s6 = inlined_call_operand.vmem [shape: f32[2,2,32], index: 6, kind: output, shape index: {1}]  }
   0x1 LB: > { %s2035_s22 = sadd.s32 4294967295, %s2593_s21   ;;  %p2039_p0 = scmp.ge.s32.totalorder %s2593_s21, 1  ;;  %s2593_s21 = sphi %s2634_s21, %s17_s21  }
   0x2   : > { %p252_p1 = scmp.lt.s32.totalorder %s2593_s21, 3 }
   0x4   : > { %p253_p2 = pnand %p2039_p0, %p252_p1 }
   0x5   : > { %p303_p3 = scmp.lt.s32.totalorder (!%p253_p2), %s2035_s22, 1  ;;  %v2595_v0 = vmov (!%p253_p2), 0.0|0.0   ;;  %vm2596_vm0 = vmmov (!%p253_p2), 0   ;;  %v2597_v1 = vmov (!%p253_p2), 0.0   ;;  %v2598_v2 = vmov (!%p253_p2), 0  }
   0x6   : > { %256 = sbr.rel (%p253_p2) target bundleno = 1606 (0x646), region = 40  ;;  %2402 = vmatprep.subr.bf16.mxu0 (!%p253_p2), %v2595_v0  ;;  %2212 = vmatprep.mubr.msk.f32.mxu0 (!%p253_p2), %vm2596_vm0, %v2597_v1  ;;  %vm356_vm1 = vcmask (!%p253_p2), 261120   ;;  %vm611_vm2 = vcmask (!%p253_p2), 254976  }
   0x7   : > { %2408 = vmatprep.subr.bf16.mxu1 (!%p253_p2), %v2595_v0  ;;  %2223 = vmatprep.mubr.msk.f32.mxu1 (!%p253_p2), %vm2596_vm0, %v2597_v1 }
   0x8   : > { %2525 = vset.pattern.permute.xlu0 (!%p253_p2), %v2598_v2  ;;  %2526 = vset.pattern.permute.xlu1 (!%p253_p2), %v2598_v2 }
   0xd   : > { %s2899_s22 = smov (!%p303_p3, %s2035_s22), 1 }
   0xe   : > { %s2512_s23 = smul.u32 96, %s2899_s22  ;;  %s2042_s28 = sshll.u32 %s2899_s22, 1 }
   0xf   : > { %s2511_s27 = smul.u32 12, %s2899_s22  ;;  %s316_s10 = scalar_lea.vmem %s2893_s2, %s2042_s28 }
  0x10   : > { %s2654_s26 = scalar_lea.vmem %s2894_s3, %s2512_s23  ;;  %v2695_v20 = vld [vmem:[%s316_s10] sm:$0x3]  ;;  %s2510_s11 = smul.u32 36, %s2899_s22 }
  0x11   : > { %v334_v3 = vld [vmem:[%s2654_s26] sm:$0xff]  ;;  %v335_v4 = vld [vmem:[%s2654_s26 + $0x8] sm:$0xff]  ;;  %v336_v5 = vld [vmem:[%s2654_s26 + $0x10] sm:$0xff]  ;;  %s2671_s7 = scalar_lea.vmem %s2892_s1, %s2511_s27  ;;  %s324_s17 = scalar_lea.vmem %s2895_s4, %s2899_s22 }
  0x12   : > { %v2660_v6 = vpack.c.bf16 %v335_v4, %v334_v3  ;;  %v337_v7 = vld [vmem:[%s2654_s26 + $0x18] sm:$0xff]  ;;  %v2046_v8 = vld [vmem:[%s2654_s26 + $0x20] sm:$0xff]  ;;  %v2047_v9 = vld [vmem:[%s2654_s26 + $0x28] sm:$0xff]  ;;  %s2738_s14 = scalar_lea.vmem %s2891_s0, %s2510_s11  ;;  %s2756_s20 = scalar_lea.vmem %s2896_s5, %s2511_s27 }
  0x13   : > { %v2673_v10 = vpack.c.bf16 %v2047_v9, %v2046_v8  ;;  %v2048_v11 = vld [vmem:[%s2654_s26 + $0x30] sm:$0xff]  ;;  %v2049_v12 = vld [vmem:[%s2654_s26 + $0x38] sm:$0xff]  ;;  %v2678_v13 = vpack.c.bf16 %v337_v7, %v336_v5  ;;  %v2050_v15 = vld [vmem:[%s2654_s26 + $0x40] sm:$0xff]  ;;  %s333_s25 = scalar_lea.vmem %s2897_s6, %s2042_s28 }
  0x14   : > { %2404 = vmatpush3.bf16.msra.mxu0 %v2660_v6  ;;  %v2687_v14 = vpack.c.bf16 %v2049_v12, %v2048_v11  ;;  %v2051_v16 = vld [vmem:[%s2654_s26 + $0x48] sm:$0xff]  ;;  %v350_v17 = vld [vmem:[%s2671_s7] sm:$0x3]  ;;  %v2062_v19 = vld [vmem:[%s2671_s7 + $0x2] sm:$0x3] }
  0x15   : > { %2405 = vmatprep.subr.bf16.mxu0 %v2595_v0  ;;  %2410 = vmatpush3.bf16.msra.mxu1 %v2673_v10  ;;  %v603_v18 = vsub.f32 1.0, %v350_v17  ;;  %v2697_v21 = vpack.c.bf16 %v2051_v16, %v2050_v15  ;;  %v2052_v22 = vld [vmem:[%s2654_s26 + $0x50] sm:$0xff]  ;;  %v2053_v23 = vld [vmem:[%s2654_s26 + $0x58] sm:$0xff]  ;;  %v861_v24 = vsub.f32 1.0, %v2062_v19  ;;  %v2072_v25 = vld [vmem:[%s2671_s7 + $0x4] sm:$0x3] }
  0x16   : > { %2411 = vmatprep.subr.bf16.mxu1 %v2595_v0  ;;  %599 = vperm.xlu0 %2525, %v350_v17   ;;  %v2710_v26 = vpack.c.bf16 %v2053_v23, %v2052_v22  ;;  %v1119_v27 = vsub.f32 1.0, %v2072_v25  ;;  %v2082_v28 = vld [vmem:[%s2671_s7 + $0x6] sm:$0x3]  ;;  %v2092_v30 = vld [vmem:[%s2671_s7 + $0x8] sm:$0x3] }
  0x17   : > { %857 = vperm.xlu1 %2526, %v2062_v19   ;;  %v1377_v29 = vsub.f32 1.0, %v2082_v28  ;;  %v1635_v31 = vsub.f32 1.0, %v2092_v30  ;;  %v2102_v32 = vld [vmem:[%s2671_s7 + $0xa] sm:$0x3]  ;;  %v351_v34 = vld [vmem:[%s2738_s14] sm:$0x3] }
  0x18   : > { %2407 = vmatpush3.bf16.msra.mxu0 %v2678_v13  ;;  %v1893_v33 = vsub.f32 1.0, %v2102_v32  ;;  %v2054_v35 = vld [vmem:[%s2738_s14 + $0x2] sm:$0x3]  ;;  %v2746_v49 = vld [vmem:[%s324_s17] ss:$0 sm:$0xff] }
  0x19   : > { %2413 = vmatpush3.bf16.msra.mxu1 %v2687_v14  ;;  %2414 = vmatprep.subr.bf16.mxu0 %v2595_v0  ;;  %v2055_v53 = vld [vmem:[%s2738_s14 + $0x4] sm:$0x3]  ;;  %v2063_v5 = vld [vmem:[%s2738_s14 + $0x6] sm:$0x3]  ;;  %v2064_v11 = vld [vmem:[%s2738_s14 + $0x8] sm:$0x3] }
  0x1a   : > { %606 = vperm.xlu0 %2525, %v603_v18   ;;  %2420 = vmatprep.subr.bf16.mxu1 %v2595_v0 }
  0x1b   : > { %2213 = vmatmul.mubr.msk.f32.vlgmr.msra.gmra.mrb[0].mxu0 %vm356_vm1, %v2695_v20  ;;  %864 = vperm.xlu1 %2526, %v861_v24  }
  0x1c   : > { %2224 = vmatmul.mubr.msk.f32.vlgmr.msra.gmra.mrb[0].mxu1 %vm356_vm1, %v2695_v20  ;;  %2416 = vmatpush3.bf16.msra.mxu0 %v2697_v21 }
  0x1d   : > { %2417 = vmatprep.subr.bf16.mxu0 %v2595_v0  ;;  %2234 = vmatprep.mubr.msk.f32.mxu0 %vm2596_vm0, %v2597_v1 }
  0x1e   : > { %1115 = vperm.xlu0 %2525, %v2072_v25   ;;  %2422 = vmatpush3.bf16.msra.mxu1 %v2660_v6 }
  0x1f   : > { %2245 = vmatprep.mubr.msk.f32.mxu1 %vm2596_vm0, %v2597_v1  ;;  %2423 = vmatprep.subr.bf16.mxu1 %v2595_v0 }
  0x20   : > { %2419 = vmatpush3.bf16.msra.mxu0 %v2710_v26  ;;  %1122 = vperm.xlu1 %2526, %v1119_v27  }
  0x21   : > { %2426 = vmatprep.subr.bf16.mxu0 %v2595_v0 }
  0x22   : > { %1373 = vperm.xlu0 %2525, %v2082_v28   ;;  %2425 = vmatpush3.bf16.msra.mxu1 %v2678_v13 }
  0x23   : > { %2235 = vmatmul.mubr.msk.f32.vlgmr.msra.gmra.mrb[2].mxu0 %vm356_vm1, %v2695_v20  ;;  %2432 = vmatprep.subr.bf16.mxu1 %v2595_v0 }
  0x24   : > { %2428 = vmatpush3.bf16.msra.mxu0 %v2673_v10  ;;  %2256 = vmatprep.mubr.msk.f32.mxu0 %vm2596_vm0, %v2597_v1 }
  0x25   : > { %2429 = vmatprep.subr.bf16.mxu0 %v2595_v0  ;;  %1380 = vperm.xlu1 %2526, %v1377_v29   ;;  %v2065_v29 = vld [vmem:[%s2738_s14 + $0xa] sm:$0x3] }
  0x26   : > { %1631 = vperm.xlu0 %2525, %v2092_v30  }
  0x28   : > { %2431 = vmatpush3.bf16.msra.mxu0 %v2687_v14 }
  0x29   : > { %2438 = vmatprep.subr.bf16.mxu0 %v2595_v0  ;;  %1638 = vperm.xlu1 %2526, %v1635_v31  }
  0x2a   : > { %1889 = vperm.xlu0 %2525, %v2102_v32  }
  0x2d   : > { %1896 = vperm.xlu1 %2526, %v1893_v33  }
  0x95   : > { %v600_v58 = vpop.permute.xlu0 %599 }
  0x96   : > { %v858_v33 = vpop.permute.xlu1 %857 }
  0x99   : > { %v607_v63 = vpop.permute.xlu0 %606 }
  0x9a   : > { %v609_v3 = vmul.f32 %v607_v63, %v2695_v20 }
  0xee   : > { %v426_v36 = vpop.f32.mrb[0].mxu0 }
  0xef   : > { %v430_v37 = vadd.f32 %v426_v36, %v351_v34  ;;  %v2214_v38 = vpop.f32.mrb[1].mxu0  ;;  %v503_v39 = vpop.f32.mrb[0].mxu1 }
  0xf0   : > { %v507_v40 = vadd.f32 %v2054_v35, %v503_v39  ;;  %v2225_v41 = vpop.f32.mrb[1].mxu1  ;;  %v865_v38 = vpop.permute.xlu1 %864 }
  0xf1   : > { %v2057_v42 = vmul.f32 -1.442695, %v430_v37 }
  0xf2   : > { %v2059_v43 = vmul.f32 -1.442695, %v507_v40 }
  0xf3   : > { %2527 = vpow2.f32 %v2057_v42 }
  0xf4   : > { %2529 = vpow2.f32 %v2059_v43  ;;  %v2073_v43 = vld [vmem:[%s2738_s14 + $0xc] sm:$0x3] }
  0xf6   : > { %v586_v44 = vpop.f32.mrb[2].mxu0 }
  0xf7   : > { %v2236_v45 = vpop.f32.mrb[3].mxu0  ;;  %v587_v51 = vadd.f32 %v2746_v49, %v586_v44 }
  0xfd   : > { %v2528_v46 = vpop.eup %2527 }
  0xfe   : > { %v434_v47 = vadd.f32 1.0, %v2528_v46  ;;  %v2530_v48 = vpop.eup %2529 }
  0xff   : > { %v511_v50 = vadd.f32 1.0, %v2530_v48 }
 0x100   : > { %2531 = vrcp.f32 %v434_v47  ;;  %v2074_v47 = vld [vmem:[%s2738_s14 + $0xe] sm:$0x3] }
 0x101   : > { %2533 = vrcp.f32 %v511_v50 }
 0x10a   : > { %v2532_v52 = vpop.eup %2531 }
 0x10b   : > { %v590_v54 = vmul.f32 %v2532_v52, %v587_v51  ;;  %v2534_v56 = vpop.eup %2533 }
 0x10c   : > { %v593_v57 = vsub.f32 1.0, %v2534_v56  ;;  %v595_v61 = vmul.f32 %v2534_v56, %v2695_v20 }
 0x10d   : > { %v591_v55 = vadd.f32 %v2055_v53, %v590_v54 }
 0x10f   : > { %2535 = vtanh.f32 %v591_v55 }
 0x119   : > { %v2536_v59 = vpop.eup %2535 }
 0x11a   : > { %v594_v60 = vmul.f32 %v2536_v59, %v593_v57 }
 0x11c   : > { %v596_v62 = vadd.f32 %v595_v61, %v594_v60 }
 0x11e   : > { %v602_v2 = vmul.f32 %v600_v58, %v596_v62  ;;  %v2075_v62 = vld [vmem:[%s2738_s14 + $0x10] sm:$0x3] }
 0x120   : > { %v610_v4 = vadd.f32 %v609_v3, %v602_v2  ;;  %612 = vst.msk [vmem:[%s2756_s20] sm:$0x3] %vm611_vm2, %v602_v2 }
 0x122   : > { %2246 = vmatmul.mubr.msk.f32.vlgmr.msra.gmra.mrb[2].mxu1 %vm356_vm1, %v610_v4  ;;  %2257 = vmatmul.mubr.msk.f32.vlgmr.msra.gmra.mrb[4].mxu0 %vm356_vm1, %v610_v4  ;;  %v867_v40 = vmul.f32 %v865_v38, %v610_v4  ;;  %v2085_v38 = vld [vmem:[%s2738_s14 + $0x16] sm:$0x3] }
 0x123   : > { %2434 = vmatpush3.bf16.msra.mxu1 %v2697_v21  ;;  %2267 = vmatprep.mubr.msk.f32.mxu1 %vm2596_vm0, %v2597_v1 }
 0x124   : > { %2435 = vmatprep.subr.bf16.mxu1 %v2595_v0  ;;  %2440 = vmatpush3.bf16.msra.mxu0 %v2660_v6 }
 0x125   : > { %2441 = vmatprep.subr.bf16.mxu0 %v2595_v0  ;;  %2278 = vmatprep.mubr.msk.f32.mxu0 %vm2596_vm0, %v2597_v1 }
 0x127   : > { %2437 = vmatpush3.bf16.msra.mxu1 %v2710_v26 }
 0x128   : > { %2444 = vmatprep.subr.bf16.mxu1 %v2595_v0  ;;  %2443 = vmatpush3.bf16.msra.mxu0 %v2678_v13 }
 0x129   : > { %2450 = vmatprep.subr.bf16.mxu0 %v2595_v0 }
 0x12a   : > { %2268 = vmatmul.mubr.msk.f32.vlgmr.msra.gmra.mrb[4].mxu1 %vm356_vm1, %v610_v4 }
 0x12b   : > { %2446 = vmatpush3.bf16.msra.mxu1 %v2673_v10  ;;  %2289 = vmatprep.mubr.msk.f32.mxu1 %vm2596_vm0, %v2597_v1 }
 0x12c   : > { %2447 = vmatprep.subr.bf16.mxu1 %v2595_v0 }
 0x12f   : > { %2449 = vmatpush3.bf16.msra.mxu1 %v2687_v14 }
 0x130   : > { %2456 = vmatprep.subr.bf16.mxu1 %v2595_v0 }
 0x1f5   : > { %v690_v7 = vpop.f32.mrb[2].mxu1  ;;  %v767_v8 = vpop.f32.mrb[4].mxu0 }
 0x1f6   : > { %v694_v9 = vadd.f32 %v2063_v5, %v690_v7  ;;  %v2247_v12 = vpop.f32.mrb[3].mxu1  ;;  %v2258_v15 = vpop.f32.mrb[5].mxu0  ;;  %v771_v17 = vadd.f32 %v2064_v11, %v767_v8 }
 0x1f7   : > { %v1116_v11 = vpop.permute.xlu0 %1115  ;;  %v1123_v12 = vpop.permute.xlu1 %1122 }
 0x1f8   : > { %v2067_v16 = vmul.f32 -1.442695, %v694_v9  ;;  %v2069_v18 = vmul.f32 -1.442695, %v771_v17 }
 0x1fa   : > { %2537 = vpow2.f32 %v2067_v16 }
 0x1fb   : > { %2539 = vpow2.f32 %v2069_v18  ;;  %v2083_v18 = vld [vmem:[%s2738_s14 + $0x12] sm:$0x3] }
 0x1fd   : > { %v844_v19 = vpop.f32.mrb[4].mxu1 }
 0x1fe   : > { %v2269_v20 = vpop.f32.mrb[5].mxu1  ;;  %v845_v27 = vadd.f32 %v2746_v49, %v844_v19 }
 0x204   : > { %v2538_v22 = vpop.eup %2537 }
 0x205   : > { %v698_v23 = vadd.f32 1.0, %v2538_v22  ;;  %v2540_v24 = vpop.eup %2539 }
 0x206   : > { %v775_v25 = vadd.f32 1.0, %v2540_v24 }
 0x207   : > { %2541 = vrcp.f32 %v698_v23  ;;  %v2084_v23 = vld [vmem:[%s2738_s14 + $0x14] sm:$0x3] }
 0x208   : > { %2543 = vrcp.f32 %v775_v25 }
 0x211   : > { %v2542_v28 = vpop.eup %2541 }
 0x212   : > { %v848_v30 = vmul.f32 %v2542_v28, %v845_v27  ;;  %v2544_v32 = vpop.eup %2543 }
 0x213   : > { %v851_v34 = vsub.f32 1.0, %v2544_v32  ;;  %v853_v36 = vmul.f32 %v2544_v32, %v610_v4 }
 0x214   : > { %v849_v31 = vadd.f32 %v2065_v29, %v848_v30 }
 0x216   : > { %2545 = vtanh.f32 %v849_v31 }
 0x220   : > { %v2546_v35 = vpop.eup %2545 }
 0x221   : > { %v852_v37 = vmul.f32 %v2546_v35, %v851_v34 }
 0x223   : > { %v854_v39 = vadd.f32 %v853_v36, %v852_v37 }
 0x225   : > { %v860_v41 = vmul.f32 %v858_v33, %v854_v39 }
 0x227   : > { %v868_v42 = vadd.f32 %v867_v40, %v860_v41  ;;  %2071 = vst.msk [vmem:[%s2756_s20 + $0x2] sm:$0x3] %vm611_vm2, %v860_v41 }
 0x229   : > { %2279 = vmatmul.mubr.msk.f32.vlgmr.msra.gmra.mrb[6].mxu0 %vm356_vm1, %v868_v42  ;;  %2290 = vmatmul.mubr.msk.f32.vlgmr.msra.gmra.mrb[6].mxu1 %vm356_vm1, %v868_v42  ;;  %v1125_v15 = vmul.f32 %v1123_v12, %v868_v42 }
 0x22a   : > { %2452 = vmatpush3.bf16.msra.mxu0 %v2697_v21  ;;  %2300 = vmatprep.mubr.msk.f32.mxu0 %vm2596_vm0, %v2597_v1 }
 0x22b   : > { %2453 = vmatprep.subr.bf16.mxu0 %v2595_v0  ;;  %2458 = vmatpush3.bf16.msra.mxu1 %v2660_v6 }
 0x22c   : > { %2459 = vmatprep.subr.bf16.mxu1 %v2595_v0  ;;  %2311 = vmatprep.mubr.msk.f32.mxu1 %vm2596_vm0, %v2597_v1 }
 0x22e   : > { %2455 = vmatpush3.bf16.msra.mxu0 %v2710_v26 }
 0x22f   : > { %2462 = vmatprep.subr.bf16.mxu0 %v2595_v0  ;;  %2461 = vmatpush3.bf16.msra.mxu1 %v2678_v13 }
 0x230   : > { %2468 = vmatprep.subr.bf16.mxu1 %v2595_v0 }
 0x231   : > { %2301 = vmatmul.mubr.msk.f32.vlgmr.msra.gmra.mrb[8].mxu0 %vm356_vm1, %v868_v42 }
 0x232   : > { %2464 = vmatpush3.bf16.msra.mxu0 %v2673_v10  ;;  %2322 = vmatprep.mubr.msk.f32.mxu0 %vm2596_vm0, %v2597_v1 }
 0x233   : > { %2465 = vmatprep.subr.bf16.mxu0 %v2595_v0 }
 0x236   : > { %2467 = vmatpush3.bf16.msra.mxu0 %v2687_v14 }
 0x237   : > { %2474 = vmatprep.subr.bf16.mxu0 %v2595_v0 }
 0x2fc   : > { %v948_v44 = vpop.f32.mrb[6].mxu0  ;;  %v1025_v45 = vpop.f32.mrb[6].mxu1 }
 0x2fd   : > { %v952_v46 = vadd.f32 %v2073_v43, %v948_v44  ;;  %v2280_v48 = vpop.f32.mrb[7].mxu0  ;;  %v2291_v50 = vpop.f32.mrb[7].mxu1  ;;  %v1029_v52 = vadd.f32 %v2074_v47, %v1025_v45 }
 0x2fe   : > { %v1374_v47 = vpop.permute.xlu0 %1373  ;;  %v1381_v48 = vpop.permute.xlu1 %1380 }
 0x2ff   : > { %v2077_v51 = vmul.f32 -1.442695, %v952_v46  ;;  %v2079_v53 = vmul.f32 -1.442695, %v1029_v52 }
 0x301   : > { %2547 = vpow2.f32 %v2077_v51 }
 0x302   : > { %2549 = vpow2.f32 %v2079_v53 }
 0x304   : > { %v1102_v54 = vpop.f32.mrb[8].mxu0 }
 0x305   : > { %v2302_v55 = vpop.f32.mrb[9].mxu0  ;;  %v1103_v60 = vadd.f32 %v2746_v49, %v1102_v54 }
 0x30b   : > { %v2548_v56 = vpop.eup %2547 }
 0x30c   : > { %v956_v57 = vadd.f32 1.0, %v2548_v56  ;;  %v2550_v58 = vpop.eup %2549  ;;  %v2094_v56 = vld [vmem:[%s2738_s14 + $0x1a] sm:$0x3] }
 0x30d   : > { %v1033_v59 = vadd.f32 1.0, %v2550_v58 }
 0x30e   : > { %2551 = vrcp.f32 %v956_v57 }
 0x30f   : > { %2553 = vrcp.f32 %v1033_v59 }
 0x318   : > { %v2552_v61 = vpop.eup %2551 }
 0x319   : > { %v1106_v63 = vmul.f32 %v2552_v61, %v1103_v60  ;;  %v2554_v3 = vpop.eup %2553 }
 0x31a   : > { %v1109_v4 = vsub.f32 1.0, %v2554_v3  ;;  %v1111_v7 = vmul.f32 %v2554_v3, %v868_v42 }
 0x31b   : > { %v1107_v2 = vadd.f32 %v2075_v62, %v1106_v63 }
 0x31d   : > { %2555 = vtanh.f32 %v1107_v2 }
 0x327   : > { %v2556_v5 = vpop.eup %2555 }
 0x328   : > { %v1110_v8 = vmul.f32 %v2556_v5, %v1109_v4  ;;  %v2095_v5 = vld [vmem:[%s2738_s14 + $0x1c] sm:$0x3] }
 0x32a   : > { %v1112_v9 = vadd.f32 %v1111_v7, %v1110_v8 }
 0x32c   : > { %v1118_v16 = vmul.f32 %v1116_v11, %v1112_v9 }
 0x32e   : > { %v1126_v17 = vadd.f32 %v1125_v15, %v1118_v16  ;;  %2081 = vst.msk [vmem:[%s2756_s20 + $0x4] sm:$0x3] %vm611_vm2, %v1118_v16 }
 0x330   : > { %2312 = vmatmul.mubr.msk.f32.vlgmr.msra.gmra.mrb[8].mxu1 %vm356_vm1, %v1126_v17  ;;  %2323 = vmatmul.mubr.msk.f32.vlgmr.msra.gmra.mrb[10].mxu0 %vm356_vm1, %v1126_v17  ;;  %v1383_v51 = vmul.f32 %v1381_v48, %v1126_v17 }
 0x331   : > { %2470 = vmatpush3.bf16.msra.mxu1 %v2697_v21  ;;  %2333 = vmatprep.mubr.msk.f32.mxu1 %vm2596_vm0, %v2597_v1 }
 0x332   : > { %2471 = vmatprep.subr.bf16.mxu1 %v2595_v0  ;;  %2476 = vmatpush3.bf16.msra.mxu0 %v2660_v6 }
 0x333   : > { %2477 = vmatprep.subr.bf16.mxu0 %v2595_v0  ;;  %2344 = vmatprep.mubr.msk.f32.mxu0 %vm2596_vm0, %v2597_v1 }
 0x335   : > { %2473 = vmatpush3.bf16.msra.mxu1 %v2710_v26 }
 0x336   : > { %2480 = vmatprep.subr.bf16.mxu1 %v2595_v0  ;;  %2479 = vmatpush3.bf16.msra.mxu0 %v2678_v13 }
 0x337   : > { %2486 = vmatprep.subr.bf16.mxu0 %v2595_v0 }
 0x338   : > { %2334 = vmatmul.mubr.msk.f32.vlgmr.msra.gmra.mrb[10].mxu1 %vm356_vm1, %v1126_v17 }
 0x339   : > { %2482 = vmatpush3.bf16.msra.mxu1 %v2673_v10  ;;  %2355 = vmatprep.mubr.msk.f32.mxu1 %vm2596_vm0, %v2597_v1 }
 0x33a   : > { %2483 = vmatprep.subr.bf16.mxu1 %v2595_v0 }
 0x33d   : > { %2485 = vmatpush3.bf16.msra.mxu1 %v2687_v14 }
 0x33e   : > { %2492 = vmatprep.subr.bf16.mxu1 %v2595_v0 }
 0x403   : > { %v1206_v19 = vpop.f32.mrb[8].mxu1  ;;  %v1283_v20 = vpop.f32.mrb[10].mxu0 }
 0x404   : > { %v1210_v22 = vadd.f32 %v2083_v18, %v1206_v19  ;;  %v2313_v24 = vpop.f32.mrb[9].mxu1  ;;  %v2324_v25 = vpop.f32.mrb[11].mxu0  ;;  %v1287_v28 = vadd.f32 %v2084_v23, %v1283_v20 }
 0x405   : > { %v1632_v18 = vpop.permute.xlu0 %1631  ;;  %v1639_v19 = vpop.permute.xlu1 %1638  ;;  %v2103_v24 = vld [vmem:[%s2738_s14 + $0x1e] sm:$0x3] }
 0x406   : > { %v2087_v27 = vmul.f32 -1.442695, %v1210_v22  ;;  %v2089_v29 = vmul.f32 -1.442695, %v1287_v28 }
 0x408   : > { %2557 = vpow2.f32 %v2087_v27 }
 0x409   : > { %2559 = vpow2.f32 %v2089_v29  ;;  %v2104_v29 = vld [vmem:[%s2738_s14 + $0x20] sm:$0x3]  ;;  %v1890_v48 = vpop.permute.xlu0 %1889 }
 0x40b   : > { %v1360_v30 = vpop.f32.mrb[10].mxu1 }
 0x40c   : > { %v2335_v31 = vpop.f32.mrb[11].mxu1  ;;  %v1361_v36 = vadd.f32 %v2746_v49, %v1360_v30 }
 0x412   : > { %v2558_v32 = vpop.eup %2557 }
 0x413   : > { %v1214_v33 = vadd.f32 1.0, %v2558_v32  ;;  %v2560_v34 = vpop.eup %2559 }
 0x414   : > { %v1291_v35 = vadd.f32 1.0, %v2560_v34 }
 0x415   : > { %2561 = vrcp.f32 %v1214_v33 }
 0x416   : > { %2563 = vrcp.f32 %v1291_v35 }
 0x41f   : > { %v2562_v37 = vpop.eup %2561 }
 0x420   : > { %v1364_v39 = vmul.f32 %v2562_v37, %v1361_v36  ;;  %v2564_v41 = vpop.eup %2563 }
 0x421   : > { %v1367_v42 = vsub.f32 1.0, %v2564_v41  ;;  %v1369_v44 = vmul.f32 %v2564_v41, %v1126_v17 }
 0x422   : > { %v1365_v40 = vadd.f32 %v2085_v38, %v1364_v39  ;;  %v2105_v39 = vld [vmem:[%s2738_s14 + $0x22] sm:$0x3] }
 0x424   : > { %2565 = vtanh.f32 %v1365_v40 }
 0x42e   : > { %v2566_v43 = vpop.eup %2565 }
 0x42f   : > { %v1368_v45 = vmul.f32 %v2566_v43, %v1367_v42 }
 0x431   : > { %v1370_v46 = vadd.f32 %v1369_v44, %v1368_v45 }
 0x433   : > { %v1376_v50 = vmul.f32 %v1374_v47, %v1370_v46 }
 0x435   : > { %v1384_v52 = vadd.f32 %v1383_v51, %v1376_v50  ;;  %2091 = vst.msk [vmem:[%s2756_s20 + $0x6] sm:$0x3] %vm611_vm2, %v1376_v50  ;;  %v1897_v50 = vpop.permute.xlu1 %1896 }
 0x437   : > { %2345 = vmatmul.mubr.msk.f32.vlgmr.msra.gmra.mrb[12].mxu0 %vm356_vm1, %v1384_v52  ;;  %2356 = vmatmul.mubr.msk.f32.vlgmr.msra.gmra.mrb[12].mxu1 %vm356_vm1, %v1384_v52  ;;  %v1641_v22 = vmul.f32 %v1639_v19, %v1384_v52 }
 0x438   : > { %2488 = vmatpush3.bf16.msra.mxu0 %v2697_v21  ;;  %2366 = vmatprep.mubr.msk.f32.mxu0 %vm2596_vm0, %v2597_v1 }
 0x439   : > { %2489 = vmatprep.subr.bf16.mxu0 %v2595_v0  ;;  %2494 = vmatpush3.bf16.msra.mxu1 %v2660_v6  ;;  %v2093_v6 = vld [vmem:[%s2738_s14 + $0x18] sm:$0x3] }
 0x43a   : > { %2495 = vmatprep.subr.bf16.mxu1 %v2595_v0  ;;  %2377 = vmatprep.mubr.msk.f32.mxu1 %vm2596_vm0, %v2597_v1 }
 0x43c   : > { %2491 = vmatpush3.bf16.msra.mxu0 %v2710_v26 }
 0x43d   : > { %2498 = vmatprep.subr.bf16.mxu0 %v2595_v0  ;;  %2497 = vmatpush3.bf16.msra.mxu1 %v2678_v13 }
 0x43e   : > { %2504 = vmatprep.subr.bf16.mxu1 %v2595_v0 }
 0x43f   : > { %2367 = vmatmul.mubr.msk.f32.vlgmr.msra.gmra.mrb[14].mxu0 %vm356_vm1, %v1384_v52 }
 0x440   : > { %2500 = vmatpush3.bf16.msra.mxu0 %v2673_v10  ;;  %2388 = vmatprep.mubr.msk.f32.mxu0 %vm2596_vm0, %v2597_v1 }
 0x441   : > { %2501 = vmatprep.subr.bf16.mxu0 %v2595_v0 }
 0x444   : > { %2503 = vmatpush3.bf16.msra.mxu0 %v2687_v14 }
 0x50a   : > { %v1464_v53 = vpop.f32.mrb[12].mxu0  ;;  %v1541_v54 = vpop.f32.mrb[12].mxu1 }
 0x50b   : > { %v1468_v55 = vadd.f32 %v2093_v6, %v1464_v53  ;;  %v2346_v57 = vpop.f32.mrb[13].mxu0  ;;  %v2357_v13 = vpop.f32.mrb[13].mxu1  ;;  %v1545_v59 = vadd.f32 %v2094_v56, %v1541_v54 }
 0x50d   : > { %v2097_v58 = vmul.f32 -1.442695, %v1468_v55  ;;  %v2099_v60 = vmul.f32 -1.442695, %v1545_v59 }
 0x50f   : > { %2567 = vpow2.f32 %v2097_v58 }
 0x510   : > { %2569 = vpow2.f32 %v2099_v60 }
 0x512   : > { %v1618_v10 = vpop.f32.mrb[14].mxu0 }
 0x513   : > { %v2368_v61 = vpop.f32.mrb[15].mxu0  ;;  %v1619_v3 = vadd.f32 %v2746_v49, %v1618_v10 }
 0x519   : > { %v2568_v62 = vpop.eup %2567 }
 0x51a   : > { %v1472_v63 = vadd.f32 1.0, %v2568_v62  ;;  %v2570_v2 = vpop.eup %2569 }
 0x51b   : > { %v1549_v14 = vadd.f32 1.0, %v2570_v2 }
 0x51c   : > { %2571 = vrcp.f32 %v1472_v63 }
 0x51d   : > { %2573 = vrcp.f32 %v1549_v14 }
 0x526   : > { %v2572_v4 = vpop.eup %2571 }
 0x527   : > { %v1622_v7 = vmul.f32 %v2572_v4, %v1619_v3  ;;  %v2574_v9 = vpop.eup %2573 }
 0x528   : > { %v1625_v11 = vsub.f32 1.0, %v2574_v9  ;;  %v1627_v15 = vmul.f32 %v2574_v9, %v1384_v52 }
 0x529   : > { %v1623_v8 = vadd.f32 %v2095_v5, %v1622_v7 }
 0x52b   : > { %2575 = vtanh.f32 %v1623_v8 }
 0x535   : > { %v2576_v12 = vpop.eup %2575 }
 0x536   : > { %v1626_v16 = vmul.f32 %v2576_v12, %v1625_v11 }
 0x538   : > { %v1628_v17 = vadd.f32 %v1627_v15, %v1626_v16 }
 0x53a   : > { %v1634_v20 = vmul.f32 %v1632_v18, %v1628_v17 }
 0x53c   : > { %v1642_v23 = vadd.f32 %v1641_v22, %v1634_v20  ;;  %2101 = vst.msk [vmem:[%s2756_s20 + $0x8] sm:$0x3] %vm611_vm2, %v1634_v20 }
 0x53e   : > { %2378 = vmatmul.mubr.msk.f32.vlgmr.msra.gmra.mrb[14].mxu1 %vm356_vm1, %v1642_v23  ;;  %2389 = vmatmul.mubr.msk.f32.vlgmr.msra.gmra.mrb[16].mxu0 %vm356_vm1, %v1642_v23  ;;  %v1899_v52 = vmul.f32 %v1897_v50, %v1642_v23 }
 0x53f   : > { %2506 = vmatpush3.bf16.msra.mxu1 %v2697_v21  ;;  %2399 = vmatprep.mubr.msk.f32.mxu1 %vm2596_vm0, %v2597_v1 }
 0x540   : > { %2507 = vmatprep.subr.bf16.mxu1 %v2595_v0 }
 0x543   : > { %2509 = vmatpush3.bf16.msra.mxu1 %v2710_v26 }
 0x546   : > { %2400 = vmatmul.mubr.msk.f32.vlgmr.msra.gmra.mrb[16].mxu1 %vm356_vm1, %v1642_v23 }
 0x611   : > { %v1722_v25 = vpop.f32.mrb[14].mxu1  ;;  %v1799_v27 = vpop.f32.mrb[16].mxu0 }
 0x612   : > { %v1726_v28 = vadd.f32 %v2103_v24, %v1722_v25  ;;  %v2379_v30 = vpop.f32.mrb[15].mxu1  ;;  %v2390_v31 = vpop.f32.mrb[17].mxu0  ;;  %v1803_v33 = vadd.f32 %v2104_v29, %v1799_v27 }
 0x614   : > { %v2107_v32 = vmul.f32 -1.442695, %v1726_v28  ;;  %v2109_v21 = vmul.f32 -1.442695, %v1803_v33 }
 0x616   : > { %2577 = vpow2.f32 %v2107_v32 }
 0x617   : > { %2579 = vpow2.f32 %v2109_v21 }
 0x619   : > { %v1876_v34 = vpop.f32.mrb[16].mxu1 }
 0x61a   : > { %v2401_v1 = vpop.f32.mrb[17].mxu1  ;;  %v1877_v37 = vadd.f32 %v2746_v49, %v1876_v34 }
 0x620   : > { %v2578_v0 = vpop.eup %2577 }
 0x621   : > { %v1730_v35 = vadd.f32 1.0, %v2578_v0  ;;  %v2580_v26 = vpop.eup %2579 }
 0x622   : > { %v1807_v36 = vadd.f32 1.0, %v2580_v26 }
 0x623   : > { %2581 = vrcp.f32 %v1730_v35 }
 0x624   : > { %2583 = vrcp.f32 %v1807_v36 }
 0x62d   : > { %v2582_v38 = vpop.eup %2581 }
 0x62e   : > { %v1880_v40 = vmul.f32 %v2582_v38, %v1877_v37  ;;  %v2584_v42 = vpop.eup %2583 }
 0x62f   : > { %v1883_v43 = vsub.f32 1.0, %v2584_v42  ;;  %v1885_v45 = vmul.f32 %v2584_v42, %v1642_v23 }
 0x630   : > { %v1881_v41 = vadd.f32 %v2105_v39, %v1880_v40 }
 0x632   : > { %2585 = vtanh.f32 %v1881_v41 }
 0x63c   : > { %v2586_v44 = vpop.eup %2585 }
 0x63d   : > { %v1884_v46 = vmul.f32 %v2586_v44, %v1883_v43 }
 0x63f   : > { %v1886_v47 = vadd.f32 %v1885_v45, %v1884_v46 }
 0x641   : > { %v1892_v51 = vmul.f32 %v1890_v48, %v1886_v47 }
 0x643   : > { %v1900_v49 = vadd.f32 %v1899_v52, %v1892_v51  ;;  %2111 = vst.msk [vmem:[%s2756_s20 + $0xa] sm:$0x3] %vm611_vm2, %v1892_v51 }
 0x645   : > { %1903 = vst.msk [vmem:[%s333_s25] sm:$0x3] %vm611_vm2, %v1900_v49 }
 0x646 PF: > { %s17_s21 = sadd.s32 1, %s2593_s21  }
 0x647   : > { %p14_p4 = scmp.ge.s32.totalorder %s17_s21, 4  }
 0x649   :  { %16 = sbr.rel (!%p14_p4) target bundleno = 1 (0x1), region = 123 }

// kernel: _lambda_.9
= control target key start
LH: loop header
LB: loop body
LE: loop exit
PB: predicated region body
PF: predicated region fallthrough
CT: control target
= control target key end

     0   :  { %v667_v0 = vmov 0.0   ;;  %vm32_vm0 = vcmask 261120   ;;  %vm668_vm1 = vmmov 0   ;;  %v669_v6 = vmov 0   ;;  %s791_s0 = inlined_call_operand.vmem [shape: f32[2,8,32], index: 0, kind: input, shape index: {}]   ;;  %s792_s1 = inlined_call_operand.vmem [shape: f32[8,32], index: 1, kind: input, shape index: {}]   ;;  %s793_s2 = inlined_call_operand.vmem [shape: f32[2,1,8], index: 2, kind: input, shape index: {}]   ;;  %s794_s4 = inlined_call_operand.vmem [shape: f32[64,32], index: 4, kind: input, shape index: {}]   ;;  %s795_s3 = inlined_call_operand.vmem [shape: f32[2,8,1], index: 3, kind: input, shape index: {}]   ;;  %s796_s5 = inlined_call_operand.vmem [shape: f32[1,32], index: 5, kind: input, shape index: {}]   ;;  %s797_s6 = inlined_call_operand.vmem [shape: f32[2,8,32], index: 6, kind: output, shape index: {}]  }
   0x1   :  { %590 = vmatprep.subr.mxu0 %v667_v0  ;;  %v23_v1 = vld [vmem:[%s791_s0] sm:$0xff]  ;;  %592 = vmatprep.mubr.msk.f32.mxu0 %vm668_vm1, %v667_v0  ;;  %v24_v3 = vld [vmem:[%s791_s0 + $0x8] sm:$0xff]  ;;  %v183_v7 = vlaneseq  ;;  %vm195_vm6 = vcmask 64512   ;;  %v370_v46 = vld [vmem:[%s794_s4 + $0x30] sm:$0xff] }
   0x2   :  { %v25_v2 = vld [vmem:[%s792_s1] sm:$0xff]  ;;  %595 = vmatprep.subr.mxu1 %v667_v0  ;;  %597 = vmatprep.mubr.msk.f32.mxu1 %vm668_vm1, %v667_v0  ;;  %v369_v35 = vld [vmem:[%s794_s4 + $0x28] sm:$0xff]  ;;  %v371_v47 = vld [vmem:[%s794_s4 + $0x38] sm:$0xff] }
   0x3   :  { %v715_v4 = vadd.f32 %v25_v2, %v23_v1  ;;  %v717_v5 = vadd.f32 %v25_v2, %v24_v3  ;;  %654 = vset.pattern.permute.xlu1 %v669_v6  ;;  %653 = vset.pattern.permute.xlu0 %v669_v6  ;;  %v28_v8 = vld [vmem:[%s793_s2] sm:$0x1]  ;;  %v29_v9 = vld [vmem:[%s793_s2 + $0x1] sm:$0x1]  ;;  %v184_v10 = vshrl.u32 %v183_v7, 7  ;;  %v365_v38 = vld [vmem:[%s794_s4 + $0x8] sm:$0xff]  ;;  %v636_v48 = vpack.c.bf16 %v371_v47, %v370_v46 }
   0x4   :  { %vm179_vm2 = vcmp.ne.f32.partialorder %v28_v8, 0.0  ;;  %vm180_vm3 = vcmp.ne.f32.partialorder %v29_v9, 0.0  ;;  %v368_v34 = vld [vmem:[%s794_s4 + $0x20] sm:$0xff]  ;;  %v366_v49 = vld [vmem:[%s794_s4 + $0x10] sm:$0xff]  ;;  %v367_v50 = vld [vmem:[%s794_s4 + $0x18] sm:$0xff] }
   0x5   :  { %591 = vmatpush3.xpose.msk.msra.mxu0 %vm32_vm0, %v715_v4  ;;  %596 = vmatpush3.xpose.msk.msra.mxu1 %vm32_vm0, %v717_v5  ;;  %v185_v11 = vsub.s32 0, %v184_v10  ;;  %v181_v12 = vsel %vm179_vm2, 1, %v669_v6  ;;  %v182_v13 = vsel %vm180_vm3, 1, %v669_v6  ;;  %v364_v36 = vld [vmem:[%s794_s4] sm:$0xff]  ;;  %v632_v37 = vpack.c.bf16 %v369_v35, %v368_v34  ;;  %v31_v52 = vld [vmem:[%s795_s3 + $0x8] sm:$0xff] }
   0x6   :  { %600 = vmatprep.subr.mxu0 %v667_v0  ;;  %605 = vmatprep.subr.mxu1 %v667_v0  ;;  %v640_v39 = vpack.c.bf16 %v365_v38, %v364_v36  ;;  %v644_v51 = vpack.c.bf16 %v367_v50, %v366_v49  ;;  %v30_v53 = vld [vmem:[%s795_s3] sm:$0xff]  ;;  %v540_v54 = vsub.f32 1.0, %v31_v52 }
   0x7   :  { %v186_v14 = vrot.slane %v181_v12, %v185_v11  ;;  %v190_v15 = vrot.slane %v182_v13, %v185_v11  ;;  %v539_v55 = vsub.f32 1.0, %v30_v53  ;;  %v569_v63 = vld [vmem:[%s796_s5] ss:$0 sm:$0xff] }
   0x8   :  { %593 = vmatmul.mubr.msk.f32.vlgmr.msra.gmra.mrb[0].mxu0 %vm32_vm0, %v715_v4  ;;  %598 = vmatmul.mubr.msk.f32.vlgmr.msra.gmra.mrb[0].mxu1 %vm32_vm0, %v717_v5 }
   0x9   :  { %601 = vmatpush3.msra.mxu0 %v715_v4  ;;  %602 = vmatprep.mubr.msk.f32.mxu0 %vm668_vm1, %v667_v0  ;;  %vm191_vm4 = vcmp.eq.s32.totalorder %v186_v14, 1  ;;  %vm192_vm5 = vcmp.eq.s32.totalorder %v190_v15, 1 }
   0xa   :  { %606 = vmatpush3.msra.mxu1 %v717_v5  ;;  %607 = vmatprep.mubr.msk.f32.mxu1 %vm668_vm1, %v667_v0 }
   0xb   :  { %633 = vmatprep.subr.bf16.mxu1 %v632_v37  ;;  %641 = vmatprep.subr.bf16.mxu0 %v640_v39 }
  0xdb   :  { %v102_v16 = vpop.f32.mrb[0].mxu0  ;;  %v175_v17 = vpop.f32.mrb[0].mxu1 }
  0xdc   :  { %v193_v18 = vsel %vm191_vm4, -1e+30, %v102_v16  ;;  %v594_v19 = vpop.f32.mrb[1].mxu0  ;;  %v194_v20 = vsel %vm192_vm5, -1e+30, %v175_v17  ;;  %v599_v21 = vpop.f32.mrb[1].mxu1 }
  0xdd   :  { %v196_v22 = vsel %vm195_vm6, %v193_v18, -inf  ;;  %v199_v23 = vsel %vm195_vm6, %v194_v20, -inf }
  0xde   :  { %197 = vmax.xlane.f32.xlu0 %v196_v22 }
  0xe2   :  { %200 = vmax.xlane.f32.xlu0 %v199_v23 }
  0xf8   :  { %543 = vperm.xlu0 %653, %v539_v55  }
 0x16b   :  { %v198_v24 = vpop.xlane.xlu0 %197 }
 0x16c   :  { %v202_v25 = vsub.f32 %v193_v18, %v198_v24 }
 0x16e   :  { %v204_v26 = vmul.f32 1.442695, %v202_v25 }
 0x16f   :  { %v201_v27 = vpop.xlane.xlu0 %200 }
 0x170   :  { %655 = vpow2.f32 %v204_v26  ;;  %v203_v28 = vsub.f32 %v194_v20, %v201_v27 }
 0x172   :  { %v206_v29 = vmul.f32 1.442695, %v203_v28 }
 0x174   :  { %657 = vpow2.f32 %v206_v29 }
 0x177   :  { %v544_v6 = vpop.permute.xlu0 %543 }
 0x17a   :  { %v656_v30 = vpop.eup %655 }
 0x17b   :  { %v208_v31 = vsel %vm195_vm6, %v656_v30, 0.0 }
 0x17c   :  { %209 = vadd.xlane.f32.xlu1 %v208_v31 }
 0x17e   :  { %v658_v32 = vpop.eup %657 }
 0x17f   :  { %v211_v33 = vsel %vm195_vm6, %v658_v32, 0.0 }
 0x180   :  { %212 = vadd.xlane.f32.xlu1 %v211_v33 }
 0x191   :  { %548 = vperm.xlu1 %654, %v540_v54  }
 0x209   :  { %v210_v40 = vpop.xlane.xlu1 %209 }
 0x20a   :  { %659 = vrcp.f32 %v210_v40 }
 0x20d   :  { %v213_v41 = vpop.xlane.xlu1 %212 }
 0x20e   :  { %661 = vrcp.f32 %v213_v41 }
 0x214   :  { %v660_v42 = vpop.eup %659 }
 0x215   :  { %v215_v43 = vmul.f32 %v660_v42, %v656_v30 }
 0x217   :  { %603 = vmatmul.mubr.msk.f32.vlgmr.msra.gmra.mrb[2].mxu0 %vm195_vm6, %v215_v43 }
 0x218   :  { %v662_v44 = vpop.eup %661  ;;  %643 = vmatpush3.bf16.msra.mxu0 %v640_v39 }
 0x219   :  { %v217_v45 = vmul.f32 %v662_v44, %v658_v32  ;;  %645 = vmatprep.subr.bf16.mxu0 %v644_v51 }
 0x21b   :  { %608 = vmatmul.mubr.msk.f32.vlgmr.msra.gmra.mrb[2].mxu1 %vm195_vm6, %v217_v45 }
 0x21c   :  { %635 = vmatpush3.bf16.msra.mxu1 %v632_v37  ;;  %618 = vmatprep.mubr.msk.f32.mxu1 %vm32_vm0, %v715_v4 }
 0x21d   :  { %637 = vmatprep.subr.bf16.mxu1 %v636_v48  ;;  %647 = vmatpush3.bf16.msra.mxu0 %v644_v51 }
 0x220   :  { %639 = vmatpush3.bf16.msra.mxu1 %v636_v48 }
 0x223   :  { %619 = vmatmul.mubr.msk.f32.vlgmr.msra.gmra.mrb[4].mxu1 %vm32_vm0, %v717_v5  ;;  %v549_v5 = vpop.permute.xlu1 %548 }
 0x2ea   :  { %v287_v56 = vpop.f32.mrb[2].mxu0 }
 0x2eb   :  { %v604_v57 = vpop.f32.mrb[3].mxu0  ;;  %629 = vmatprep.mubr.msk.f32.mxu0 %vm32_vm0, %v287_v56 }
 0x2ee   :  { %v360_v58 = vpop.f32.mrb[2].mxu1 }
 0x2ef   :  { %v609_v59 = vpop.f32.mrb[3].mxu1  ;;  %630 = vmatmul.mubr.msk.f32.vlgmr.msra.gmra.mrb[4].mxu0 %vm32_vm0, %v360_v58 }
 0x2f6   :  { %v620_v60 = vpop.f32.mrb[4].mxu1 }
 0x2f7   :  { %v438_v61 = vpop.f32.mrb[5].mxu1 }
 0x3c2   :  { %v631_v62 = vpop.f32.mrb[4].mxu0 }
 0x3c3   :  { %v525_v0 = vadd.f32 %v631_v62, %v620_v60  ;;  %v519_v1 = vpop.f32.mrb[5].mxu0 }
 0x3c4   :  { %v520_v2 = vadd.f32 %v519_v1, %v438_v61 }
 0x3c5   :  { %v536_v3 = vadd.f32 %v569_v63, %v525_v0 }
 0x3c6   :  { %v535_v4 = vadd.f32 %v569_v63, %v520_v2 }
 0x3c7   :  { %663 = vtanh.f32 %v536_v3 }
 0x3c8   :  { %665 = vtanh.f32 %v535_v4 }
 0x3d1   :  { %v664_v7 = vpop.eup %663 }
 0x3d2   :  { %v666_v8 = vpop.eup %665  ;;  %v552_v9 = vmul.f32 %v664_v7, %v549_v5 }
 0x3d3   :  { %v551_v10 = vmul.f32 %v666_v8, %v544_v6 }
 0x3d4   :  { %554 = vst.msk [vmem:[%s797_s6 + $0x8] sm:$0xff] %vm32_vm0, %v552_v9 }
 0x3d5   :  { %553 = vst.msk [vmem:[%s797_s6] sm:$0xff] %vm32_vm0, %v551_v10 }

</bundles_post_ra>
